<compile_context>
chip_gen: v6e
topology: v6e:2x2x1
jax: 0.10.0
libtpu: 0.0.40
codegen_flags: <defaults>
</compile_context>

<pallas_src>
import math

import numpy as np
import jax
import jax.numpy as jnp
from jax.experimental import pallas as pl
from jax.experimental.pallas import tpu as pltpu

# ----------------------------------------------------------------------------
# Model hyper-parameters (small, consistent with the PyTorch module)
# ----------------------------------------------------------------------------
NUM_ACTIONS = 16
TOKEN_DIM = 32
NUM_EMBEDDINGS = 64
NUM_INPUT_TOKENS = 4
NUM_OUTPUT_TOKENS = 4

FLAT_IN_CH = 7                               # flattened_input_channels
CONV_CH = 16                                 # conv_num_channels
CONV_K = 5
FLAT_IN_DIM = NUM_ACTIONS * FLAT_IN_CH       # 112
CONV_IN_DIM = NUM_ACTIONS * CONV_CH          # 256
ENCODER_DIM = NUM_INPUT_TOKENS * TOKEN_DIM   # 128
DECODER_DIM = NUM_OUTPUT_TOKENS * TOKEN_DIM  # 128
OUT_PAD_DIM = 128                            # lane-dense padded output width
LN_EPS = 1e-5
BN_EPS = 1e-5

# rows of the f32 misc (bias / positional-encoding) slab
_R_BENC, _R_BT2, _R_BKV, _R_BSTEP, _R_BM2 = 0, 1, 2, 3, 4
_R_BD1A, _R_BD1B, _R_BD2A, _R_BD2B, _R_BD3A, _R_BD3B = 5, 6, 7, 8, 9, 10
_R_POS0 = 11
_MISC_ROWS = 15
_MISC_COLS = 512

PARAM_ORDER = ("w112", "w512", "w128", "w256", "w64", "emb", "m64", "misc")


# ----------------------------------------------------------------------------
# The fused Pallas kernel (one batch tile per grid step)
# ----------------------------------------------------------------------------
def _fwd_kernel(
    x_ref,      # (BT, 112) f32   input, flattened action-major (a*7 + c)
    u_ref,      # (BT, 4)   f32   per-step sampling uniforms
    w112_ref,   # (112, 512) bf16 BN+conv-Toeplitz+tokenizer-L1 fold
    w512_ref,   # (512, 128) bf16 tokenizer L2
    w128_ref,   # (128, 1024) bf16 [wkv+scores | wd1a | wd2a | wd3a]
    w256_ref,   # (256, 384) bf16 [wd1b | wd2b | wd3b(pad 128)]
    w64_ref,    # (64, 256)  bf16 [wstep(pad 128) | wm2(pad 128)]
    emb_ref,    # (32, 64)   f32  embedding matrix
    m64_ref,    # (64, 96)   f32  [tri(64) | embT(32)]
    misc_ref,   # (15, 512)  f32  biases + positional encodings
    out_ref,    # (BT, 128)  f32  lane-dense padded output
):
    f32 = jnp.float32
    bf16 = jnp.bfloat16
    B = x_ref.shape[0]
    D = TOKEN_DIM
    E = NUM_EMBEDDINGS
    T_in = NUM_INPUT_TOKENS
    T_out = NUM_OUTPUT_TOKENS

    def mm(a, w):
        return jnp.dot(a, w, preferred_element_type=f32)

    # ---------------- encoder (eval-mode BN + Conv1d Toeplitz + tokenizer) ----
    xb = x_ref[...].astype(bf16)                                          # (B,112)
    h = jnp.maximum(mm(xb, w112_ref[...]) + misc_ref[_R_BENC:_R_BENC + 1, :], 0.0)
    tok = (mm(h.astype(bf16), w512_ref[...])
           + misc_ref[_R_BT2:_R_BT2 + 1, 0:ENCODER_DIM])                  # (B,128) f32

    # ---------------- per-token LayerNorm (affine folded into wkv block) ------
    n_toks = []
    for t in range(T_in):
        tt = tok[:, t * D:(t + 1) * D]
        mu = jnp.mean(tt, axis=-1, keepdims=True)
        var = jnp.mean((tt - mu) ** 2, axis=-1, keepdims=True)
        n_toks.append((tt - mu) * jax.lax.rsqrt(var + LN_EPS))
    ntok = jnp.concatenate(n_toks, axis=1).astype(bf16)                   # (B,128)

    # one matmul: [per-token v_input_proj (128) | q.k scores per (query,token) (16)]
    kvall = (mm(ntok, w128_ref[:, 0:256])
             + misc_ref[_R_BKV:_R_BKV + 1, 0:256])                        # (B,256) f32
    v_list = [kvall[:, t * D:(t + 1) * D] for t in range(T_in)]           # 4 x (B,32)

    tri = m64_ref[:, 0:E]                       # (64,64) j<=k mask: cumsum-by-matmul
    embT = m64_ref[:, E:E + D]                  # (64,32)
    emb = emb_ref[...]                          # (32,64)
    lane = jax.lax.broadcasted_iota(jnp.int32, (B, E), 1)

    step_scores = []     # per generated token: (B,4) scores vs the 4 queries
    out_toks = []
    for i in range(T_out):
        posi = misc_ref[_R_POS0 + i:_R_POS0 + i + 1, 0:D]                 # (1,32)

        # attention scores fall out of the earlier matmuls (no k cache)
        parts = [kvall[:, ENCODER_DIM + i * T_in:ENCODER_DIM + (i + 1) * T_in]]
        parts += [step_scores[p][:, i:i + 1] for p in range(i)]
        scores = jnp.concatenate(parts, axis=1)                           # (B, 4+i)
        m = jnp.max(scores, axis=-1, keepdims=True)
        e = jnp.exp(scores - m)
        denom = jnp.sum(e, axis=-1, keepdims=True)
        att_un = e[:, 0:1] * v_list[0]
        for t in range(1, T_in + i):
            att_un = att_un + e[:, t:t + 1] * v_list[t]
        att = posi + att_un * pl.reciprocal(denom, approx=True)           # (B,32)

        # TODO(synk): torch prints at i == 0 are debug-only side effects; omitted.

        mu = jnp.mean(att, axis=-1, keepdims=True)
        var = jnp.mean((att - mu) ** 2, axis=-1, keepdims=True)
        att_n = (att - mu) * jax.lax.rsqrt(var + LN_EPS)

        # single packed matmul: [new_v | mlp_hidden | k-scores vs the 4 queries]
        step_in = jnp.concatenate([att_n, att], axis=1).astype(bf16)      # (B,64)
        step = (mm(step_in, w64_ref[:, 0:128])
                + misc_ref[_R_BSTEP:_R_BSTEP + 1, 0:128])                 # (B,128)
        v_list.append(step[:, 0:D])
        step_scores.append(step[:, 3 * D:3 * D + T_out])

        hh = jnp.maximum(step[:, D:3 * D], 0.0)                           # (B,64)
        mlp_out = mm(hh.astype(bf16), w64_ref[:, 128:256])                # (B,128)
        mlp_tok = mlp_out[:, 0:D] + misc_ref[_R_BM2:_R_BM2 + 1, 0:D]      # (B,32) f32

        # categorical sampling: scale-invariant inverse CDF (kept in f32)
        logits = mm(mlp_tok, emb)                                         # (B,64)
        lm = jnp.max(logits, axis=-1, keepdims=True)
        le = jnp.exp(logits - lm)
        cdf = mm(le, tri)                                                 # unnormalized cumsum
        thresh = u_ref[:, i:i + 1] * cdf[:, E - 1:E]
        idx = jnp.minimum(
            jnp.sum((cdf < thresh).astype(jnp.int32), axis=-1, keepdims=True), E - 1)
        onehot = (lane == idx).astype(f32)
        sel = mm(onehot, embT)                                            # (B,32)
        out_toks.append(sel)   # forward-only straight-through (+mlp - mlp) is a no-op

    y = jnp.concatenate(out_toks, axis=1)                                 # (B,128)

    # ---------------- decoder: three DoubleLayerMLPs --------------------------
    y = jnp.maximum(mm(y.astype(bf16), w128_ref[:, 256:512])
                    + misc_ref[_R_BD1A:_R_BD1A + 1, 0:256], 0.0)
    y = mm(y.astype(bf16), w256_ref[:, 0:128]) + misc_ref[_R_BD1B:_R_BD1B + 1, 0:128]
    y = jnp.maximum(mm(y.astype(bf16), w128_ref[:, 512:768])
                    + misc_ref[_R_BD2A:_R_BD2A + 1, 0:256], 0.0)
    y = mm(y.astype(bf16), w256_ref[:, 128:256]) + misc_ref[_R_BD2B:_R_BD2B + 1, 0:128]
    y = jnp.maximum(mm(y.astype(bf16), w128_ref[:, 768:1024])
                    + misc_ref[_R_BD3A:_R_BD3A + 1, 0:256], 0.0)
    y = mm(y.astype(bf16), w256_ref[:, 256:384]) + misc_ref[_R_BD3B:_R_BD3B + 1, 0:128]

    out_ref[...] = y.astype(out_ref.dtype)    # lane-dense (B,128) store


# ----------------------------------------------------------------------------
# Wrapper: one pallas_call, gridded over batch tiles
# ----------------------------------------------------------------------------
def _pick_batch_tile(B):
    # Tile capped at 128 rows: live v cache + decode intermediates keep vreg
    # pressure reasonable (per perf review); smaller divisors keep blocks legal.
    for t in (128, 64, 32, 16, 8):
        if B % t == 0:
            return t
    return B   # full-array block (always legal)


def _forward(x, params, sample_key):
    B = x.shape[0]
    x_flat = x.reshape(B, FLAT_IN_DIM)        # action-major flatten (a*7 + c)
    # deterministic uniforms standing in for torch.rand_like in the sampler
    u = jax.random.uniform(sample_key, (B, NUM_OUTPUT_TOKENS), jnp.float32)

    bt = _pick_batch_tile(B)
    grid = (B // bt,)
    plist = [params[k] for k in PARAM_ORDER]

    in_specs = [
        pl.BlockSpec((bt, FLAT_IN_DIM), lambda i: (i, 0)),
        pl.BlockSpec((bt, NUM_OUTPUT_TOKENS), lambda i: (i, 0)),
    ] + [pl.BlockSpec(p.shape, lambda i: (0, 0)) for p in plist]

    y = pl.pallas_call(
        _fwd_kernel,
        out_shape=jax.ShapeDtypeStruct((B, OUT_PAD_DIM), jnp.float32),
        grid=grid,
        in_specs=in_specs,
        out_specs=pl.BlockSpec((bt, OUT_PAD_DIM), lambda i: (i, 0)),
        compiler_params=pltpu.CompilerParams(
            dimension_semantics=("parallel",)),   # 2 TCs on v7x; harmless elsewhere
    )(x_flat, u, *plist)

    return y[:, :FLAT_IN_DIM].reshape(x.shape)


forward = jax.jit(_forward)


# ----------------------------------------------------------------------------
# Deterministic parameter initialization (all folds / packs precomputed)
# ----------------------------------------------------------------------------
def init_params(key):
    keys = list(jax.random.split(key, 40))
    it = iter(keys)

    def nxt():
        return next(it)

    def lin(fan_in, fan_out):
        bound = 1.0 / math.sqrt(fan_in)
        w = jax.random.uniform(nxt(), (fan_in, fan_out), jnp.float32, -bound, bound)
        b = jax.random.uniform(nxt(), (fan_out,), jnp.float32, -bound, bound)
        return np.asarray(w), np.asarray(b)

    A, C, D, E = NUM_ACTIONS, FLAT_IN_CH, TOKEN_DIM, NUM_EMBEDDINGS
    T_in, T_out = NUM_INPUT_TOKENS, NUM_OUTPUT_TOKENS
    scale = 1.0 / math.sqrt(D)

    # ---- BatchNorm1d(7), eval mode (running stats) — fully foldable ----------
    bn_gamma = np.ones((C,), np.float32)
    bn_beta = np.zeros((C,), np.float32)
    bn_rm = np.zeros((C,), np.float32)
    bn_rv = np.ones((C,), np.float32)
    bn_s = bn_gamma / np.sqrt(bn_rv + BN_EPS)
    bn_t = bn_beta - bn_rm * bn_s

    # ---- Conv1d(7->16, k=5, pad=2) as a Toeplitz matrix (action-major rows) --
    cbound = 1.0 / math.sqrt(C * CONV_K)
    conv_w = np.asarray(jax.random.uniform(nxt(), (CONV_CH, C, CONV_K),
                                           jnp.float32, -cbound, cbound))
    conv_b = np.asarray(jax.random.uniform(nxt(), (CONV_CH,),
                                           jnp.float32, -cbound, cbound))
    pad = CONV_K // 2
    wt = np.zeros((FLAT_IN_DIM, CONV_IN_DIM), np.float32)       # (112, 256)
    for o in range(CONV_CH):
        for c in range(C):
            for l in range(A):
                for k in range(CONV_K):
                    m = l + k - pad
                    if 0 <= m < A:
                        wt[m * C + c, o * A + l] = conv_w[o, c, k]
    bconv_flat = np.repeat(conv_b, A)                           # (256,)

    s_rep = np.tile(bn_s, A)                                    # (112,)  idx = a*7+c
    t_rep = np.tile(bn_t, A)

    # tokenizer DoubleLayerMLP(256 -> 128, r=2); fold BN + Toeplitz conv into L1
    tok_w1, tok_b1 = lin(CONV_IN_DIM, 2 * CONV_IN_DIM)          # (256, 512)
    tok_w2, tok_b2 = lin(2 * CONV_IN_DIM, ENCODER_DIM)          # (512, 128)
    wenc = (s_rep[:, None] * wt) @ tok_w1                       # (112, 512)
    benc = (t_rep @ wt + bconv_flat) @ tok_w1 + tok_b1          # (512,)

    # embedding matrix and positional encoding
    emb = np.asarray(jax.random.normal(nxt(), (D, E), jnp.float32))
    pos = np.asarray(jax.random.normal(nxt(), (T_out, D), jnp.float32))

    # LayerNorm(32)+Linear(32,32) with the LN affine folded into the linear
    def ln_linear():
        g = np.ones((D,), np.float32)
        beta = np.zeros((D,), np.float32)
        w, b = lin(D, D)
        return g[:, None] * w, beta @ w + b

    wkin, bkin = ln_linear()     # k_input_proj
    wkp, bkp = ln_linear()       # k_proj
    wvin, bvin = ln_linear()     # v_input_proj
    wvp, bvp = ln_linear()       # v_proj

    # k/v input proj + precomputed q.k score columns (query-major: 128 + i*4 + t)
    wkv = np.zeros((ENCODER_DIM, 256), np.float32)
    bkv = np.zeros((256,), np.float32)
    for t in range(T_in):
        wkv[t * D:(t + 1) * D, t * D:(t + 1) * D] = wvin
        bkv[t * D:(t + 1) * D] = bvin
    for i in range(T_out):
        for t in range(T_in):
            col = ENCODER_DIM + i * T_in + t
            wkv[t * D:(t + 1) * D, col] = (wkin @ pos[i]) * scale
            bkv[col] = (bkin @ pos[i]) * scale

    # per-decode-step pack: [att_n | att] -> [new_v | mlp_hidden | k-scores vs queries]
    mlp_w1, mlp_b1 = lin(D, 2 * D)                              # (32, 64)
    mlp_w2, mlp_b2 = lin(2 * D, D)                              # (64, 32)
    wstep = np.zeros((2 * D, 128), np.float32)
    bstep = np.zeros((128,), np.float32)
    wstep[0:D, 0:D] = wvp
    bstep[0:D] = bvp
    wstep[D:2 * D, D:3 * D] = mlp_w1
    bstep[D:3 * D] = mlp_b1
    for j in range(T_out):
        wstep[0:D, 3 * D + j] = (wkp @ pos[j]) * scale
        bstep[3 * D + j] = (bkp @ pos[j]) * scale

    # decoder: three DoubleLayerMLPs (last layer zero-padded to 128 outputs)
    wd1a, bd1a = lin(DECODER_DIM, 2 * DECODER_DIM)
    wd1b, bd1b = lin(2 * DECODER_DIM, DECODER_DIM)
    wd2a, bd2a = lin(DECODER_DIM, 2 * DECODER_DIM)
    wd2b, bd2b = lin(2 * DECODER_DIM, DECODER_DIM)
    wd3a, bd3a = lin(DECODER_DIM, 2 * DECODER_DIM)
    wd3b, bd3b = lin(2 * DECODER_DIM, FLAT_IN_DIM)

    # ---- pack weight slabs (bf16, lane-dense, 128-aligned column blocks) -----
    w128 = np.zeros((128, 1024), np.float32)
    w128[:, 0:256] = wkv
    w128[:, 256:512] = wd1a
    w128[:, 512:768] = wd2a
    w128[:, 768:1024] = wd3a
    w256 = np.zeros((256, 384), np.float32)
    w256[:, 0:128] = wd1b
    w256[:, 128:256] = wd2b
    w256[:, 256:256 + FLAT_IN_DIM] = wd3b
    w64 = np.zeros((64, 256), np.float32)
    w64[:, 0:128] = wstep
    w64[:, 128:128 + D] = mlp_w2

    # ---- f32 misc slabs: [tri | embT] and all biases + positional encodings --
    m64 = np.zeros((64, 96), np.float32)
    row = np.arange(E)[:, None]
    col = np.arange(E)[None, :]
    m64[:, 0:E] = (row <= col).astype(np.float32)   # inclusive cumsum-by-matmul
    m64[:, E:E + D] = emb.T

    misc = np.zeros((_MISC_ROWS, _MISC_COLS), np.float32)
    misc[_R_BENC, 0:512] = benc
    misc[_R_BT2, 0:ENCODER_DIM] = tok_b2
    misc[_R_BKV, 0:256] = bkv
    misc[_R_BSTEP, 0:128] = bstep
    misc[_R_BM2, 0:D] = mlp_b2
    misc[_R_BD1A, 0:256] = bd1a
    misc[_R_BD1B, 0:128] = bd1b
    misc[_R_BD2A, 0:256] = bd2a
    misc[_R_BD2B, 0:128] = bd2b
    misc[_R_BD3A, 0:256] = bd3a
    misc[_R_BD3B, 0:FLAT_IN_DIM] = bd3b
    for i in range(T_out):
        misc[_R_POS0 + i, 0:D] = pos[i]

    bf16 = jnp.bfloat16
    return {
        "w112": jnp.asarray(wenc, bf16),
        "w512": jnp.asarray(tok_w2, bf16),
        "w128": jnp.asarray(w128, bf16),
        "w256": jnp.asarray(w256, bf16),
        "w64": jnp.asarray(w64, bf16),
        "emb": jnp.asarray(emb, jnp.float32),
        "m64": jnp.asarray(m64, jnp.float32),
        "misc": jnp.asarray(misc, jnp.float32),
    }


# ----------------------------------------------------------------------------
if __name__ == "__main__":
    root = jax.random.PRNGKey(0)
    k_param, k_x, k_sample = jax.random.split(root, 3)

    params = init_params(k_param)
    x = jax.random.normal(k_x, (2, NUM_ACTIONS, FLAT_IN_CH), jnp.float32)

    traj = forward(x, params, k_sample)
    traj = jax.block_until_ready(traj)

    assert traj.shape == x.shape, (traj.shape, x.shape)
    assert bool(jnp.all(jnp.isfinite(traj)))
    print("KERNEL_OK")
</pallas_src>

<mosaic_0001>
module attributes {stable_mosaic.version = 11 : i64} {
  func.func @_fwd_kernel(%arg0: i32, %arg1: memref<2x112xf32, #tpu.memory_space<vmem>>, %arg2: memref<2x4xf32, #tpu.memory_space<vmem>>, %arg3: memref<112x512xbf16, #tpu.memory_space<vmem>>, %arg4: memref<512x128xbf16, #tpu.memory_space<vmem>>, %arg5: memref<128x1024xbf16, #tpu.memory_space<vmem>>, %arg6: memref<256x384xbf16, #tpu.memory_space<vmem>>, %arg7: memref<64x256xbf16, #tpu.memory_space<vmem>>, %arg8: memref<32x64xf32, #tpu.memory_space<vmem>>, %arg9: memref<64x96xf32, #tpu.memory_space<vmem>>, %arg10: memref<15x512xf32, #tpu.memory_space<vmem>>, %arg11: memref<2x128xf32, #tpu.memory_space<vmem>>) attributes {dimension_semantics = [#tpu.dimension_semantics<parallel>], iteration_bounds = array<i64: 1>, scalar_prefetch = 0 : i64, scratch_operands = 0 : i64, tpu.core_type = #tpu.core_type<tc>, window_params = [{transform_indices = @transform_0, window_bounds = array<i64: 2, 112>}, {transform_indices = @transform_1, window_bounds = array<i64: 2, 4>}, {pipeline_mode = #tpu.pipeline_mode<synchronous>, transform_indices = @transform_2, window_bounds = array<i64: 112, 512>}, {pipeline_mode = #tpu.pipeline_mode<synchronous>, transform_indices = @transform_3, window_bounds = array<i64: 512, 128>}, {pipeline_mode = #tpu.pipeline_mode<synchronous>, transform_indices = @transform_4, window_bounds = array<i64: 128, 1024>}, {pipeline_mode = #tpu.pipeline_mode<synchronous>, transform_indices = @transform_5, window_bounds = array<i64: 256, 384>}, {pipeline_mode = #tpu.pipeline_mode<synchronous>, transform_indices = @transform_6, window_bounds = array<i64: 64, 256>}, {pipeline_mode = #tpu.pipeline_mode<synchronous>, transform_indices = @transform_7, window_bounds = array<i64: 32, 64>}, {pipeline_mode = #tpu.pipeline_mode<synchronous>, transform_indices = @transform_8, window_bounds = array<i64: 64, 96>}, {pipeline_mode = #tpu.pipeline_mode<synchronous>, transform_indices = @transform_9, window_bounds = array<i64: 15, 512>}, {transform_indices = @transform_10, window_bounds = array<i64: 2, 128>}]} {
    %c0 = arith.constant 0 : index
    %c0_0 = arith.constant 0 : index
    %0 = vector.load %arg1[%c0, %c0_0] : memref<2x112xf32, #tpu.memory_space<vmem>>, vector<2x112xf32>
    %1 = arith.truncf %0 : vector<2x112xf32> to vector<2x112xbf16>
    %c0_1 = arith.constant 0 : index
    %c0_2 = arith.constant 0 : index
    %2 = vector.load %arg3[%c0_1, %c0_2] : memref<112x512xbf16, #tpu.memory_space<vmem>>, vector<112x512xbf16>
    %cst = arith.constant dense<0.000000e+00> : vector<2x512xf32>
    %3 = tpu.matmul %1, %2, %cst {dimension_numbers = #tpu.dot_dimension_numbers<[1], [0], [0], [1], [0, 0, 1, 1], [], []>} : vector<2x112xbf16>, vector<112x512xbf16>, vector<2x512xf32> -> vector<2x512xf32>
    %c0_3 = arith.constant 0 : index
    %c0_4 = arith.constant 0 : index
    %4 = vector.load %arg10[%c0_3, %c0_4] : memref<15x512xf32, #tpu.memory_space<vmem>>, vector<1x512xf32>
    %5 = vector.broadcast %4 : vector<1x512xf32> to vector<2x512xf32>
    %6 = arith.addf %3, %5 : vector<2x512xf32>
    %cst_5 = arith.constant 0.000000e+00 : f32
    %7 = vector.broadcast %cst_5 : f32 to vector<2x512xf32>
    %8 = arith.maximumf %6, %7 : vector<2x512xf32>
    %9 = arith.truncf %8 : vector<2x512xf32> to vector<2x512xbf16>
    %c0_6 = arith.constant 0 : index
    %c0_7 = arith.constant 0 : index
    %10 = vector.load %arg4[%c0_6, %c0_7] : memref<512x128xbf16, #tpu.memory_space<vmem>>, vector<512x128xbf16>
    %cst_8 = arith.constant dense<0.000000e+00> : vector<2x128xf32>
    %11 = tpu.matmul %9, %10, %cst_8 {dimension_numbers = #tpu.dot_dimension_numbers<[1], [0], [0], [1], [0, 0, 1, 1], [], []>} : vector<2x512xbf16>, vector<512x128xbf16>, vector<2x128xf32> -> vector<2x128xf32>
    %c1 = arith.constant 1 : index
    %c0_9 = arith.constant 0 : index
    %12 = vector.load %arg10[%c1, %c0_9] : memref<15x512xf32, #tpu.memory_space<vmem>>, vector<1x128xf32>
    %13 = vector.broadcast %12 : vector<1x128xf32> to vector<2x128xf32>
    %14 = arith.addf %11, %13 : vector<2x128xf32>
    %15 = vector.extract_strided_slice %14 {offsets = [0, 0], sizes = [2, 32], strides = [1, 1]} : vector<2x128xf32> to vector<2x32xf32>
    %cst_10 = arith.constant dense<0.000000e+00> : vector<2xf32>
    %16 = vector.multi_reduction <add>, %15, %cst_10 [1] : vector<2x32xf32> to vector<2xf32>
    %17 = vector.shape_cast %16 : vector<2xf32> to vector<2x1xf32>
    %cst_11 = arith.constant 3.200000e+01 : f32
    %18 = vector.broadcast %cst_11 : f32 to vector<2x1xf32>
    %19 = arith.divf %17, %18 : vector<2x1xf32>
    %20 = vector.broadcast %19 : vector<2x1xf32> to vector<2x32xf32>
    %21 = arith.subf %15, %20 : vector<2x32xf32>
    %22 = arith.mulf %21, %21 : vector<2x32xf32>
    %cst_12 = arith.constant dense<0.000000e+00> : vector<2xf32>
    %23 = vector.multi_reduction <add>, %22, %cst_12 [1] : vector<2x32xf32> to vector<2xf32>
    %24 = vector.shape_cast %23 : vector<2xf32> to vector<2x1xf32>
    %cst_13 = arith.constant 3.200000e+01 : f32
    %25 = vector.broadcast %cst_13 : f32 to vector<2x1xf32>
    %26 = arith.divf %24, %25 : vector<2x1xf32>
    %27 = vector.broadcast %19 : vector<2x1xf32> to vector<2x32xf32>
    %28 = arith.subf %15, %27 : vector<2x32xf32>
    %cst_14 = arith.constant 9.99999974E-6 : f32
    %29 = vector.broadcast %cst_14 : f32 to vector<2x1xf32>
    %30 = arith.addf %26, %29 : vector<2x1xf32>
    %31 = math.rsqrt %30 : vector<2x1xf32>
    %32 = vector.broadcast %31 : vector<2x1xf32> to vector<2x32xf32>
    %33 = arith.mulf %28, %32 : vector<2x32xf32>
    %34 = vector.extract_strided_slice %14 {offsets = [0, 32], sizes = [2, 32], strides = [1, 1]} : vector<2x128xf32> to vector<2x32xf32>
    %cst_15 = arith.constant dense<0.000000e+00> : vector<2xf32>
    %35 = vector.multi_reduction <add>, %34, %cst_15 [1] : vector<2x32xf32> to vector<2xf32>
    %36 = vector.shape_cast %35 : vector<2xf32> to vector<2x1xf32>
    %cst_16 = arith.constant 3.200000e+01 : f32
    %37 = vector.broadcast %cst_16 : f32 to vector<2x1xf32>
    %38 = arith.divf %36, %37 : vector<2x1xf32>
    %39 = vector.broadcast %38 : vector<2x1xf32> to vector<2x32xf32>
    %40 = arith.subf %34, %39 : vector<2x32xf32>
    %41 = arith.mulf %40, %40 : vector<2x32xf32>
    %cst_17 = arith.constant dense<0.000000e+00> : vector<2xf32>
    %42 = vector.multi_reduction <add>, %41, %cst_17 [1] : vector<2x32xf32> to vector<2xf32>
    %43 = vector.shape_cast %42 : vector<2xf32> to vector<2x1xf32>
    %cst_18 = arith.constant 3.200000e+01 : f32
    %44 = vector.broadcast %cst_18 : f32 to vector<2x1xf32>
    %45 = arith.divf %43, %44 : vector<2x1xf32>
    %46 = vector.broadcast %38 : vector<2x1xf32> to vector<2x32xf32>
    %47 = arith.subf %34, %46 : vector<2x32xf32>
    %cst_19 = arith.constant 9.99999974E-6 : f32
    %48 = vector.broadcast %cst_19 : f32 to vector<2x1xf32>
    %49 = arith.addf %45, %48 : vector<2x1xf32>
    %50 = math.rsqrt %49 : vector<2x1xf32>
    %51 = vector.broadcast %50 : vector<2x1xf32> to vector<2x32xf32>
    %52 = arith.mulf %47, %51 : vector<2x32xf32>
    %53 = vector.extract_strided_slice %14 {offsets = [0, 64], sizes = [2, 32], strides = [1, 1]} : vector<2x128xf32> to vector<2x32xf32>
    %cst_20 = arith.constant dense<0.000000e+00> : vector<2xf32>
    %54 = vector.multi_reduction <add>, %53, %cst_20 [1] : vector<2x32xf32> to vector<2xf32>
    %55 = vector.shape_cast %54 : vector<2xf32> to vector<2x1xf32>
    %cst_21 = arith.constant 3.200000e+01 : f32
    %56 = vector.broadcast %cst_21 : f32 to vector<2x1xf32>
    %57 = arith.divf %55, %56 : vector<2x1xf32>
    %58 = vector.broadcast %57 : vector<2x1xf32> to vector<2x32xf32>
    %59 = arith.subf %53, %58 : vector<2x32xf32>
    %60 = arith.mulf %59, %59 : vector<2x32xf32>
    %cst_22 = arith.constant dense<0.000000e+00> : vector<2xf32>
    %61 = vector.multi_reduction <add>, %60, %cst_22 [1] : vector<2x32xf32> to vector<2xf32>
    %62 = vector.shape_cast %61 : vector<2xf32> to vector<2x1xf32>
    %cst_23 = arith.constant 3.200000e+01 : f32
    %63 = vector.broadcast %cst_23 : f32 to vector<2x1xf32>
    %64 = arith.divf %62, %63 : vector<2x1xf32>
    %65 = vector.broadcast %57 : vector<2x1xf32> to vector<2x32xf32>
    %66 = arith.subf %53, %65 : vector<2x32xf32>
    %cst_24 = arith.constant 9.99999974E-6 : f32
    %67 = vector.broadcast %cst_24 : f32 to vector<2x1xf32>
    %68 = arith.addf %64, %67 : vector<2x1xf32>
    %69 = math.rsqrt %68 : vector<2x1xf32>
    %70 = vector.broadcast %69 : vector<2x1xf32> to vector<2x32xf32>
    %71 = arith.mulf %66, %70 : vector<2x32xf32>
    %72 = vector.extract_strided_slice %14 {offsets = [0, 96], sizes = [2, 32], strides = [1, 1]} : vector<2x128xf32> to vector<2x32xf32>
    %cst_25 = arith.constant dense<0.000000e+00> : vector<2xf32>
    %73 = vector.multi_reduction <add>, %72, %cst_25 [1] : vector<2x32xf32> to vector<2xf32>
    %74 = vector.shape_cast %73 : vector<2xf32> to vector<2x1xf32>
    %cst_26 = arith.constant 3.200000e+01 : f32
    %75 = vector.broadcast %cst_26 : f32 to vector<2x1xf32>
    %76 = arith.divf %74, %75 : vector<2x1xf32>
    %77 = vector.broadcast %76 : vector<2x1xf32> to vector<2x32xf32>
    %78 = arith.subf %72, %77 : vector<2x32xf32>
    %79 = arith.mulf %78, %78 : vector<2x32xf32>
    %cst_27 = arith.constant dense<0.000000e+00> : vector<2xf32>
    %80 = vector.multi_reduction <add>, %79, %cst_27 [1] : vector<2x32xf32> to vector<2xf32>
    %81 = vector.shape_cast %80 : vector<2xf32> to vector<2x1xf32>
    %cst_28 = arith.constant 3.200000e+01 : f32
    %82 = vector.broadcast %cst_28 : f32 to vector<2x1xf32>
    %83 = arith.divf %81, %82 : vector<2x1xf32>
    %84 = vector.broadcast %76 : vector<2x1xf32> to vector<2x32xf32>
    %85 = arith.subf %72, %84 : vector<2x32xf32>
    %cst_29 = arith.constant 9.99999974E-6 : f32
    %86 = vector.broadcast %cst_29 : f32 to vector<2x1xf32>
    %87 = arith.addf %83, %86 : vector<2x1xf32>
    %88 = math.rsqrt %87 : vector<2x1xf32>
    %89 = vector.broadcast %88 : vector<2x1xf32> to vector<2x32xf32>
    %90 = arith.mulf %85, %89 : vector<2x32xf32>
    %91 = tpu.concatenate %33, %52, %71, %90 in 1 : vector<2x32xf32>, vector<2x32xf32>, vector<2x32xf32>, vector<2x32xf32> -> vector<2x128xf32>
    %92 = arith.truncf %91 : vector<2x128xf32> to vector<2x128xbf16>
    %c0_30 = arith.constant 0 : index
    %c0_31 = arith.constant 0 : index
    %93 = vector.load %arg5[%c0_30, %c0_31] : memref<128x1024xbf16, #tpu.memory_space<vmem>>, vector<128x256xbf16>
    %cst_32 = arith.constant dense<0.000000e+00> : vector<2x256xf32>
    %94 = tpu.matmul %92, %93, %cst_32 {dimension_numbers = #tpu.dot_dimension_numbers<[1], [0], [0], [1], [0, 0, 1, 1], [], []>} : vector<2x128xbf16>, vector<128x256xbf16>, vector<2x256xf32> -> vector<2x256xf32>
    %c2 = arith.constant 2 : index
    %c0_33 = arith.constant 0 : index
    %95 = vector.load %arg10[%c2, %c0_33] : memref<15x512xf32, #tpu.memory_space<vmem>>, vector<1x256xf32>
    %96 = vector.broadcast %95 : vector<1x256xf32> to vector<2x256xf32>
    %97 = arith.addf %94, %96 : vector<2x256xf32>
    %98 = vector.extract_strided_slice %97 {offsets = [0, 0], sizes = [2, 32], strides = [1, 1]} : vector<2x256xf32> to vector<2x32xf32>
    %99 = vector.extract_strided_slice %97 {offsets = [0, 32], sizes = [2, 32], strides = [1, 1]} : vector<2x256xf32> to vector<2x32xf32>
    %100 = vector.extract_strided_slice %97 {offsets = [0, 64], sizes = [2, 32], strides = [1, 1]} : vector<2x256xf32> to vector<2x32xf32>
    %101 = vector.extract_strided_slice %97 {offsets = [0, 96], sizes = [2, 32], strides = [1, 1]} : vector<2x256xf32> to vector<2x32xf32>
    %c0_34 = arith.constant 0 : index
    %c0_35 = arith.constant 0 : index
    %102 = vector.load %arg9[%c0_34, %c0_35] : memref<64x96xf32, #tpu.memory_space<vmem>>, vector<64x64xf32>
    %c0_36 = arith.constant 0 : index
    %c64 = arith.constant 64 : index
    %103 = vector.load %arg9[%c0_36, %c64] : memref<64x96xf32, #tpu.memory_space<vmem>>, vector<64x32xf32>
    %c0_37 = arith.constant 0 : index
    %c0_38 = arith.constant 0 : index
    %104 = vector.load %arg8[%c0_37, %c0_38] : memref<32x64xf32, #tpu.memory_space<vmem>>, vector<32x64xf32>
    %105 = tpu.iota {dimensions = array<i32: 1>} : vector<2x64xi32>
    %c11 = arith.constant 11 : index
    %c0_39 = arith.constant 0 : index
    %106 = vector.load %arg10[%c11, %c0_39] : memref<15x512xf32, #tpu.memory_space<vmem>>, vector<1x32xf32>
    %107 = vector.extract_strided_slice %97 {offsets = [0, 128], sizes = [2, 4], strides = [1, 1]} : vector<2x256xf32> to vector<2x4xf32>
    %cst_40 = arith.constant dense<0xFF800000> : vector<2xf32>
    %108 = vector.multi_reduction <maximumf>, %107, %cst_40 [1] : vector<2x4xf32> to vector<2xf32>
    %109 = vector.shape_cast %108 : vector<2xf32> to vector<2x1xf32>
    %110 = vector.broadcast %109 : vector<2x1xf32> to vector<2x4xf32>
    %111 = arith.subf %107, %110 : vector<2x4xf32>
    %112 = math.exp %111 : vector<2x4xf32>
    %cst_41 = arith.constant dense<0.000000e+00> : vector<2xf32>
    %113 = vector.multi_reduction <add>, %112, %cst_41 [1] : vector<2x4xf32> to vector<2xf32>
    %114 = vector.shape_cast %113 : vector<2xf32> to vector<2x1xf32>
    %115 = vector.extract_strided_slice %112 {offsets = [0, 0], sizes = [2, 1], strides = [1, 1]} : vector<2x4xf32> to vector<2x1xf32>
    %116 = vector.broadcast %115 : vector<2x1xf32> to vector<2x32xf32>
    %117 = arith.mulf %116, %98 : vector<2x32xf32>
    %118 = vector.extract_strided_slice %112 {offsets = [0, 1], sizes = [2, 1], strides = [1, 1]} : vector<2x4xf32> to vector<2x1xf32>
    %119 = vector.broadcast %118 : vector<2x1xf32> to vector<2x32xf32>
    %120 = arith.mulf %119, %99 : vector<2x32xf32>
    %121 = arith.addf %117, %120 : vector<2x32xf32>
    %122 = vector.extract_strided_slice %112 {offsets = [0, 2], sizes = [2, 1], strides = [1, 1]} : vector<2x4xf32> to vector<2x1xf32>
    %123 = vector.broadcast %122 : vector<2x1xf32> to vector<2x32xf32>
    %124 = arith.mulf %123, %100 : vector<2x32xf32>
    %125 = arith.addf %121, %124 : vector<2x32xf32>
    %126 = vector.extract_strided_slice %112 {offsets = [0, 3], sizes = [2, 1], strides = [1, 1]} : vector<2x4xf32> to vector<2x1xf32>
    %127 = vector.broadcast %126 : vector<2x1xf32> to vector<2x32xf32>
    %128 = arith.mulf %127, %101 : vector<2x32xf32>
    %129 = arith.addf %125, %128 : vector<2x32xf32>
    %130 = tpu.reciprocal %114 {approx = true} : vector<2x1xf32> -> vector<2x1xf32>
    %131 = vector.broadcast %130 : vector<2x1xf32> to vector<2x32xf32>
    %132 = arith.mulf %129, %131 : vector<2x32xf32>
    %133 = vector.broadcast %106 : vector<1x32xf32> to vector<2x32xf32>
    %134 = arith.addf %133, %132 : vector<2x32xf32>
    %cst_42 = arith.constant dense<0.000000e+00> : vector<2xf32>
    %135 = vector.multi_reduction <add>, %134, %cst_42 [1] : vector<2x32xf32> to vector<2xf32>
    %136 = vector.shape_cast %135 : vector<2xf32> to vector<2x1xf32>
    %cst_43 = arith.constant 3.200000e+01 : f32
    %137 = vector.broadcast %cst_43 : f32 to vector<2x1xf32>
    %138 = arith.divf %136, %137 : vector<2x1xf32>
    %139 = vector.broadcast %138 : vector<2x1xf32> to vector<2x32xf32>
    %140 = arith.subf %134, %139 : vector<2x32xf32>
    %141 = arith.mulf %140, %140 : vector<2x32xf32>
    %cst_44 = arith.constant dense<0.000000e+00> : vector<2xf32>
    %142 = vector.multi_reduction <add>, %141, %cst_44 [1] : vector<2x32xf32> to vector<2xf32>
    %143 = vector.shape_cast %142 : vector<2xf32> to vector<2x1xf32>
    %cst_45 = arith.constant 3.200000e+01 : f32
    %144 = vector.broadcast %cst_45 : f32 to vector<2x1xf32>
    %145 = arith.divf %143, %144 : vector<2x1xf32>
    %146 = vector.broadcast %138 : vector<2x1xf32> to vector<2x32xf32>
    %147 = arith.subf %134, %146 : vector<2x32xf32>
    %cst_46 = arith.constant 9.99999974E-6 : f32
    %148 = vector.broadcast %cst_46 : f32 to vector<2x1xf32>
    %149 = arith.addf %145, %148 : vector<2x1xf32>
    %150 = math.rsqrt %149 : vector<2x1xf32>
    %151 = vector.broadcast %150 : vector<2x1xf32> to vector<2x32xf32>
    %152 = arith.mulf %147, %151 : vector<2x32xf32>
    %153 = tpu.concatenate %152, %134 in 1 : vector<2x32xf32>, vector<2x32xf32> -> vector<2x64xf32>
    %154 = arith.truncf %153 : vector<2x64xf32> to vector<2x64xbf16>
    %c0_47 = arith.constant 0 : index
    %c0_48 = arith.constant 0 : index
    %155 = vector.load %arg7[%c0_47, %c0_48] : memref<64x256xbf16, #tpu.memory_space<vmem>>, vector<64x128xbf16>
    %cst_49 = arith.constant dense<0.000000e+00> : vector<2x128xf32>
    %156 = tpu.matmul %154, %155, %cst_49 {dimension_numbers = #tpu.dot_dimension_numbers<[1], [0], [0], [1], [0, 0, 1, 1], [], []>} : vector<2x64xbf16>, vector<64x128xbf16>, vector<2x128xf32> -> vector<2x128xf32>
    %c3 = arith.constant 3 : index
    %c0_50 = arith.constant 0 : index
    %157 = vector.load %arg10[%c3, %c0_50] : memref<15x512xf32, #tpu.memory_space<vmem>>, vector<1x128xf32>
    %158 = vector.broadcast %157 : vector<1x128xf32> to vector<2x128xf32>
    %159 = arith.addf %156, %158 : vector<2x128xf32>
    %160 = vector.extract_strided_slice %159 {offsets = [0, 0], sizes = [2, 32], strides = [1, 1]} : vector<2x128xf32> to vector<2x32xf32>
    %161 = vector.extract_strided_slice %159 {offsets = [0, 96], sizes = [2, 4], strides = [1, 1]} : vector<2x128xf32> to vector<2x4xf32>
    %162 = vector.extract_strided_slice %159 {offsets = [0, 32], sizes = [2, 64], strides = [1, 1]} : vector<2x128xf32> to vector<2x64xf32>
    %cst_51 = arith.constant 0.000000e+00 : f32
    %163 = vector.broadcast %cst_51 : f32 to vector<2x64xf32>
    %164 = arith.maximumf %162, %163 : vector<2x64xf32>
    %165 = arith.truncf %164 : vector<2x64xf32> to vector<2x64xbf16>
    %c0_52 = arith.constant 0 : index
    %c128 = arith.constant 128 : index
    %166 = vector.load %arg7[%c0_52, %c128] : memref<64x256xbf16, #tpu.memory_space<vmem>>, vector<64x128xbf16>
    %cst_53 = arith.constant dense<0.000000e+00> : vector<2x128xf32>
    %167 = tpu.matmul %165, %166, %cst_53 {dimension_numbers = #tpu.dot_dimension_numbers<[1], [0], [0], [1], [0, 0, 1, 1], [], []>} : vector<2x64xbf16>, vector<64x128xbf16>, vector<2x128xf32> -> vector<2x128xf32>
    %168 = vector.extract_strided_slice %167 {offsets = [0, 0], sizes = [2, 32], strides = [1, 1]} : vector<2x128xf32> to vector<2x32xf32>
    %c4 = arith.constant 4 : index
    %c0_54 = arith.constant 0 : index
    %169 = vector.load %arg10[%c4, %c0_54] : memref<15x512xf32, #tpu.memory_space<vmem>>, vector<1x32xf32>
    %170 = vector.broadcast %169 : vector<1x32xf32> to vector<2x32xf32>
    %171 = arith.addf %168, %170 : vector<2x32xf32>
    %cst_55 = arith.constant dense<0.000000e+00> : vector<2x64xf32>
    %172 = tpu.matmul %171, %104, %cst_55 {dimension_numbers = #tpu.dot_dimension_numbers<[1], [0], [0], [1], [0, 0, 1, 1], [], []>} : vector<2x32xf32>, vector<32x64xf32>, vector<2x64xf32> -> vector<2x64xf32>
    %cst_56 = arith.constant dense<0xFF800000> : vector<2xf32>
    %173 = vector.multi_reduction <maximumf>, %172, %cst_56 [1] : vector<2x64xf32> to vector<2xf32>
    %174 = vector.shape_cast %173 : vector<2xf32> to vector<2x1xf32>
    %175 = vector.broadcast %174 : vector<2x1xf32> to vector<2x64xf32>
    %176 = arith.subf %172, %175 : vector<2x64xf32>
    %177 = math.exp %176 : vector<2x64xf32>
    %cst_57 = arith.constant dense<0.000000e+00> : vector<2x64xf32>
    %178 = tpu.matmul %177, %102, %cst_57 {dimension_numbers = #tpu.dot_dimension_numbers<[1], [0], [0], [1], [0, 0, 1, 1], [], []>} : vector<2x64xf32>, vector<64x64xf32>, vector<2x64xf32> -> vector<2x64xf32>
    %c0_58 = arith.constant 0 : index
    %c0_59 = arith.constant 0 : index
    %179 = vector.load %arg2[%c0_58, %c0_59] : memref<2x4xf32, #tpu.memory_space<vmem>>, vector<2x1xf32>
    %180 = vector.extract_strided_slice %178 {offsets = [0, 63], sizes = [2, 1], strides = [1, 1]} : vector<2x64xf32> to vector<2x1xf32>
    %181 = arith.mulf %179, %180 : vector<2x1xf32>
    %182 = vector.broadcast %181 : vector<2x1xf32> to vector<2x64xf32>
    %183 = arith.cmpf olt, %178, %182 : vector<2x64xf32>
    %184 = arith.extui %183 : vector<2x64xi1> to vector<2x64xi32>
    %cst_60 = arith.constant dense<0> : vector<2xi32>
    %185 = vector.multi_reduction <add>, %184, %cst_60 [1] : vector<2x64xi32> to vector<2xi32>
    %186 = vector.shape_cast %185 : vector<2xi32> to vector<2x1xi32>
    %c63_i32 = arith.constant 63 : i32
    %187 = vector.broadcast %c63_i32 : i32 to vector<2x1xi32>
    %188 = arith.minsi %186, %187 : vector<2x1xi32>
    %189 = vector.broadcast %188 : vector<2x1xi32> to vector<2x64xi32>
    %190 = arith.cmpi eq, %105, %189 : vector<2x64xi32>
    %191 = arith.extui %190 : vector<2x64xi1> to vector<2x64xi32>
    %192 = arith.sitofp %191 : vector<2x64xi32> to vector<2x64xf32>
    %cst_61 = arith.constant dense<0.000000e+00> : vector<2x32xf32>
    %193 = tpu.matmul %192, %103, %cst_61 {dimension_numbers = #tpu.dot_dimension_numbers<[1], [0], [0], [1], [0, 0, 1, 1], [], []>} : vector<2x64xf32>, vector<64x32xf32>, vector<2x32xf32> -> vector<2x32xf32>
    %c12 = arith.constant 12 : index
    %c0_62 = arith.constant 0 : index
    %194 = vector.load %arg10[%c12, %c0_62] : memref<15x512xf32, #tpu.memory_space<vmem>>, vector<1x32xf32>
    %195 = vector.extract_strided_slice %97 {offsets = [0, 132], sizes = [2, 4], strides = [1, 1]} : vector<2x256xf32> to vector<2x4xf32>
    %196 = vector.extract_strided_slice %161 {offsets = [0, 1], sizes = [2, 1], strides = [1, 1]} : vector<2x4xf32> to vector<2x1xf32>
    %197 = tpu.concatenate %195, %196 in 1 : vector<2x4xf32>, vector<2x1xf32> -> vector<2x5xf32>
    %cst_63 = arith.constant dense<0xFF800000> : vector<2xf32>
    %198 = vector.multi_reduction <maximumf>, %197, %cst_63 [1] : vector<2x5xf32> to vector<2xf32>
    %199 = vector.shape_cast %198 : vector<2xf32> to vector<2x1xf32>
    %200 = vector.broadcast %199 : vector<2x1xf32> to vector<2x5xf32>
    %201 = arith.subf %197, %200 : vector<2x5xf32>
    %202 = math.exp %201 : vector<2x5xf32>
    %cst_64 = arith.constant dense<0.000000e+00> : vector<2xf32>
    %203 = vector.multi_reduction <add>, %202, %cst_64 [1] : vector<2x5xf32> to vector<2xf32>
    %204 = vector.shape_cast %203 : vector<2xf32> to vector<2x1xf32>
    %205 = vector.extract_strided_slice %202 {offsets = [0, 0], sizes = [2, 1], strides = [1, 1]} : vector<2x5xf32> to vector<2x1xf32>
    %206 = vector.broadcast %205 : vector<2x1xf32> to vector<2x32xf32>
    %207 = arith.mulf %206, %98 : vector<2x32xf32>
    %208 = vector.extract_strided_slice %202 {offsets = [0, 1], sizes = [2, 1], strides = [1, 1]} : vector<2x5xf32> to vector<2x1xf32>
    %209 = vector.broadcast %208 : vector<2x1xf32> to vector<2x32xf32>
    %210 = arith.mulf %209, %99 : vector<2x32xf32>
    %211 = arith.addf %207, %210 : vector<2x32xf32>
    %212 = vector.extract_strided_slice %202 {offsets = [0, 2], sizes = [2, 1], strides = [1, 1]} : vector<2x5xf32> to vector<2x1xf32>
    %213 = vector.broadcast %212 : vector<2x1xf32> to vector<2x32xf32>
    %214 = arith.mulf %213, %100 : vector<2x32xf32>
    %215 = arith.addf %211, %214 : vector<2x32xf32>
    %216 = vector.extract_strided_slice %202 {offsets = [0, 3], sizes = [2, 1], strides = [1, 1]} : vector<2x5xf32> to vector<2x1xf32>
    %217 = vector.broadcast %216 : vector<2x1xf32> to vector<2x32xf32>
    %218 = arith.mulf %217, %101 : vector<2x32xf32>
    %219 = arith.addf %215, %218 : vector<2x32xf32>
    %220 = vector.extract_strided_slice %202 {offsets = [0, 4], sizes = [2, 1], strides = [1, 1]} : vector<2x5xf32> to vector<2x1xf32>
    %221 = vector.broadcast %220 : vector<2x1xf32> to vector<2x32xf32>
    %222 = arith.mulf %221, %160 : vector<2x32xf32>
    %223 = arith.addf %219, %222 : vector<2x32xf32>
    %224 = tpu.reciprocal %204 {approx = true} : vector<2x1xf32> -> vector<2x1xf32>
    %225 = vector.broadcast %224 : vector<2x1xf32> to vector<2x32xf32>
    %226 = arith.mulf %223, %225 : vector<2x32xf32>
    %227 = vector.broadcast %194 : vector<1x32xf32> to vector<2x32xf32>
    %228 = arith.addf %227, %226 : vector<2x32xf32>
    %cst_65 = arith.constant dense<0.000000e+00> : vector<2xf32>
    %229 = vector.multi_reduction <add>, %228, %cst_65 [1] : vector<2x32xf32> to vector<2xf32>
    %230 = vector.shape_cast %229 : vector<2xf32> to vector<2x1xf32>
    %cst_66 = arith.constant 3.200000e+01 : f32
    %231 = vector.broadcast %cst_66 : f32 to vector<2x1xf32>
    %232 = arith.divf %230, %231 : vector<2x1xf32>
    %233 = vector.broadcast %232 : vector<2x1xf32> to vector<2x32xf32>
    %234 = arith.subf %228, %233 : vector<2x32xf32>
    %235 = arith.mulf %234, %234 : vector<2x32xf32>
    %cst_67 = arith.constant dense<0.000000e+00> : vector<2xf32>
    %236 = vector.multi_reduction <add>, %235, %cst_67 [1] : vector<2x32xf32> to vector<2xf32>
    %237 = vector.shape_cast %236 : vector<2xf32> to vector<2x1xf32>
    %cst_68 = arith.constant 3.200000e+01 : f32
    %238 = vector.broadcast %cst_68 : f32 to vector<2x1xf32>
    %239 = arith.divf %237, %238 : vector<2x1xf32>
    %240 = vector.broadcast %232 : vector<2x1xf32> to vector<2x32xf32>
    %241 = arith.subf %228, %240 : vector<2x32xf32>
    %cst_69 = arith.constant 9.99999974E-6 : f32
    %242 = vector.broadcast %cst_69 : f32 to vector<2x1xf32>
    %243 = arith.addf %239, %242 : vector<2x1xf32>
    %244 = math.rsqrt %243 : vector<2x1xf32>
    %245 = vector.broadcast %244 : vector<2x1xf32> to vector<2x32xf32>
    %246 = arith.mulf %241, %245 : vector<2x32xf32>
    %247 = tpu.concatenate %246, %228 in 1 : vector<2x32xf32>, vector<2x32xf32> -> vector<2x64xf32>
    %248 = arith.truncf %247 : vector<2x64xf32> to vector<2x64xbf16>
    %c0_70 = arith.constant 0 : index
    %c0_71 = arith.constant 0 : index
    %249 = vector.load %arg7[%c0_70, %c0_71] : memref<64x256xbf16, #tpu.memory_space<vmem>>, vector<64x128xbf16>
    %cst_72 = arith.constant dense<0.000000e+00> : vector<2x128xf32>
    %250 = tpu.matmul %248, %249, %cst_72 {dimension_numbers = #tpu.dot_dimension_numbers<[1], [0], [0], [1], [0, 0, 1, 1], [], []>} : vector<2x64xbf16>, vector<64x128xbf16>, vector<2x128xf32> -> vector<2x128xf32>
    %c3_73 = arith.constant 3 : index
    %c0_74 = arith.constant 0 : index
    %251 = vector.load %arg10[%c3_73, %c0_74] : memref<15x512xf32, #tpu.memory_space<vmem>>, vector<1x128xf32>
    %252 = vector.broadcast %251 : vector<1x128xf32> to vector<2x128xf32>
    %253 = arith.addf %250, %252 : vector<2x128xf32>
    %254 = vector.extract_strided_slice %253 {offsets = [0, 0], sizes = [2, 32], strides = [1, 1]} : vector<2x128xf32> to vector<2x32xf32>
    %255 = vector.extract_strided_slice %253 {offsets = [0, 96], sizes = [2, 4], strides = [1, 1]} : vector<2x128xf32> to vector<2x4xf32>
    %256 = vector.extract_strided_slice %253 {offsets = [0, 32], sizes = [2, 64], strides = [1, 1]} : vector<2x128xf32> to vector<2x64xf32>
    %cst_75 = arith.constant 0.000000e+00 : f32
    %257 = vector.broadcast %cst_75 : f32 to vector<2x64xf32>
    %258 = arith.maximumf %256, %257 : vector<2x64xf32>
    %259 = arith.truncf %258 : vector<2x64xf32> to vector<2x64xbf16>
    %c0_76 = arith.constant 0 : index
    %c128_77 = arith.constant 128 : index
    %260 = vector.load %arg7[%c0_76, %c128_77] : memref<64x256xbf16, #tpu.memory_space<vmem>>, vector<64x128xbf16>
    %cst_78 = arith.constant dense<0.000000e+00> : vector<2x128xf32>
    %261 = tpu.matmul %259, %260, %cst_78 {dimension_numbers = #tpu.dot_dimension_numbers<[1], [0], [0], [1], [0, 0, 1, 1], [], []>} : vector<2x64xbf16>, vector<64x128xbf16>, vector<2x128xf32> -> vector<2x128xf32>
    %262 = vector.extract_strided_slice %261 {offsets = [0, 0], sizes = [2, 32], strides = [1, 1]} : vector<2x128xf32> to vector<2x32xf32>
    %c4_79 = arith.constant 4 : index
    %c0_80 = arith.constant 0 : index
    %263 = vector.load %arg10[%c4_79, %c0_80] : memref<15x512xf32, #tpu.memory_space<vmem>>, vector<1x32xf32>
    %264 = vector.broadcast %263 : vector<1x32xf32> to vector<2x32xf32>
    %265 = arith.addf %262, %264 : vector<2x32xf32>
    %cst_81 = arith.constant dense<0.000000e+00> : vector<2x64xf32>
    %266 = tpu.matmul %265, %104, %cst_81 {dimension_numbers = #tpu.dot_dimension_numbers<[1], [0], [0], [1], [0, 0, 1, 1], [], []>} : vector<2x32xf32>, vector<32x64xf32>, vector<2x64xf32> -> vector<2x64xf32>
    %cst_82 = arith.constant dense<0xFF800000> : vector<2xf32>
    %267 = vector.multi_reduction <maximumf>, %266, %cst_82 [1] : vector<2x64xf32> to vector<2xf32>
    %268 = vector.shape_cast %267 : vector<2xf32> to vector<2x1xf32>
    %269 = vector.broadcast %268 : vector<2x1xf32> to vector<2x64xf32>
    %270 = arith.subf %266, %269 : vector<2x64xf32>
    %271 = math.exp %270 : vector<2x64xf32>
    %cst_83 = arith.constant dense<0.000000e+00> : vector<2x64xf32>
    %272 = tpu.matmul %271, %102, %cst_83 {dimension_numbers = #tpu.dot_dimension_numbers<[1], [0], [0], [1], [0, 0, 1, 1], [], []>} : vector<2x64xf32>, vector<64x64xf32>, vector<2x64xf32> -> vector<2x64xf32>
    %c0_84 = arith.constant 0 : index
    %c1_85 = arith.constant 1 : index
    %273 = vector.load %arg2[%c0_84, %c1_85] : memref<2x4xf32, #tpu.memory_space<vmem>>, vector<2x1xf32>
    %274 = vector.extract_strided_slice %272 {offsets = [0, 63], sizes = [2, 1], strides = [1, 1]} : vector<2x64xf32> to vector<2x1xf32>
    %275 = arith.mulf %273, %274 : vector<2x1xf32>
    %276 = vector.broadcast %275 : vector<2x1xf32> to vector<2x64xf32>
    %277 = arith.cmpf olt, %272, %276 : vector<2x64xf32>
    %278 = arith.extui %277 : vector<2x64xi1> to vector<2x64xi32>
    %cst_86 = arith.constant dense<0> : vector<2xi32>
    %279 = vector.multi_reduction <add>, %278, %cst_86 [1] : vector<2x64xi32> to vector<2xi32>
    %280 = vector.shape_cast %279 : vector<2xi32> to vector<2x1xi32>
    %c63_i32_87 = arith.constant 63 : i32
    %281 = vector.broadcast %c63_i32_87 : i32 to vector<2x1xi32>
    %282 = arith.minsi %280, %281 : vector<2x1xi32>
    %283 = vector.broadcast %282 : vector<2x1xi32> to vector<2x64xi32>
    %284 = arith.cmpi eq, %105, %283 : vector<2x64xi32>
    %285 = arith.extui %284 : vector<2x64xi1> to vector<2x64xi32>
    %286 = arith.sitofp %285 : vector<2x64xi32> to vector<2x64xf32>
    %cst_88 = arith.constant dense<0.000000e+00> : vector<2x32xf32>
    %287 = tpu.matmul %286, %103, %cst_88 {dimension_numbers = #tpu.dot_dimension_numbers<[1], [0], [0], [1], [0, 0, 1, 1], [], []>} : vector<2x64xf32>, vector<64x32xf32>, vector<2x32xf32> -> vector<2x32xf32>
    %c13 = arith.constant 13 : index
    %c0_89 = arith.constant 0 : index
    %288 = vector.load %arg10[%c13, %c0_89] : memref<15x512xf32, #tpu.memory_space<vmem>>, vector<1x32xf32>
    %289 = vector.extract_strided_slice %97 {offsets = [0, 136], sizes = [2, 4], strides = [1, 1]} : vector<2x256xf32> to vector<2x4xf32>
    %290 = vector.extract_strided_slice %161 {offsets = [0, 2], sizes = [2, 1], strides = [1, 1]} : vector<2x4xf32> to vector<2x1xf32>
    %291 = vector.extract_strided_slice %255 {offsets = [0, 2], sizes = [2, 1], strides = [1, 1]} : vector<2x4xf32> to vector<2x1xf32>
    %292 = tpu.concatenate %289, %290, %291 in 1 : vector<2x4xf32>, vector<2x1xf32>, vector<2x1xf32> -> vector<2x6xf32>
    %cst_90 = arith.constant dense<0xFF800000> : vector<2xf32>
    %293 = vector.multi_reduction <maximumf>, %292, %cst_90 [1] : vector<2x6xf32> to vector<2xf32>
    %294 = vector.shape_cast %293 : vector<2xf32> to vector<2x1xf32>
    %295 = vector.broadcast %294 : vector<2x1xf32> to vector<2x6xf32>
    %296 = arith.subf %292, %295 : vector<2x6xf32>
    %297 = math.exp %296 : vector<2x6xf32>
    %cst_91 = arith.constant dense<0.000000e+00> : vector<2xf32>
    %298 = vector.multi_reduction <add>, %297, %cst_91 [1] : vector<2x6xf32> to vector<2xf32>
    %299 = vector.shape_cast %298 : vector<2xf32> to vector<2x1xf32>
    %300 = vector.extract_strided_slice %297 {offsets = [0, 0], sizes = [2, 1], strides = [1, 1]} : vector<2x6xf32> to vector<2x1xf32>
    %301 = vector.broadcast %300 : vector<2x1xf32> to vector<2x32xf32>
    %302 = arith.mulf %301, %98 : vector<2x32xf32>
    %303 = vector.extract_strided_slice %297 {offsets = [0, 1], sizes = [2, 1], strides = [1, 1]} : vector<2x6xf32> to vector<2x1xf32>
    %304 = vector.broadcast %303 : vector<2x1xf32> to vector<2x32xf32>
    %305 = arith.mulf %304, %99 : vector<2x32xf32>
    %306 = arith.addf %302, %305 : vector<2x32xf32>
    %307 = vector.extract_strided_slice %297 {offsets = [0, 2], sizes = [2, 1], strides = [1, 1]} : vector<2x6xf32> to vector<2x1xf32>
    %308 = vector.broadcast %307 : vector<2x1xf32> to vector<2x32xf32>
    %309 = arith.mulf %308, %100 : vector<2x32xf32>
    %310 = arith.addf %306, %309 : vector<2x32xf32>
    %311 = vector.extract_strided_slice %297 {offsets = [0, 3], sizes = [2, 1], strides = [1, 1]} : vector<2x6xf32> to vector<2x1xf32>
    %312 = vector.broadcast %311 : vector<2x1xf32> to vector<2x32xf32>
    %313 = arith.mulf %312, %101 : vector<2x32xf32>
    %314 = arith.addf %310, %313 : vector<2x32xf32>
    %315 = vector.extract_strided_slice %297 {offsets = [0, 4], sizes = [2, 1], strides = [1, 1]} : vector<2x6xf32> to vector<2x1xf32>
    %316 = vector.broadcast %315 : vector<2x1xf32> to vector<2x32xf32>
    %317 = arith.mulf %316, %160 : vector<2x32xf32>
    %318 = arith.addf %314, %317 : vector<2x32xf32>
    %319 = vector.extract_strided_slice %297 {offsets = [0, 5], sizes = [2, 1], strides = [1, 1]} : vector<2x6xf32> to vector<2x1xf32>
    %320 = vector.broadcast %319 : vector<2x1xf32> to vector<2x32xf32>
    %321 = arith.mulf %320, %254 : vector<2x32xf32>
    %322 = arith.addf %318, %321 : vector<2x32xf32>
    %323 = tpu.reciprocal %299 {approx = true} : vector<2x1xf32> -> vector<2x1xf32>
    %324 = vector.broadcast %323 : vector<2x1xf32> to vector<2x32xf32>
    %325 = arith.mulf %322, %324 : vector<2x32xf32>
    %326 = vector.broadcast %288 : vector<1x32xf32> to vector<2x32xf32>
    %327 = arith.addf %326, %325 : vector<2x32xf32>
    %cst_92 = arith.constant dense<0.000000e+00> : vector<2xf32>
    %328 = vector.multi_reduction <add>, %327, %cst_92 [1] : vector<2x32xf32> to vector<2xf32>
    %329 = vector.shape_cast %328 : vector<2xf32> to vector<2x1xf32>
    %cst_93 = arith.constant 3.200000e+01 : f32
    %330 = vector.broadcast %cst_93 : f32 to vector<2x1xf32>
    %331 = arith.divf %329, %330 : vector<2x1xf32>
    %332 = vector.broadcast %331 : vector<2x1xf32> to vector<2x32xf32>
    %333 = arith.subf %327, %332 : vector<2x32xf32>
    %334 = arith.mulf %333, %333 : vector<2x32xf32>
    %cst_94 = arith.constant dense<0.000000e+00> : vector<2xf32>
    %335 = vector.multi_reduction <add>, %334, %cst_94 [1] : vector<2x32xf32> to vector<2xf32>
    %336 = vector.shape_cast %335 : vector<2xf32> to vector<2x1xf32>
    %cst_95 = arith.constant 3.200000e+01 : f32
    %337 = vector.broadcast %cst_95 : f32 to vector<2x1xf32>
    %338 = arith.divf %336, %337 : vector<2x1xf32>
    %339 = vector.broadcast %331 : vector<2x1xf32> to vector<2x32xf32>
    %340 = arith.subf %327, %339 : vector<2x32xf32>
    %cst_96 = arith.constant 9.99999974E-6 : f32
    %341 = vector.broadcast %cst_96 : f32 to vector<2x1xf32>
    %342 = arith.addf %338, %341 : vector<2x1xf32>
    %343 = math.rsqrt %342 : vector<2x1xf32>
    %344 = vector.broadcast %343 : vector<2x1xf32> to vector<2x32xf32>
    %345 = arith.mulf %340, %344 : vector<2x32xf32>
    %346 = tpu.concatenate %345, %327 in 1 : vector<2x32xf32>, vector<2x32xf32> -> vector<2x64xf32>
    %347 = arith.truncf %346 : vector<2x64xf32> to vector<2x64xbf16>
    %c0_97 = arith.constant 0 : index
    %c0_98 = arith.constant 0 : index
    %348 = vector.load %arg7[%c0_97, %c0_98] : memref<64x256xbf16, #tpu.memory_space<vmem>>, vector<64x128xbf16>
    %cst_99 = arith.constant dense<0.000000e+00> : vector<2x128xf32>
    %349 = tpu.matmul %347, %348, %cst_99 {dimension_numbers = #tpu.dot_dimension_numbers<[1], [0], [0], [1], [0, 0, 1, 1], [], []>} : vector<2x64xbf16>, vector<64x128xbf16>, vector<2x128xf32> -> vector<2x128xf32>
    %c3_100 = arith.constant 3 : index
    %c0_101 = arith.constant 0 : index
    %350 = vector.load %arg10[%c3_100, %c0_101] : memref<15x512xf32, #tpu.memory_space<vmem>>, vector<1x128xf32>
    %351 = vector.broadcast %350 : vector<1x128xf32> to vector<2x128xf32>
    %352 = arith.addf %349, %351 : vector<2x128xf32>
    %353 = vector.extract_strided_slice %352 {offsets = [0, 0], sizes = [2, 32], strides = [1, 1]} : vector<2x128xf32> to vector<2x32xf32>
    %354 = vector.extract_strided_slice %352 {offsets = [0, 96], sizes = [2, 4], strides = [1, 1]} : vector<2x128xf32> to vector<2x4xf32>
    %355 = vector.extract_strided_slice %352 {offsets = [0, 32], sizes = [2, 64], strides = [1, 1]} : vector<2x128xf32> to vector<2x64xf32>
    %cst_102 = arith.constant 0.000000e+00 : f32
    %356 = vector.broadcast %cst_102 : f32 to vector<2x64xf32>
    %357 = arith.maximumf %355, %356 : vector<2x64xf32>
    %358 = arith.truncf %357 : vector<2x64xf32> to vector<2x64xbf16>
    %c0_103 = arith.constant 0 : index
    %c128_104 = arith.constant 128 : index
    %359 = vector.load %arg7[%c0_103, %c128_104] : memref<64x256xbf16, #tpu.memory_space<vmem>>, vector<64x128xbf16>
    %cst_105 = arith.constant dense<0.000000e+00> : vector<2x128xf32>
    %360 = tpu.matmul %358, %359, %cst_105 {dimension_numbers = #tpu.dot_dimension_numbers<[1], [0], [0], [1], [0, 0, 1, 1], [], []>} : vector<2x64xbf16>, vector<64x128xbf16>, vector<2x128xf32> -> vector<2x128xf32>
    %361 = vector.extract_strided_slice %360 {offsets = [0, 0], sizes = [2, 32], strides = [1, 1]} : vector<2x128xf32> to vector<2x32xf32>
    %c4_106 = arith.constant 4 : index
    %c0_107 = arith.constant 0 : index
    %362 = vector.load %arg10[%c4_106, %c0_107] : memref<15x512xf32, #tpu.memory_space<vmem>>, vector<1x32xf32>
    %363 = vector.broadcast %362 : vector<1x32xf32> to vector<2x32xf32>
    %364 = arith.addf %361, %363 : vector<2x32xf32>
    %cst_108 = arith.constant dense<0.000000e+00> : vector<2x64xf32>
    %365 = tpu.matmul %364, %104, %cst_108 {dimension_numbers = #tpu.dot_dimension_numbers<[1], [0], [0], [1], [0, 0, 1, 1], [], []>} : vector<2x32xf32>, vector<32x64xf32>, vector<2x64xf32> -> vector<2x64xf32>
    %cst_109 = arith.constant dense<0xFF800000> : vector<2xf32>
    %366 = vector.multi_reduction <maximumf>, %365, %cst_109 [1] : vector<2x64xf32> to vector<2xf32>
    %367 = vector.shape_cast %366 : vector<2xf32> to vector<2x1xf32>
    %368 = vector.broadcast %367 : vector<2x1xf32> to vector<2x64xf32>
    %369 = arith.subf %365, %368 : vector<2x64xf32>
    %370 = math.exp %369 : vector<2x64xf32>
    %cst_110 = arith.constant dense<0.000000e+00> : vector<2x64xf32>
    %371 = tpu.matmul %370, %102, %cst_110 {dimension_numbers = #tpu.dot_dimension_numbers<[1], [0], [0], [1], [0, 0, 1, 1], [], []>} : vector<2x64xf32>, vector<64x64xf32>, vector<2x64xf32> -> vector<2x64xf32>
    %c0_111 = arith.constant 0 : index
    %c2_112 = arith.constant 2 : index
    %372 = vector.load %arg2[%c0_111, %c2_112] : memref<2x4xf32, #tpu.memory_space<vmem>>, vector<2x1xf32>
    %373 = vector.extract_strided_slice %371 {offsets = [0, 63], sizes = [2, 1], strides = [1, 1]} : vector<2x64xf32> to vector<2x1xf32>
    %374 = arith.mulf %372, %373 : vector<2x1xf32>
    %375 = vector.broadcast %374 : vector<2x1xf32> to vector<2x64xf32>
    %376 = arith.cmpf olt, %371, %375 : vector<2x64xf32>
    %377 = arith.extui %376 : vector<2x64xi1> to vector<2x64xi32>
    %cst_113 = arith.constant dense<0> : vector<2xi32>
    %378 = vector.multi_reduction <add>, %377, %cst_113 [1] : vector<2x64xi32> to vector<2xi32>
    %379 = vector.shape_cast %378 : vector<2xi32> to vector<2x1xi32>
    %c63_i32_114 = arith.constant 63 : i32
    %380 = vector.broadcast %c63_i32_114 : i32 to vector<2x1xi32>
    %381 = arith.minsi %379, %380 : vector<2x1xi32>
    %382 = vector.broadcast %381 : vector<2x1xi32> to vector<2x64xi32>
    %383 = arith.cmpi eq, %105, %382 : vector<2x64xi32>
    %384 = arith.extui %383 : vector<2x64xi1> to vector<2x64xi32>
    %385 = arith.sitofp %384 : vector<2x64xi32> to vector<2x64xf32>
    %cst_115 = arith.constant dense<0.000000e+00> : vector<2x32xf32>
    %386 = tpu.matmul %385, %103, %cst_115 {dimension_numbers = #tpu.dot_dimension_numbers<[1], [0], [0], [1], [0, 0, 1, 1], [], []>} : vector<2x64xf32>, vector<64x32xf32>, vector<2x32xf32> -> vector<2x32xf32>
    %c14 = arith.constant 14 : index
    %c0_116 = arith.constant 0 : index
    %387 = vector.load %arg10[%c14, %c0_116] : memref<15x512xf32, #tpu.memory_space<vmem>>, vector<1x32xf32>
    %388 = vector.extract_strided_slice %97 {offsets = [0, 140], sizes = [2, 4], strides = [1, 1]} : vector<2x256xf32> to vector<2x4xf32>
    %389 = vector.extract_strided_slice %161 {offsets = [0, 3], sizes = [2, 1], strides = [1, 1]} : vector<2x4xf32> to vector<2x1xf32>
    %390 = vector.extract_strided_slice %255 {offsets = [0, 3], sizes = [2, 1], strides = [1, 1]} : vector<2x4xf32> to vector<2x1xf32>
    %391 = vector.extract_strided_slice %354 {offsets = [0, 3], sizes = [2, 1], strides = [1, 1]} : vector<2x4xf32> to vector<2x1xf32>
    %392 = tpu.concatenate %388, %389, %390, %391 in 1 : vector<2x4xf32>, vector<2x1xf32>, vector<2x1xf32>, vector<2x1xf32> -> vector<2x7xf32>
    %cst_117 = arith.constant dense<0xFF800000> : vector<2xf32>
    %393 = vector.multi_reduction <maximumf>, %392, %cst_117 [1] : vector<2x7xf32> to vector<2xf32>
    %394 = vector.shape_cast %393 : vector<2xf32> to vector<2x1xf32>
    %395 = vector.broadcast %394 : vector<2x1xf32> to vector<2x7xf32>
    %396 = arith.subf %392, %395 : vector<2x7xf32>
    %397 = math.exp %396 : vector<2x7xf32>
    %cst_118 = arith.constant dense<0.000000e+00> : vector<2xf32>
    %398 = vector.multi_reduction <add>, %397, %cst_118 [1] : vector<2x7xf32> to vector<2xf32>
    %399 = vector.shape_cast %398 : vector<2xf32> to vector<2x1xf32>
    %400 = vector.extract_strided_slice %397 {offsets = [0, 0], sizes = [2, 1], strides = [1, 1]} : vector<2x7xf32> to vector<2x1xf32>
    %401 = vector.broadcast %400 : vector<2x1xf32> to vector<2x32xf32>
    %402 = arith.mulf %401, %98 : vector<2x32xf32>
    %403 = vector.extract_strided_slice %397 {offsets = [0, 1], sizes = [2, 1], strides = [1, 1]} : vector<2x7xf32> to vector<2x1xf32>
    %404 = vector.broadcast %403 : vector<2x1xf32> to vector<2x32xf32>
    %405 = arith.mulf %404, %99 : vector<2x32xf32>
    %406 = arith.addf %402, %405 : vector<2x32xf32>
    %407 = vector.extract_strided_slice %397 {offsets = [0, 2], sizes = [2, 1], strides = [1, 1]} : vector<2x7xf32> to vector<2x1xf32>
    %408 = vector.broadcast %407 : vector<2x1xf32> to vector<2x32xf32>
    %409 = arith.mulf %408, %100 : vector<2x32xf32>
    %410 = arith.addf %406, %409 : vector<2x32xf32>
    %411 = vector.extract_strided_slice %397 {offsets = [0, 3], sizes = [2, 1], strides = [1, 1]} : vector<2x7xf32> to vector<2x1xf32>
    %412 = vector.broadcast %411 : vector<2x1xf32> to vector<2x32xf32>
    %413 = arith.mulf %412, %101 : vector<2x32xf32>
    %414 = arith.addf %410, %413 : vector<2x32xf32>
    %415 = vector.extract_strided_slice %397 {offsets = [0, 4], sizes = [2, 1], strides = [1, 1]} : vector<2x7xf32> to vector<2x1xf32>
    %416 = vector.broadcast %415 : vector<2x1xf32> to vector<2x32xf32>
    %417 = arith.mulf %416, %160 : vector<2x32xf32>
    %418 = arith.addf %414, %417 : vector<2x32xf32>
    %419 = vector.extract_strided_slice %397 {offsets = [0, 5], sizes = [2, 1], strides = [1, 1]} : vector<2x7xf32> to vector<2x1xf32>
    %420 = vector.broadcast %419 : vector<2x1xf32> to vector<2x32xf32>
    %421 = arith.mulf %420, %254 : vector<2x32xf32>
    %422 = arith.addf %418, %421 : vector<2x32xf32>
    %423 = vector.extract_strided_slice %397 {offsets = [0, 6], sizes = [2, 1], strides = [1, 1]} : vector<2x7xf32> to vector<2x1xf32>
    %424 = vector.broadcast %423 : vector<2x1xf32> to vector<2x32xf32>
    %425 = arith.mulf %424, %353 : vector<2x32xf32>
    %426 = arith.addf %422, %425 : vector<2x32xf32>
    %427 = tpu.reciprocal %399 {approx = true} : vector<2x1xf32> -> vector<2x1xf32>
    %428 = vector.broadcast %427 : vector<2x1xf32> to vector<2x32xf32>
    %429 = arith.mulf %426, %428 : vector<2x32xf32>
    %430 = vector.broadcast %387 : vector<1x32xf32> to vector<2x32xf32>
    %431 = arith.addf %430, %429 : vector<2x32xf32>
    %cst_119 = arith.constant dense<0.000000e+00> : vector<2xf32>
    %432 = vector.multi_reduction <add>, %431, %cst_119 [1] : vector<2x32xf32> to vector<2xf32>
    %433 = vector.shape_cast %432 : vector<2xf32> to vector<2x1xf32>
    %cst_120 = arith.constant 3.200000e+01 : f32
    %434 = vector.broadcast %cst_120 : f32 to vector<2x1xf32>
    %435 = arith.divf %433, %434 : vector<2x1xf32>
    %436 = vector.broadcast %435 : vector<2x1xf32> to vector<2x32xf32>
    %437 = arith.subf %431, %436 : vector<2x32xf32>
    %438 = arith.mulf %437, %437 : vector<2x32xf32>
    %cst_121 = arith.constant dense<0.000000e+00> : vector<2xf32>
    %439 = vector.multi_reduction <add>, %438, %cst_121 [1] : vector<2x32xf32> to vector<2xf32>
    %440 = vector.shape_cast %439 : vector<2xf32> to vector<2x1xf32>
    %cst_122 = arith.constant 3.200000e+01 : f32
    %441 = vector.broadcast %cst_122 : f32 to vector<2x1xf32>
    %442 = arith.divf %440, %441 : vector<2x1xf32>
    %443 = vector.broadcast %435 : vector<2x1xf32> to vector<2x32xf32>
    %444 = arith.subf %431, %443 : vector<2x32xf32>
    %cst_123 = arith.constant 9.99999974E-6 : f32
    %445 = vector.broadcast %cst_123 : f32 to vector<2x1xf32>
    %446 = arith.addf %442, %445 : vector<2x1xf32>
    %447 = math.rsqrt %446 : vector<2x1xf32>
    %448 = vector.broadcast %447 : vector<2x1xf32> to vector<2x32xf32>
    %449 = arith.mulf %444, %448 : vector<2x32xf32>
    %450 = tpu.concatenate %449, %431 in 1 : vector<2x32xf32>, vector<2x32xf32> -> vector<2x64xf32>
    %451 = arith.truncf %450 : vector<2x64xf32> to vector<2x64xbf16>
    %c0_124 = arith.constant 0 : index
    %c0_125 = arith.constant 0 : index
    %452 = vector.load %arg7[%c0_124, %c0_125] : memref<64x256xbf16, #tpu.memory_space<vmem>>, vector<64x128xbf16>
    %cst_126 = arith.constant dense<0.000000e+00> : vector<2x128xf32>
    %453 = tpu.matmul %451, %452, %cst_126 {dimension_numbers = #tpu.dot_dimension_numbers<[1], [0], [0], [1], [0, 0, 1, 1], [], []>} : vector<2x64xbf16>, vector<64x128xbf16>, vector<2x128xf32> -> vector<2x128xf32>
    %c3_127 = arith.constant 3 : index
    %c0_128 = arith.constant 0 : index
    %454 = vector.load %arg10[%c3_127, %c0_128] : memref<15x512xf32, #tpu.memory_space<vmem>>, vector<1x128xf32>
    %455 = vector.broadcast %454 : vector<1x128xf32> to vector<2x128xf32>
    %456 = arith.addf %453, %455 : vector<2x128xf32>
    %457 = vector.extract_strided_slice %456 {offsets = [0, 32], sizes = [2, 64], strides = [1, 1]} : vector<2x128xf32> to vector<2x64xf32>
    %cst_129 = arith.constant 0.000000e+00 : f32
    %458 = vector.broadcast %cst_129 : f32 to vector<2x64xf32>
    %459 = arith.maximumf %457, %458 : vector<2x64xf32>
    %460 = arith.truncf %459 : vector<2x64xf32> to vector<2x64xbf16>
    %c0_130 = arith.constant 0 : index
    %c128_131 = arith.constant 128 : index
    %461 = vector.load %arg7[%c0_130, %c128_131] : memref<64x256xbf16, #tpu.memory_space<vmem>>, vector<64x128xbf16>
    %cst_132 = arith.constant dense<0.000000e+00> : vector<2x128xf32>
    %462 = tpu.matmul %460, %461, %cst_132 {dimension_numbers = #tpu.dot_dimension_numbers<[1], [0], [0], [1], [0, 0, 1, 1], [], []>} : vector<2x64xbf16>, vector<64x128xbf16>, vector<2x128xf32> -> vector<2x128xf32>
    %463 = vector.extract_strided_slice %462 {offsets = [0, 0], sizes = [2, 32], strides = [1, 1]} : vector<2x128xf32> to vector<2x32xf32>
    %c4_133 = arith.constant 4 : index
    %c0_134 = arith.constant 0 : index
    %464 = vector.load %arg10[%c4_133, %c0_134] : memref<15x512xf32, #tpu.memory_space<vmem>>, vector<1x32xf32>
    %465 = vector.broadcast %464 : vector<1x32xf32> to vector<2x32xf32>
    %466 = arith.addf %463, %465 : vector<2x32xf32>
    %cst_135 = arith.constant dense<0.000000e+00> : vector<2x64xf32>
    %467 = tpu.matmul %466, %104, %cst_135 {dimension_numbers = #tpu.dot_dimension_numbers<[1], [0], [0], [1], [0, 0, 1, 1], [], []>} : vector<2x32xf32>, vector<32x64xf32>, vector<2x64xf32> -> vector<2x64xf32>
    %cst_136 = arith.constant dense<0xFF800000> : vector<2xf32>
    %468 = vector.multi_reduction <maximumf>, %467, %cst_136 [1] : vector<2x64xf32> to vector<2xf32>
    %469 = vector.shape_cast %468 : vector<2xf32> to vector<2x1xf32>
    %470 = vector.broadcast %469 : vector<2x1xf32> to vector<2x64xf32>
    %471 = arith.subf %467, %470 : vector<2x64xf32>
    %472 = math.exp %471 : vector<2x64xf32>
    %cst_137 = arith.constant dense<0.000000e+00> : vector<2x64xf32>
    %473 = tpu.matmul %472, %102, %cst_137 {dimension_numbers = #tpu.dot_dimension_numbers<[1], [0], [0], [1], [0, 0, 1, 1], [], []>} : vector<2x64xf32>, vector<64x64xf32>, vector<2x64xf32> -> vector<2x64xf32>
    %c0_138 = arith.constant 0 : index
    %c3_139 = arith.constant 3 : index
    %474 = vector.load %arg2[%c0_138, %c3_139] : memref<2x4xf32, #tpu.memory_space<vmem>>, vector<2x1xf32>
    %475 = vector.extract_strided_slice %473 {offsets = [0, 63], sizes = [2, 1], strides = [1, 1]} : vector<2x64xf32> to vector<2x1xf32>
    %476 = arith.mulf %474, %475 : vector<2x1xf32>
    %477 = vector.broadcast %476 : vector<2x1xf32> to vector<2x64xf32>
    %478 = arith.cmpf olt, %473, %477 : vector<2x64xf32>
    %479 = arith.extui %478 : vector<2x64xi1> to vector<2x64xi32>
    %cst_140 = arith.constant dense<0> : vector<2xi32>
    %480 = vector.multi_reduction <add>, %479, %cst_140 [1] : vector<2x64xi32> to vector<2xi32>
    %481 = vector.shape_cast %480 : vector<2xi32> to vector<2x1xi32>
    %c63_i32_141 = arith.constant 63 : i32
    %482 = vector.broadcast %c63_i32_141 : i32 to vector<2x1xi32>
    %483 = arith.minsi %481, %482 : vector<2x1xi32>
    %484 = vector.broadcast %483 : vector<2x1xi32> to vector<2x64xi32>
    %485 = arith.cmpi eq, %105, %484 : vector<2x64xi32>
    %486 = arith.extui %485 : vector<2x64xi1> to vector<2x64xi32>
    %487 = arith.sitofp %486 : vector<2x64xi32> to vector<2x64xf32>
    %cst_142 = arith.constant dense<0.000000e+00> : vector<2x32xf32>
    %488 = tpu.matmul %487, %103, %cst_142 {dimension_numbers = #tpu.dot_dimension_numbers<[1], [0], [0], [1], [0, 0, 1, 1], [], []>} : vector<2x64xf32>, vector<64x32xf32>, vector<2x32xf32> -> vector<2x32xf32>
    %489 = tpu.concatenate %193, %287, %386, %488 in 1 : vector<2x32xf32>, vector<2x32xf32>, vector<2x32xf32>, vector<2x32xf32> -> vector<2x128xf32>
    %490 = arith.truncf %489 : vector<2x128xf32> to vector<2x128xbf16>
    %c0_143 = arith.constant 0 : index
    %c256 = arith.constant 256 : index
    %491 = vector.load %arg5[%c0_143, %c256] : memref<128x1024xbf16, #tpu.memory_space<vmem>>, vector<128x256xbf16>
    %cst_144 = arith.constant dense<0.000000e+00> : vector<2x256xf32>
    %492 = tpu.matmul %490, %491, %cst_144 {dimension_numbers = #tpu.dot_dimension_numbers<[1], [0], [0], [1], [0, 0, 1, 1], [], []>} : vector<2x128xbf16>, vector<128x256xbf16>, vector<2x256xf32> -> vector<2x256xf32>
    %c5 = arith.constant 5 : index
    %c0_145 = arith.constant 0 : index
    %493 = vector.load %arg10[%c5, %c0_145] : memref<15x512xf32, #tpu.memory_space<vmem>>, vector<1x256xf32>
    %494 = vector.broadcast %493 : vector<1x256xf32> to vector<2x256xf32>
    %495 = arith.addf %492, %494 : vector<2x256xf32>
    %cst_146 = arith.constant 0.000000e+00 : f32
    %496 = vector.broadcast %cst_146 : f32 to vector<2x256xf32>
    %497 = arith.maximumf %495, %496 : vector<2x256xf32>
    %498 = arith.truncf %497 : vector<2x256xf32> to vector<2x256xbf16>
    %c0_147 = arith.constant 0 : index
    %c0_148 = arith.constant 0 : index
    %499 = vector.load %arg6[%c0_147, %c0_148] : memref<256x384xbf16, #tpu.memory_space<vmem>>, vector<256x128xbf16>
    %cst_149 = arith.constant dense<0.000000e+00> : vector<2x128xf32>
    %500 = tpu.matmul %498, %499, %cst_149 {dimension_numbers = #tpu.dot_dimension_numbers<[1], [0], [0], [1], [0, 0, 1, 1], [], []>} : vector<2x256xbf16>, vector<256x128xbf16>, vector<2x128xf32> -> vector<2x128xf32>
    %c6 = arith.constant 6 : index
    %c0_150 = arith.constant 0 : index
    %501 = vector.load %arg10[%c6, %c0_150] : memref<15x512xf32, #tpu.memory_space<vmem>>, vector<1x128xf32>
    %502 = vector.broadcast %501 : vector<1x128xf32> to vector<2x128xf32>
    %503 = arith.addf %500, %502 : vector<2x128xf32>
    %504 = arith.truncf %503 : vector<2x128xf32> to vector<2x128xbf16>
    %c0_151 = arith.constant 0 : index
    %c512 = arith.constant 512 : index
    %505 = vector.load %arg5[%c0_151, %c512] : memref<128x1024xbf16, #tpu.memory_space<vmem>>, vector<128x256xbf16>
    %cst_152 = arith.constant dense<0.000000e+00> : vector<2x256xf32>
    %506 = tpu.matmul %504, %505, %cst_152 {dimension_numbers = #tpu.dot_dimension_numbers<[1], [0], [0], [1], [0, 0, 1, 1], [], []>} : vector<2x128xbf16>, vector<128x256xbf16>, vector<2x256xf32> -> vector<2x256xf32>
    %c7 = arith.constant 7 : index
    %c0_153 = arith.constant 0 : index
    %507 = vector.load %arg10[%c7, %c0_153] : memref<15x512xf32, #tpu.memory_space<vmem>>, vector<1x256xf32>
    %508 = vector.broadcast %507 : vector<1x256xf32> to vector<2x256xf32>
    %509 = arith.addf %506, %508 : vector<2x256xf32>
    %cst_154 = arith.constant 0.000000e+00 : f32
    %510 = vector.broadcast %cst_154 : f32 to vector<2x256xf32>
    %511 = arith.maximumf %509, %510 : vector<2x256xf32>
    %512 = arith.truncf %511 : vector<2x256xf32> to vector<2x256xbf16>
    %c0_155 = arith.constant 0 : index
    %c128_156 = arith.constant 128 : index
    %513 = vector.load %arg6[%c0_155, %c128_156] : memref<256x384xbf16, #tpu.memory_space<vmem>>, vector<256x128xbf16>
    %cst_157 = arith.constant dense<0.000000e+00> : vector<2x128xf32>
    %514 = tpu.matmul %512, %513, %cst_157 {dimension_numbers = #tpu.dot_dimension_numbers<[1], [0], [0], [1], [0, 0, 1, 1], [], []>} : vector<2x256xbf16>, vector<256x128xbf16>, vector<2x128xf32> -> vector<2x128xf32>
    %c8 = arith.constant 8 : index
    %c0_158 = arith.constant 0 : index
    %515 = vector.load %arg10[%c8, %c0_158] : memref<15x512xf32, #tpu.memory_space<vmem>>, vector<1x128xf32>
    %516 = vector.broadcast %515 : vector<1x128xf32> to vector<2x128xf32>
    %517 = arith.addf %514, %516 : vector<2x128xf32>
    %518 = arith.truncf %517 : vector<2x128xf32> to vector<2x128xbf16>
    %c0_159 = arith.constant 0 : index
    %c768 = arith.constant 768 : index
    %519 = vector.load %arg5[%c0_159, %c768] : memref<128x1024xbf16, #tpu.memory_space<vmem>>, vector<128x256xbf16>
    %cst_160 = arith.constant dense<0.000000e+00> : vector<2x256xf32>
    %520 = tpu.matmul %518, %519, %cst_160 {dimension_numbers = #tpu.dot_dimension_numbers<[1], [0], [0], [1], [0, 0, 1, 1], [], []>} : vector<2x128xbf16>, vector<128x256xbf16>, vector<2x256xf32> -> vector<2x256xf32>
    %c9 = arith.constant 9 : index
    %c0_161 = arith.constant 0 : index
    %521 = vector.load %arg10[%c9, %c0_161] : memref<15x512xf32, #tpu.memory_space<vmem>>, vector<1x256xf32>
    %522 = vector.broadcast %521 : vector<1x256xf32> to vector<2x256xf32>
    %523 = arith.addf %520, %522 : vector<2x256xf32>
    %cst_162 = arith.constant 0.000000e+00 : f32
    %524 = vector.broadcast %cst_162 : f32 to vector<2x256xf32>
    %525 = arith.maximumf %523, %524 : vector<2x256xf32>
    %526 = arith.truncf %525 : vector<2x256xf32> to vector<2x256xbf16>
    %c0_163 = arith.constant 0 : index
    %c256_164 = arith.constant 256 : index
    %527 = vector.load %arg6[%c0_163, %c256_164] : memref<256x384xbf16, #tpu.memory_space<vmem>>, vector<256x128xbf16>
    %cst_165 = arith.constant dense<0.000000e+00> : vector<2x128xf32>
    %528 = tpu.matmul %526, %527, %cst_165 {dimension_numbers = #tpu.dot_dimension_numbers<[1], [0], [0], [1], [0, 0, 1, 1], [], []>} : vector<2x256xbf16>, vector<256x128xbf16>, vector<2x128xf32> -> vector<2x128xf32>
    %c10 = arith.constant 10 : index
    %c0_166 = arith.constant 0 : index
    %529 = vector.load %arg10[%c10, %c0_166] : memref<15x512xf32, #tpu.memory_space<vmem>>, vector<1x128xf32>
    %530 = vector.broadcast %529 : vector<1x128xf32> to vector<2x128xf32>
    %531 = arith.addf %528, %530 : vector<2x128xf32>
    %c0_167 = arith.constant 0 : index
    %c0_168 = arith.constant 0 : index
    %532 = vector.load %arg11[%c0_167, %c0_168] : memref<2x128xf32, #tpu.memory_space<vmem>>, vector<2x128xf32>
    tpu.vector_store %arg11[%c0_167, %c0_168], %531 {strides = array<i32>} : memref<2x128xf32, #tpu.memory_space<vmem>>, vector<2x128xf32>,
    return
  }
  func.func @transform_0(%arg0: i32) -> (i32, i32) {
    %c0_i32 = arith.constant 0 : i32
    %c0_i32_0 = arith.constant 0 : i32
    return %arg0, %c0_i32 : i32, i32
  }
  func.func @transform_1(%arg0: i32) -> (i32, i32) {
    %c0_i32 = arith.constant 0 : i32
    %c0_i32_0 = arith.constant 0 : i32
    return %arg0, %c0_i32 : i32, i32
  }
  func.func @transform_2(%arg0: i32) -> (i32, i32) {
    %c0_i32 = arith.constant 0 : i32
    %c0_i32_0 = arith.constant 0 : i32
    %c0_i32_1 = arith.constant 0 : i32
    return %c0_i32, %c0_i32_0 : i32, i32
  }
  func.func @transform_3(%arg0: i32) -> (i32, i32) {
    %c0_i32 = arith.constant 0 : i32
    %c0_i32_0 = arith.constant 0 : i32
    %c0_i32_1 = arith.constant 0 : i32
    return %c0_i32, %c0_i32_0 : i32, i32
  }
  func.func @transform_4(%arg0: i32) -> (i32, i32) {
    %c0_i32 = arith.constant 0 : i32
    %c0_i32_0 = arith.constant 0 : i32
    %c0_i32_1 = arith.constant 0 : i32
    return %c0_i32, %c0_i32_0 : i32, i32
  }
  func.func @transform_5(%arg0: i32) -> (i32, i32) {
    %c0_i32 = arith.constant 0 : i32
    %c0_i32_0 = arith.constant 0 : i32
    %c0_i32_1 = arith.constant 0 : i32
    return %c0_i32, %c0_i32_0 : i32, i32
  }
  func.func @transform_6(%arg0: i32) -> (i32, i32) {
    %c0_i32 = arith.constant 0 : i32
    %c0_i32_0 = arith.constant 0 : i32
    %c0_i32_1 = arith.constant 0 : i32
    return %c0_i32, %c0_i32_0 : i32, i32
  }
  func.func @transform_7(%arg0: i32) -> (i32, i32) {
    %c0_i32 = arith.constant 0 : i32
    %c0_i32_0 = arith.constant 0 : i32
    %c0_i32_1 = arith.constant 0 : i32
    return %c0_i32, %c0_i32_0 : i32, i32
  }
  func.func @transform_8(%arg0: i32) -> (i32, i32) {
    %c0_i32 = arith.constant 0 : i32
    %c0_i32_0 = arith.constant 0 : i32
    %c0_i32_1 = arith.constant 0 : i32
    return %c0_i32, %c0_i32_0 : i32, i32
  }
  func.func @transform_9(%arg0: i32) -> (i32, i32) {
    %c0_i32 = arith.constant 0 : i32
    %c0_i32_0 = arith.constant 0 : i32
    %c0_i32_1 = arith.constant 0 : i32
    return %c0_i32, %c0_i32_0 : i32, i32
  }
  func.func @transform_10(%arg0: i32) -> (i32, i32) {
    %c0_i32 = arith.constant 0 : i32
    %c0_i32_0 = arith.constant 0 : i32
    return %arg0, %c0_i32 : i32, i32
  }
}

</mosaic_0001>

<bundles_post_ra>
// kernel: _forward.1
= control target key start
LH: loop header
LB: loop body
LE: loop exit
PB: predicated region body
PF: predicated region fallthrough
CT: control target
= control target key end

     0   :  { %15 = vsyncpa [#allocation3], 0  ;;  %s5735_s0 = inlined_call_operand.vmem [shape: f32[2,112], index: 0, kind: input, shape index: {}]   ;;  %s5736_s1 = inlined_call_operand.vmem [shape: f32[2,4], index: 1, kind: input, shape index: {}]   ;;  %s5737_s2 = inlined_call_operand.hbm [shape: bf16[112,512], index: 2, kind: input, shape index: {}]   ;;  %s5738_s3 = inlined_call_operand.hbm [shape: bf16[512,128], index: 3, kind: input, shape index: {}]   ;;  %s5739_s4 = inlined_call_operand.hbm [shape: bf16[128,1024], index: 4, kind: input, shape index: {}]   ;;  %s5740_s5 = inlined_call_operand.hbm [shape: bf16[256,384], index: 5, kind: input, shape index: {}]   ;;  %s5741_s6 = inlined_call_operand.vmem [shape: bf16[64,256], index: 6, kind: input, shape index: {}]   ;;  %s5742_s7 = inlined_call_operand.hbm [shape: f32[32,64], index: 7, kind: input, shape index: {}]   ;;  %s5743_s8 = inlined_call_operand.hbm [shape: f32[64,96], index: 8, kind: input, shape index: {}]   ;;  %s5744_s9 = inlined_call_operand.vmem [shape: f32[15,512], index: 9, kind: input, shape index: {}]   ;;  %s5745_s10 = inlined_call_operand.vmem [shape: f32[2,128], index: 10, kind: output, shape index: {}]  }
   0x1   :  { %16 = vsyncpa [#allocation5], 0 }
   0x2   :  { %17 = vsyncpa [#allocation8], 0 }
   0x3   :  { %18 = vsyncpa [#allocation11], 0  ;;  %s4949_s13 = smov [#allocation4]  }
   0x4   :  { %s40_s14 = sshll.u32 %s4949_s13, 4  ;;  %s41_s14 = int_to_ptr.vmem [resolvable:$true] %s40_s14 }
   0x5   :  { %s4829_s15 = scalar_lea.vmem %s41_s14, 4096  ;;  %p4834_p1 = scmp.lt.s32.totalorder %s41_s14, %s41_s14 }
   0x6   :  { %p4830_p0 = scmp.ne.s32.totalorder %s41_s14, %s4829_s15  ;;  %p4835_p2 = scmp.lt.s32.totalorder %s4829_s15, %s4829_s15 }
   0x8   :  { %p4836_p3 = por %p4835_p2, %p4834_p1 }
   0xa   :  { %p4837_p4 = pnand %p4836_p3, %p4830_p0 }
   0xc   :  { %4840 = shalt.err (!%p4837_p4)
}
   0xd   :  { %s4950_s16 = smov 64   ;;  %s4951_s17 = smov 4  }
   0xe   :  { %46 = dma.hbm_to_vmem [thread:$0]  %s5738_s3, 4096, %s41_s14, [#allocation5], %s4950_s16, %s4950_s16, %s4951_s17  }
   0xf   :  { %s4952_s20 = smov [#allocation7]  }
  0x10   :  { %s64_s21 = sshll.u32 %s4952_s20, 4  ;;  %s65_s21 = int_to_ptr.vmem [resolvable:$true] %s64_s21 }
  0x11   :  { %s4849_s22 = scalar_lea.vmem %s65_s21, 6144  ;;  %p4854_p6 = scmp.lt.s32.totalorder %s65_s21, %s65_s21 }
  0x12   :  { %p4850_p5 = scmp.ne.s32.totalorder %s65_s21, %s4849_s22  ;;  %p4855_p7 = scmp.lt.s32.totalorder %s4849_s22, %s4849_s22 }
  0x14   :  { %p4856_p8 = por %p4855_p7, %p4854_p6 }
  0x16   :  { %p4857_p9 = pnand %p4856_p8, %p4850_p5 }
  0x18   :  { %4860 = shalt.err (!%p4857_p9)
}
  0x19   :  { %s4953_s23 = smov 192   ;;  %s4954_s24 = smov 12  }
  0x1a   :  { %70 = dma.hbm_to_vmem [thread:$0]  %s5740_s5, 6144, %s65_s21, [#allocation8], %s4953_s23, %s4953_s23, %s4954_s24  }
  0x1b   :  { %s4955_s27 = smov [#allocation2]  }
  0x1c   :  { %s28_s28 = sshll.u32 %s4955_s27, 4  ;;  %s29_s28 = int_to_ptr.vmem [resolvable:$true] %s28_s28 }
  0x1d   :  { %s4869_s3 = scalar_lea.vmem %s29_s28, 3584  ;;  %p4874_p11 = scmp.lt.s32.totalorder %s29_s28, %s29_s28 }
  0x1e   :  { %p4870_p10 = scmp.ne.s32.totalorder %s29_s28, %s4869_s3  ;;  %p4875_p12 = scmp.lt.s32.totalorder %s4869_s3, %s4869_s3 }
  0x20   :  { %p4876_p13 = por %p4875_p12, %p4874_p11 }
  0x22   :  { %p4877_p0 = pnand %p4876_p13, %p4870_p10 }
  0x24   :  { %4880 = shalt.err (!%p4877_p0)
}
  0x25   :  { %s4956_s29 = smov 256   ;;  %s4957_s30 = smov 16  }
  0x26   :  { %34 = dma.hbm_to_vmem [thread:$0]  %s5737_s2, 3584, %s29_s28, [#allocation3], %s4956_s29, %s4956_s29, %s4957_s30  }
  0x27   :  { %s4958_s13 = smov [#allocation6]  }
  0x28   :  { %s52_s14 = sshll.u32 %s4958_s13, 4  ;;  %s53_s14 = int_to_ptr.vmem [resolvable:$true] %s52_s14 }
  0x29   :  { %s4889_s5 = scalar_lea.vmem %s53_s14, 8192  ;;  %p4894_p2 = scmp.lt.s32.totalorder %s53_s14, %s53_s14 }
  0x2a   :  { %p4890_p1 = scmp.ne.s32.totalorder %s53_s14, %s4889_s5  ;;  %p4895_p3 = scmp.lt.s32.totalorder %s4889_s5, %s4889_s5 }
  0x2c   :  { %p4896_p4 = por %p4895_p3, %p4894_p2 }
  0x2e   :  { %p4897_p5 = pnand %p4896_p4, %p4890_p1 }
  0x30   :  { %4900 = shalt.err (!%p4897_p5)
}
  0x31   :  { %s4959_s15 = smov 512   ;;  %s4960_s17 = smov 32  }
  0x32   :  { %58 = dma.hbm_to_vmem [thread:$0]  %s5739_s4, 8192, %s53_s14, [#allocation5], %s4959_s15, %s4959_s15, %s4960_s17  }
  0x33   :  { %s4961_s20 = smov [#allocation9]  }
  0x34   :  { %s78_s21 = sshll.u32 %s4961_s20, 4  ;;  %s79_s21 = int_to_ptr.vmem [resolvable:$true] %s78_s21 }
  0x35   :  { %s4909_s2 = scalar_lea.vmem %s79_s21, 512  ;;  %p4914_p7 = scmp.lt.s32.totalorder %s79_s21, %s79_s21 }
  0x36   :  { %p4910_p6 = scmp.ne.s32.totalorder %s79_s21, %s4909_s2  ;;  %p4915_p8 = scmp.lt.s32.totalorder %s4909_s2, %s4909_s2 }
  0x38   :  { %p4916_p9 = por %p4915_p8, %p4914_p7 }
  0x3a   :  { %p4917_p10 = pnand %p4916_p9, %p4910_p6 }
  0x3c   :  { %4920 = shalt.err (!%p4917_p10)
}
  0x3d   :  { %s4962_s22 = smov 128   ;;  %s4963_s23 = smov 8  }
  0x3e   :  { %84 = dma.hbm_to_vmem [thread:$0]  %s5742_s7, 512, %s79_s21, [#allocation8], %s4962_s22, %s4962_s22, %s4963_s23  }
  0x3f   :  { %s4964_s26 = smov [#allocation10]  }
  0x40   :  { %s90_s27 = sshll.u32 %s4964_s26, 4  ;;  %s91_s27 = int_to_ptr.vmem [resolvable:$true] %s90_s27 }
  0x41   :  { %s4929_s4 = scalar_lea.vmem %s91_s27, 1024  ;;  %p4934_p12 = scmp.lt.s32.totalorder %s91_s27, %s91_s27 }
  0x42   :  { %p4930_p11 = scmp.ne.s32.totalorder %s91_s27, %s4929_s4  ;;  %p4935_p13 = scmp.lt.s32.totalorder %s4929_s4, %s4929_s4 }
  0x44   :  { %p4936_p0 = por %p4935_p13, %p4934_p12 }
  0x46   :  { %p4937_p1 = pnand %p4936_p0, %p4930_p11 }
  0x48   :  { %4940 = shalt.err (!%p4937_p1)
}
  0x49   :  { %96 = dma.hbm_to_vmem [thread:$0]  %s5743_s8, 1024, %s91_s27, [#allocation11], %s4962_s22, %s4962_s22, %s4963_s23  }
  0x4a   :  { %4941 = dma.done.wait [#allocation3], 3584  }
  0x4b   :  { %4942 = vsyncadd [#allocation3], 4294963712 }
  0x4c   :  { %4943 = dma.done.wait [#allocation5], 12288  }
  0x4d   :  { %4944 = vsyncadd [#allocation5], 4294955008 }
  0x4e   :  { %4945 = dma.done.wait [#allocation8], 6656  }
  0x4f   :  { %4946 = vsyncadd [#allocation8], 4294960640 }
  0x50   :  { %4947 = dma.done.wait [#allocation11], 1024  }
  0x51   :  { %4948 = vsyncadd [#allocation11], 4294966272  ;;  %v4965_v0 = vmov 0   ;;  %v4628_v1 = vld [vmem:[#allocation2 + $0xc4] ss:$16 sps:$4 sm:$0xff]   ;;  %v4670_v30 = vld [vmem:[#allocation4 + $0x78] sm:$0xff]   ;;  %v150_v63 = vlaneseq }
  0x52   :  { %346 = vmatprep.mubr.bf16.mxu0 %v4965_v0  ;;  %387 = vmatprep.mubr.bf16.mxu1 %v4965_v0  ;;  %v4630_v2 = vld [vmem:[#allocation2 + $0xcc] ss:$16 sps:$4 sm:$0xff]   ;;  %v4632_v3 = vld [vmem:[#allocation2 + $0xc0] ss:$16 sps:$4 sm:$0xff]   ;;  %v4633_v4 = vld [vmem:[#allocation2 + $0xc8] ss:$16 sps:$4 sm:$0xff]  }
  0x53   :  { %316 = vmatprep.subr.bf16.mxu0 %v4628_v1  ;;  %357 = vmatprep.subr.bf16.mxu1 %v4630_v2  ;;  %v4634_v5 = vld [vmem:[#allocation2 + $0xa4] ss:$16 sps:$4 sm:$0xff]   ;;  %v4636_v6 = vld [vmem:[#allocation2 + $0xac] ss:$16 sps:$4 sm:$0xff]   ;;  %v4638_v7 = vld [vmem:[#allocation2 + $0xa0] ss:$16 sps:$4 sm:$0xff]  }
  0x54   :  { %317 = vmatpush1.bf16.msra.mxu0 %v4632_v3  ;;  %358 = vmatpush1.bf16.msra.mxu1 %v4633_v4  ;;  %v4639_v8 = vld [vmem:[#allocation2 + $0xa8] ss:$16 sps:$4 sm:$0xff]   ;;  %v4640_v9 = vld [vmem:[#allocation2 + $0x84] ss:$16 sps:$4 sm:$0xff]   ;;  %v4642_v10 = vld [vmem:[#allocation2 + $0x8c] ss:$16 sps:$4 sm:$0xff]  }
  0x55   :  { %318 = vmatprep.subr.bf16.mxu0 %v4634_v5  ;;  %359 = vmatprep.subr.bf16.mxu1 %v4636_v6  ;;  %v4644_v11 = vld [vmem:[#allocation2 + $0x80] ss:$16 sps:$4 sm:$0xff]   ;;  %v4645_v12 = vld [vmem:[#allocation2 + $0x88] ss:$16 sps:$4 sm:$0xff]   ;;  %v4646_v13 = vld [vmem:[#allocation2 + $0x64] ss:$16 sps:$4 sm:$0xff]  }
  0x56   :  { %v4648_v14 = vld [vmem:[#allocation2 + $0x6c] ss:$16 sps:$4 sm:$0xff]   ;;  %v4650_v15 = vld [vmem:[#allocation2 + $0x60] ss:$16 sps:$4 sm:$0xff]   ;;  %v4651_v16 = vld [vmem:[#allocation2 + $0x68] ss:$16 sps:$4 sm:$0xff]  }
  0x57   :  { %v4652_v17 = vld [vmem:[#allocation2 + $0x44] ss:$16 sps:$4 sm:$0xff]   ;;  %v4654_v18 = vld [vmem:[#allocation2 + $0x4c] ss:$16 sps:$4 sm:$0xff]   ;;  %v4656_v19 = vld [vmem:[#allocation2 + $0x40] ss:$16 sps:$4 sm:$0xff]  }
  0x58   :  { %319 = vmatpush1.bf16.msra.mxu0 %v4638_v7  ;;  %360 = vmatpush1.bf16.msra.mxu1 %v4639_v8  ;;  %v4657_v20 = vld [vmem:[#allocation2 + $0x48] ss:$16 sps:$4 sm:$0xff]   ;;  %v4658_v21 = vld [vmem:[#allocation2 + $0x24] ss:$16 sps:$4 sm:$0xff]   ;;  %v4660_v22 = vld [vmem:[#allocation2 + $0x2c] ss:$16 sps:$4 sm:$0xff]  }
  0x59   :  { %320 = vmatprep.subr.bf16.mxu0 %v4640_v9  ;;  %361 = vmatprep.subr.bf16.mxu1 %v4642_v10  ;;  %v4662_v23 = vld [vmem:[#allocation2 + $0x20] ss:$16 sps:$4 sm:$0xff]   ;;  %v4663_v24 = vld [vmem:[#allocation2 + $0x28] ss:$16 sps:$4 sm:$0xff]   ;;  %v4664_v25 = vld [vmem:[#allocation2 + $0x4] ss:$16 sps:$4 sm:$0xff]  }
  0x5a   :  { %v4666_v26 = vld [vmem:[#allocation2 + $0xc] ss:$16 sps:$4 sm:$0xff]   ;;  %v4668_v27 = vld [vmem:[#allocation2] ss:$16 sps:$4 sm:$0xff]   ;;  %v4669_v28 = vld [vmem:[#allocation2 + $0x8] ss:$16 sps:$4 sm:$0xff]  }
  0x5b   :  { %v118_v29 = vld [vmem:[%s5735_s0] sm:$0x3]  ;;  %v4671_v31 = vld [vmem:[#allocation4 + $0xf8] sm:$0xff]   ;;  %vm310_vm0 = vcmask 916480   ;;  %v4674_v35 = vld [vmem:[#allocation4 + $0x70] sm:$0xff]   ;;  %v151_v1 = vshrl.u32 %v150_v63, 7 }
  0x5c   :  { %321 = vmatpush1.bf16.msra.mxu0 %v4644_v11  ;;  %362 = vmatpush1.bf16.msra.mxu1 %v4645_v12  ;;  %v4672_v32 = vld [vmem:[#allocation4 + $0x38] sm:$0xff]   ;;  %v119_v33 = vpack.c.bf16 %v118_v29, %v118_v29  ;;  %v4675_v36 = vld [vmem:[#allocation4 + $0xf0] sm:$0xff]   ;;  %v4678_v39 = vld [vmem:[#allocation4 + $0x68] sm:$0xff]   ;;  %s4966_s12 = smov 96   ;;  %vm741_vm1 = vcmask 254976   ;;  %vm817_vm2 = vcmask 261120  }
  0x5d   :  { %322 = vmatprep.subr.bf16.mxu0 %v4646_v13  ;;  %363 = vmatprep.subr.bf16.mxu1 %v4648_v14  ;;  %v4673_v34 = vld [vmem:[#allocation4 + $0xb8] sm:$0xff]   ;;  %v4676_v37 = vld [vmem:[#allocation4 + $0x30] sm:$0xff]   ;;  %v4679_v40 = vld [vmem:[#allocation4 + $0xe8] sm:$0xff]   ;;  %v5067_v2 = vsub.s32 0, %v151_v1  ;;  %v160_v3 = vsub.s32 2, %v151_v1  ;;  %v5072_v5 = vsub.s32 1, %v151_v1 }
  0x5e   :  { %v4677_v38 = vld [vmem:[#allocation4 + $0xb0] sm:$0xff]   ;;  %v4680_v41 = vld [vmem:[#allocation4 + $0x28] sm:$0xff]   ;;  %v4682_v43 = vld [vmem:[#allocation4 + $0x60] sm:$0xff]   ;;  %v164_v6 = vsub.s32 3, %v151_v1  ;;  %vm819_vm3 = vcmask 523264   ;;  %vm821_vm4 = vcmask 785408  }
  0x5f   :  { %v4681_v42 = vld [vmem:[#allocation4 + $0xa8] sm:$0xff]   ;;  %v4683_v44 = vld [vmem:[#allocation4 + $0xe0] sm:$0xff]   ;;  %v4686_v47 = vld [vmem:[#allocation4 + $0x58] sm:$0xff]   ;;  %vm989_vm5 = vcmask 25600   ;;  %s4970_s18 = smov 124   ;;  %vm4972_vm6 = vmmov 0  }
  0x60   :  { %323 = vmatpush1.bf16.msra.mxu0 %v4650_v15  ;;  %364 = vmatpush1.bf16.msra.mxu1 %v4651_v16  ;;  %v4684_v45 = vld [vmem:[#allocation4 + $0x20] sm:$0xff]   ;;  %v4687_v48 = vld [vmem:[#allocation4 + $0xd8] sm:$0xff]   ;;  %v4690_v51 = vld [vmem:[#allocation4 + $0x50] sm:$0xff]   ;;  %s4973_s11 = smov 35   ;;  %vm1513_vm7 = vcmask 31744   ;;  %vm1515_vm8 = vcmask 33792  }
  0x61   :  { %324 = vmatprep.subr.bf16.mxu0 %v4652_v17  ;;  %365 = vmatprep.subr.bf16.mxu1 %v4654_v18  ;;  %v4685_v46 = vld [vmem:[#allocation4 + $0xa0] sm:$0xff]   ;;  %v4688_v49 = vld [vmem:[#allocation4 + $0x18] sm:$0xff]   ;;  %v4691_v52 = vld [vmem:[#allocation4 + $0xd0] sm:$0xff]   ;;  %vm1288_vm9 = vcmask 517120   ;;  %s4976_s21 = smov 120   ;;  %s4977_s2 = smov 34  }
  0x62   :  { %v4689_v50 = vld [vmem:[#allocation4 + $0x98] sm:$0xff]   ;;  %v4692_v53 = vld [vmem:[#allocation4 + $0x10] sm:$0xff]   ;;  %v4694_v55 = vld [vmem:[#allocation4 + $0x48] sm:$0xff]   ;;  %vm1948_vm13 = vcmask 39936   ;;  %vm1950_vm14 = vcmask 41984   ;;  %s4979_s24 = smov 66  }
  0x63   :  { %v4693_v54 = vld [vmem:[#allocation4 + $0x90] sm:$0xff]   ;;  %v4695_v56 = vld [vmem:[#allocation4 + $0xc8] sm:$0xff]   ;;  %v4698_v59 = vld [vmem:[#allocation4 + $0x40] sm:$0xff]   ;;  %s4980_s25 = smov 116   ;;  %s4981_s26 = smov 33  }
  0x64   :  { %325 = vmatpush1.bf16.msra.mxu0 %v4656_v19  ;;  %366 = vmatpush1.bf16.msra.mxu1 %v4657_v20  ;;  %v4696_v57 = vld [vmem:[#allocation4 + $0x8] sm:$0xff]   ;;  %v4699_v60 = vld [vmem:[#allocation4 + $0xc0] sm:$0xff]   ;;  %s4983_s13 = smov 67  }
  0x65   :  { %326 = vmatprep.subr.bf16.mxu0 %v4658_v21  ;;  %367 = vmatprep.subr.bf16.mxu1 %v4660_v22  ;;  %v4697_v58 = vld [vmem:[#allocation4 + $0x88] sm:$0xff]   ;;  %v4700_v61 = vld [vmem:[#allocation4] sm:$0xff]  }
  0x66   :  { %v4701_v62 = vld [vmem:[#allocation4 + $0x80] sm:$0xff]  }
  0x67   :  { %v148_v4 = vld [vmem:[%s5744_s9] ss:$8 sm:$0xf] }
  0x68   :  { %327 = vmatpush1.bf16.msra.mxu0 %v4662_v23  ;;  %368 = vmatpush1.bf16.msra.mxu1 %v4663_v24  ;;  %v153_v7 = vrot.slane %v148_v4, %v5067_v2  ;;  %v161_v8 = vrot.slane %v148_v4, %v160_v3  ;;  %v157_v9 = vrot.slane %v148_v4, %v5072_v5 }
  0x69   :  { %328 = vmatprep.subr.bf16.mxu0 %v4664_v25  ;;  %369 = vmatprep.subr.bf16.mxu1 %v4666_v26  ;;  %v165_v10 = vrot.slane %v148_v4, %v164_v6 }
  0x6c   :  { %329 = vmatpush1.bf16.msra.mxu0 %v4668_v27  ;;  %370 = vmatpush1.bf16.msra.mxu1 %v4669_v28 }
  0x6d   :  { %4034 = vmatprep.subr.bf16.mxu0 %v4670_v30  ;;  %4056 = vmatprep.subr.bf16.mxu1 %v4671_v31 }
  0x6f   :  { %3852 = vmatmul.mubr.msk.bf16.vlgmr.msra.gmra.mxu0 %vm310_vm0, %v119_v33  ;;  %3853 = vmatmul.mubr.msk.bf16.vlgmr.msra.gmra.mxu1 %vm310_vm0, %v119_v33  ;;  %v468_v33 = vld [vmem:[%s5744_s9 + $0x1] ss:$0 sm:$0xff] }
  0x70   :  { %4035 = vmatpush3.bf16.msra.mxu0 %v4672_v32  ;;  %4057 = vmatpush3.bf16.msra.mxu1 %v4673_v34 }
  0x71   :  { %4036 = vmatprep.subr.bf16.mxu0 %v4674_v35  ;;  %4058 = vmatprep.subr.bf16.mxu1 %v4675_v36 }
  0x74   :  { %4037 = vmatpush3.bf16.msra.mxu0 %v4676_v37  ;;  %4059 = vmatpush3.bf16.msra.mxu1 %v4677_v38 }
  0x75   :  { %4038 = vmatprep.subr.bf16.mxu0 %v4678_v39  ;;  %4060 = vmatprep.subr.bf16.mxu1 %v4679_v40 }
  0x78   :  { %4039 = vmatpush3.bf16.msra.mxu0 %v4680_v41  ;;  %4061 = vmatpush3.bf16.msra.mxu1 %v4681_v42 }
  0x79   :  { %4040 = vmatprep.subr.bf16.mxu0 %v4682_v43  ;;  %4062 = vmatprep.subr.bf16.mxu1 %v4683_v44 }
  0x7c   :  { %4041 = vmatpush3.bf16.msra.mxu0 %v4684_v45  ;;  %4063 = vmatpush3.bf16.msra.mxu1 %v4685_v46 }
  0x7d   :  { %4042 = vmatprep.subr.bf16.mxu0 %v4686_v47  ;;  %4064 = vmatprep.subr.bf16.mxu1 %v4687_v48 }
  0x80   :  { %4043 = vmatpush3.bf16.msra.mxu0 %v4688_v49  ;;  %4065 = vmatpush3.bf16.msra.mxu1 %v4689_v50 }
  0x81   :  { %4044 = vmatprep.subr.bf16.mxu0 %v4690_v51  ;;  %4066 = vmatprep.subr.bf16.mxu1 %v4691_v52 }
  0x84   :  { %4045 = vmatpush3.bf16.msra.mxu0 %v4692_v53  ;;  %4067 = vmatpush3.bf16.msra.mxu1 %v4693_v54 }
  0x85   :  { %4046 = vmatprep.subr.bf16.mxu0 %v4694_v55  ;;  %4068 = vmatprep.subr.bf16.mxu1 %v4695_v56 }
  0x88   :  { %4047 = vmatpush3.bf16.msra.mxu0 %v4696_v57  ;;  %4069 = vmatpush3.bf16.msra.mxu1 %v4697_v58 }
  0x89   :  { %4048 = vmatprep.subr.bf16.mxu0 %v4698_v59  ;;  %4070 = vmatprep.subr.bf16.mxu1 %v4699_v60 }
  0x8c   :  { %4049 = vmatpush3.bf16.msra.mxu0 %v4700_v61  ;;  %4071 = vmatpush3.bf16.msra.mxu1 %v4701_v62 }
 0x12f   :  { %v348_v11 = vpop.f32.mrf.mxu0  ;;  %v389_v12 = vpop.f32.mrf.mxu1 }
 0x130   :  { %v349_v13 = vadd.f32 %v348_v11, %v153_v7  ;;  %v390_v14 = vadd.f32 %v389_v12, %v161_v8  ;;  %v838_v8 = vld [vmem:[#allocation6 + $0x1c0] sm:$0xff] }
 0x131   :  { %v350_v15 = vpop.f32.mrf.mxu0  ;;  %v391_v16 = vpop.f32.mrf.mxu1 }
 0x132   :  { %v398_v17 = vmax.f32 %v390_v14, 0.0  ;;  %v351_v18 = vadd.f32 %v350_v15, %v157_v9  ;;  %v392_v19 = vadd.f32 %v391_v16, %v165_v10  ;;  %v396_v20 = vmax.f32 %v349_v13, 0.0  ;;  %v839_v9 = vld [vmem:[#allocation6 + $0x1e0] sm:$0xff] }
 0x133   :  { %v352_v21 = vpop.f32.mrf.mxu0  ;;  %v393_v22 = vpop.f32.mrf.mxu1  ;;  %v3901_v10 = vcombine.low %v838_v8, %v839_v9  ;;  %v3902_v11 = vcombine.high %v838_v8, %v839_v9 }
 0x134   :  { %v397_v23 = vmax.f32 %v351_v18, 0.0  ;;  %v399_v24 = vmax.f32 %v392_v19, 0.0  ;;  %v402_v25 = vpack.c.bf16 %v398_v17, %v398_v17  ;;  %v400_v30 = vpack.c.bf16 %v396_v20, %v396_v20  ;;  %v836_v18 = vld [vmem:[#allocation6 + $0x180] sm:$0xff] }
 0x135   :  { %v353_v26 = vpop.f32.mrf.mxu0  ;;  %v394_v27 = vpop.f32.mrf.mxu1  ;;  %933 = vmatprep.subr.bf16.mxu0 %v3902_v11  ;;  %v837_v19 = vld [vmem:[#allocation6 + $0x1a0] sm:$0xff] }
 0x136   :  { %v401_v28 = vpack.c.bf16 %v397_v23, %v397_v23  ;;  %v403_v29 = vpack.c.bf16 %v399_v24, %v399_v24  ;;  %v3900_v20 = vcombine.high %v836_v18, %v837_v19  ;;  %v3899_v21 = vcombine.low %v836_v18, %v837_v19  ;;  %v834_v22 = vld [vmem:[#allocation6 + $0x140] sm:$0xff] }
 0x137   :  { %v835_v23 = vld [vmem:[#allocation6 + $0x160] sm:$0xff]  ;;  %v4967_v18 = vmov 2   ;;  %v4968_v19 = vmov 1  }
 0x138   :  { %693 = vmatprep.mubr.bf16.mxu0 %v401_v28  ;;  %733 = vmatprep.mubr.bf16.mxu1 %v403_v29  ;;  %v3898_v24 = vcombine.high %v834_v22, %v835_v23  ;;  %v832_v26 = vld [vmem:[#allocation6 + $0x100] sm:$0xff] }
 0x139   :  { %694 = vmatmul.mubr.bf16.vlgmr.msra.gmra.mxu0 %v400_v30  ;;  %734 = vmatmul.mubr.bf16.vlgmr.msra.gmra.mxu1 %v402_v25  ;;  %v3897_v25 = vcombine.low %v834_v22, %v835_v23  ;;  %v833_v27 = vld [vmem:[#allocation6 + $0x120] sm:$0xff] }
 0x13a   :  { %965 = vmatprep.mubr.bf16.mxu0 %v4965_v0  ;;  %934 = vmatpush1.bf16.msra.mxu0 %v3901_v10  ;;  %v3896_v28 = vcombine.high %v832_v26, %v833_v27  ;;  %v3895_v29 = vcombine.low %v832_v26, %v833_v27  ;;  %v830_v30 = vld [vmem:[#allocation6 + $0xc0] sm:$0xff] }
 0x13b   :  { %935 = vmatprep.subr.bf16.mxu0 %v3900_v20  ;;  %4605 = vset.pattern.permute.xlu1 %v4967_v18 }
 0x13c   :  { %4604 = vset.pattern.permute.xlu0 %v4968_v19 }
 0x13e   :  { %936 = vmatpush1.bf16.msra.mxu0 %v3899_v21 }
 0x13f   :  { %937 = vmatprep.subr.bf16.mxu0 %v3898_v24  ;;  %v4969_v24 = vmov 3  }
 0x142   :  { %938 = vmatpush1.bf16.msra.mxu0 %v3897_v25 }
 0x143   :  { %939 = vmatprep.subr.bf16.mxu0 %v3896_v28 }
 0x146   :  { %940 = vmatpush1.bf16.msra.mxu0 %v3895_v29 }
 0x1f9   :  { %v4050_v31 = vpop.f32.mrf.mxu0  ;;  %v4072_v32 = vpop.f32.mrf.mxu1 }
 0x1fb   :  { %v4051_v34 = vpop.f32.mrf.mxu0  ;;  %v4073_v35 = vpop.f32.mrf.mxu1 }
 0x1fc   :  { %v4052_v36 = vadd.f32 %v4051_v34, %v4050_v31  ;;  %v4074_v40 = vadd.f32 %v4073_v35, %v4072_v32  ;;  %v831_v31 = vld [vmem:[#allocation6 + $0xe0] sm:$0xff] }
 0x1fd   :  { %v4053_v37 = vpop.f32.mrf.mxu0  ;;  %v4075_v38 = vpop.f32.mrf.mxu1  ;;  %v3894_v32 = vcombine.high %v830_v30, %v831_v31  ;;  %v828_v34 = vld [vmem:[#allocation6 + $0x80] sm:$0xff] }
 0x1fe   :  { %v696_v39 = vadd.f32 %v4052_v36, %v468_v33  ;;  %v3893_v33 = vcombine.low %v830_v30, %v831_v31  ;;  %v829_v35 = vld [vmem:[#allocation6 + $0xa0] sm:$0xff] }
 0x1ff   :  { %v4054_v41 = vpop.f32.mrf.mxu0  ;;  %v4076_v42 = vpop.f32.mrf.mxu1  ;;  %941 = vmatprep.subr.bf16.mxu0 %v3894_v32  ;;  %v3892_v36 = vcombine.high %v828_v34, %v829_v35  ;;  %v3891_v37 = vcombine.low %v828_v34, %v829_v35  ;;  %v826_v38 = vld [vmem:[#allocation6 + $0x40] sm:$0xff] }
 0x200   :  { %v736_v43 = vadd.f32 %v4074_v40, %v696_v39  ;;  %942 = vmatpush1.bf16.msra.mxu0 %v3893_v33  ;;  %v827_v39 = vld [vmem:[#allocation6 + $0x60] sm:$0xff] }
 0x201   :  { %v824_v40 = vld [vmem:[#allocation6] sm:$0xff]  ;;  %943 = vmatprep.subr.bf16.mxu0 %v3892_v36  ;;  %v3890_v41 = vcombine.high %v826_v38, %v827_v39 }
 0x202   :  { %797 = vrot.lane.b32.xlu1 %v736_v43, %s4960_s17  ;;  %757 = vrot.lane.b32.xlu0 %v736_v43, %s4966_s12  ;;  %v742_v48 = vsel %vm741_vm1, %v736_v43, 0.0  ;;  %v825_v42 = vld [vmem:[#allocation6 + $0x20] sm:$0xff] }
 0x204   :  { %944 = vmatpush1.bf16.msra.mxu0 %v3891_v37 }
 0x205   :  { %945 = vmatprep.subr.bf16.mxu0 %v3890_v41 }
 0x206   :  { %777 = vrot.lane.b32.xlu0 %v736_v43, %s4950_s16 }
 0x274   :  { %v758_v44 = vpop.permute.xlu0 %757  ;;  %v798_v49 = vpop.permute.xlu1 %797 }
 0x275   :  { %v760_v45 = vsel %vm741_vm1, %v758_v44, 0.0  ;;  %v800_v50 = vsel %vm741_vm1, %v798_v49, 0.0  ;;  %v3888_v44 = vcombine.high %v824_v40, %v825_v42 }
 0x276   :  { %761 = vadd.xlane.f32.xlu1 %v760_v45  ;;  %v3887_v45 = vcombine.low %v824_v40, %v825_v42 }
 0x278   :  { %v778_v46 = vpop.permute.xlu0 %777 }
 0x279   :  { %v780_v47 = vsel %vm741_vm1, %v778_v46, 0.0 }
 0x27a   :  { %781 = vadd.xlane.f32.xlu0 %v780_v47  ;;  %743 = vadd.xlane.f32.xlu1 %v742_v48 }
 0x27e   :  { %801 = vadd.xlane.f32.xlu0 %v800_v50 }
 0x2ff   :  { %v762_v51 = vpop.xlane.xlu1 %761 }
 0x300   :  { %v763_v52 = vmul.f32 0.03125, %v762_v51 }
 0x302   :  { %v5087_v53 = vsub.f32 %v736_v43, %v763_v52 }
 0x303   :  { %v782_v54 = vpop.xlane.xlu0 %781  ;;  %v744_v1 = vpop.xlane.xlu1 %743 }
 0x304   :  { %v783_v55 = vmul.f32 0.03125, %v782_v54  ;;  %v765_v56 = vmul.f32 %v5087_v53, %v5087_v53  ;;  %v746_v3 = vmul.f32 0.03125, %v744_v1 }
 0x306   :  { %767 = vrot.lane.b32.xlu0 %v765_v56, %s4966_s12  ;;  %v5092_v57 = vsub.f32 %v736_v43, %v783_v55  ;;  %v5102_v4 = vsub.f32 %v736_v43, %v746_v3 }
 0x307   :  { %v802_v58 = vpop.xlane.xlu0 %801 }
 0x308   :  { %v803_v59 = vmul.f32 0.03125, %v802_v58  ;;  %v785_v60 = vmul.f32 %v5092_v57, %v5092_v57  ;;  %v748_v6 = vmul.f32 %v5102_v4, %v5102_v4 }
 0x30a   :  { %787 = vrot.lane.b32.xlu1 %v785_v60, %s4950_s16  ;;  %v5097_v61 = vsub.f32 %v736_v43, %v803_v59  ;;  %v749_v7 = vsel %vm741_vm1, %v748_v6, 0.0  ;;  %v3889_v43 = vcombine.low %v826_v38, %v827_v39 }
 0x30c   :  { %v805_v62 = vmul.f32 %v5097_v61, %v5097_v61  ;;  %946 = vmatpush1.bf16.msra.mxu0 %v3889_v43 }
 0x30d   :  { %947 = vmatprep.subr.bf16.mxu0 %v3888_v44  ;;  %v988_v44 = vld [vmem:[%s5744_s9 + $0x23] ss:$0 sm:$0xff] }
 0x30e   :  { %807 = vrot.lane.b32.xlu1 %v805_v62, %s4960_s17 }
 0x310   :  { %948 = vmatpush1.bf16.msra.mxu0 %v3887_v45 }
 0x325   :  { %750 = vadd.xlane.f32.xlu0 %v749_v7 }
 0x378   :  { %v768_v12 = vpop.permute.xlu0 %767 }
 0x379   :  { %v770_v13 = vsel %vm741_vm1, %v768_v12, 0.0 }
 0x37a   :  { %771 = vadd.xlane.f32.xlu1 %v770_v13 }
 0x37c   :  { %v788_v14 = vpop.permute.xlu1 %787 }
 0x37d   :  { %v790_v15 = vsel %vm741_vm1, %v788_v14, 0.0 }
 0x37e   :  { %791 = vadd.xlane.f32.xlu0 %v790_v15 }
 0x380   :  { %v808_v16 = vpop.permute.xlu1 %807 }
 0x381   :  { %v810_v17 = vsel %vm741_vm1, %v808_v16, 0.0 }
 0x382   :  { %811 = vadd.xlane.f32.xlu0 %v810_v17 }
 0x3ae   :  { %v751_v46 = vpop.xlane.xlu0 %750 }
 0x3af   :  { %v752_v47 = vmul.f32 0.03125, %v751_v46 }
 0x3b1   :  { %v753_v51 = vadd.f32 1e-05, %v752_v47 }
 0x403   :  { %v772_v48 = vpop.xlane.xlu1 %771 }
 0x404   :  { %v773_v49 = vmul.f32 0.03125, %v772_v48 }
 0x406   :  { %v774_v50 = vadd.f32 1e-05, %v773_v49 }
 0x407   :  { %v792_v52 = vpop.xlane.xlu0 %791 }
 0x408   :  { %v793_v54 = vmul.f32 0.03125, %v792_v52  ;;  %4758 = vrsqrt.f32 %v774_v50 }
 0x409   :  { %4760 = vrsqrt.f32 %v753_v51 }
 0x40a   :  { %v794_v55 = vadd.f32 1e-05, %v793_v54  ;;  %v5152_v54 = vld [vmem:[%s5741_s6 + $0x30] ss:$8 sps:$4 sm:$0xff]  }
 0x40b   :  { %v812_v56 = vpop.xlane.xlu0 %811 }
 0x40c   :  { %4762 = vrsqrt.f32 %v794_v55  ;;  %v813_v58 = vmul.f32 0.03125, %v812_v56  ;;  %v4971_v55 = vmov 0.0   ;;  %v5161_v56 = vld [vmem:[%s5741_s6 + $0x20] ss:$8 sps:$4 sm:$0xff]  }
 0x40d   :  { %4276 = vmatprep.subr.bf16.mxu1 %v4971_v55  ;;  %4300 = vmatprep.subr.mxu0 %v4971_v55 }
 0x40e   :  { %v814_v59 = vadd.f32 1e-05, %v813_v58  ;;  %4277 = vmatpush3.bf16.msra.mxu1 %v5152_v54  ;;  %v5168_v58 = vld [vmem:[%s5741_s6 + $0x10] ss:$8 sps:$4 sm:$0xff]   ;;  %4284 = vmatprep.mubr.msk.bf16.mxu1 %vm4972_vm6, %v4971_v55 }
 0x40f   :  { %4278 = vmatprep.subr.bf16.mxu1 %v4971_v55 }
 0x410   :  { %4764 = vrsqrt.f32 %v814_v59  ;;  %v5175_v59 = vld [vmem:[%s5741_s6] ss:$8 sps:$4 sm:$0xff]  }
 0x412   :  { %4279 = vmatpush3.bf16.msra.mxu1 %v5161_v56 }
 0x413   :  { %4280 = vmatprep.subr.bf16.mxu1 %v4971_v55 }
 0x415   :  { %v4759_v60 = vpop.eup %4758 }
 0x416   :  { %v4761_v62 = vpop.eup %4760  ;;  %v776_v3 = vmul.f32 %v4759_v60, %v5087_v53  ;;  %v3886_v53 = vld [vmem:[%s5744_s9 + $0x2] ss:$8 sm:$0x3]  ;;  %4281 = vmatpush3.bf16.msra.mxu1 %v5168_v58 }
 0x417   :  { %v755_v7 = vmul.f32 %v4761_v62, %v5102_v4  ;;  %v846_v26 = vrot.slane %v3886_v53, %v5067_v2  ;;  %4282 = vmatprep.subr.bf16.mxu1 %v4971_v55 }
 0x419   :  { %v4763_v1 = vpop.eup %4762  ;;  %v818_v10 = vsel %vm817_vm2, %v755_v7, %v776_v3 }
 0x41a   :  { %v796_v6 = vmul.f32 %v4763_v1, %v5092_v57  ;;  %v850_v57 = vrot.slane %v3886_v53, %v5072_v5  ;;  %4283 = vmatpush3.bf16.msra.mxu1 %v5175_v59  ;;  %v5218_v53 = vld [vmem:[%s5744_s9 + $0x3] ss:$0 sm:$0xff] }
 0x41b   :  { %4288 = vmatprep.subr.bf16.mxu1 %v4971_v55 }
 0x41c   :  { %v820_v11 = vsel %vm819_vm3, %v818_v10, %v796_v6  ;;  %v5190_v10 = vld [vmem:[%s5741_s6 + $0x34] ss:$8 sps:$4 sm:$0xff]  }
 0x41d   :  { %v4765_v8 = vpop.eup %4764 }
 0x41e   :  { %v816_v9 = vmul.f32 %v4765_v8, %v5097_v61 }
 0x420   :  { %v822_v12 = vsel %vm821_vm4, %v820_v11, %v816_v9  ;;  %v5196_v11 = vld [vmem:[%s5741_s6 + $0x24] ss:$8 sps:$4 sm:$0xff]  }
 0x421   :  { %v823_v13 = vpack.c.bf16 %v822_v12, %v822_v12  ;;  %v5203_v12 = vld [vmem:[%s5741_s6 + $0x14] ss:$8 sps:$4 sm:$0xff]  }
 0x423   :  { %966 = vmatmul.mubr.bf16.vlgmr.msra.gmra.mxu0 %v823_v13  ;;  %v5211_v13 = vld [vmem:[%s5741_s6 + $0x4] ss:$8 sps:$4 sm:$0xff]  }
 0x424   :  { %4308 = vmatprep.mubr.msk.f32.mxu0 %vm4972_vm6, %v4971_v55 }
 0x4e3   :  { %v967_v4 = vpop.f32.mrf.mxu0 }
 0x4e4   :  { %v5133_v27 = vadd.f32 %v967_v4, %v846_v26 }
 0x4e5   :  { %v969_v14 = vpop.f32.mrf.mxu0 }
 0x4e6   :  { %v5121_v15 = vadd.f32 %v969_v14, %v850_v57 }
 0x4e7   :  { %v971_v61 = vpop.f32.mrf.mxu0 }
 0x4e8   :  { %v990_v16 = vsel %vm989_vm5, %v5121_v15, -inf }
 0x4e9   :  { %v972_v17 = vpop.f32.mrf.mxu0  ;;  %991 = vmax.xlane.f32.xlu1 %v990_v16 }
 0x572   :  { %v992_v20 = vpop.xlane.xlu1 %991 }
 0x573   :  { %v993_v21 = vsub.f32 %v5121_v15, %v992_v20 }
 0x575   :  { %v994_v22 = vmul.f32 1.442695, %v993_v21 }
 0x577   :  { %4766 = vpow2.f32 %v994_v22 }
 0x584   :  { %v4767_v23 = vpop.eup %4766 }
 0x585   :  { %1016 = vperm.xlu1 %4605, %v4767_v23   ;;  %1006 = vperm.xlu0 %4604, %v4767_v23   ;;  %v996_v25 = vsel %vm989_vm5, %v4767_v23, 0.0 }
 0x589   :  { %4606 = vset.pattern.permute.xlu1 %v4969_v24  ;;  %4607 = vset.pattern.permute.xlu0 %v4965_v0 }
 0x58a   :  { %1026 = vperm.xlu1 %4606, %v4767_v23   ;;  %1001 = vperm.xlu0 %4607, %v4767_v23  }
 0x58e   :  { %4608 = vset.pattern.permute.xlu1 %v4968_v19 }
 0x5ae   :  { %997 = vadd.xlane.f32.xlu1 %v996_v25 }
 0x600   :  { %v1017_v28 = vpop.permute.xlu1 %1016  ;;  %v1007_v29 = vpop.permute.xlu0 %1006 }
 0x601   :  { %v1009_v30 = vmul.f32 %v1007_v29, %v5133_v27  ;;  %v1019_v31 = vmul.f32 %v1017_v28, %v5133_v27  ;;  %v5232_v28 = vld [vmem:[#allocation9 + $0x18] sm:$0xff]  ;;  %v5234_v29 = vld [vmem:[#allocation9 + $0x10] sm:$0xff] }
 0x602   :  { %4301 = vmatpush3.msra.mxu0 %v5232_v28 }
 0x603   :  { %1011 = vrot.lane.b32.xlu0 %v1009_v30, %s4966_s12  ;;  %4302 = vmatprep.subr.mxu0 %v4971_v55  ;;  %v5238_v30 = vld [vmem:[#allocation9 + $0x8] sm:$0xff] }
 0x604   :  { %4303 = vmatpush3.msra.mxu0 %v5234_v29 }
 0x605   :  { %v1027_v32 = vpop.permute.xlu1 %1026  ;;  %v1002_v35 = vpop.permute.xlu0 %1001  ;;  %4304 = vmatprep.subr.mxu0 %v4971_v55 }
 0x606   :  { %v1029_v33 = vmul.f32 %v1027_v32, %v5133_v27  ;;  %v1004_v37 = vmul.f32 %v1002_v35, %v5133_v27  ;;  %4305 = vmatpush3.msra.mxu0 %v5238_v30 }
 0x607   :  { %1021 = vrot.lane.b32.xlu0 %v1019_v31, %s4950_s16  ;;  %4306 = vmatprep.subr.mxu0 %v4971_v55  ;;  %v5244_v31 = vld [vmem:[#allocation9] sm:$0xff] }
 0x608   :  { %1031 = vrot.lane.b32.xlu1 %v1029_v33, %s4960_s17  ;;  %4307 = vmatpush3.msra.mxu0 %v5244_v31 }
 0x609   :  { %4330 = vmatprep.subr.mxu0 %v4971_v55 }
 0x637   :  { %v998_v34 = vpop.xlane.xlu1 %997 }
 0x638   :  { %4768 = vrcp.f32 %v998_v34 }
 0x645   :  { %v4769_v43 = vpop.eup %4768 }
 0x675   :  { %v1012_v36 = vpop.permute.xlu0 %1011 }
 0x676   :  { %v1014_v38 = vadd.f32 %v1012_v36, %v1004_v37  ;;  %v4974_v36 = vmov 4   ;;  %v5254_v37 = vld [vmem:[%s5744_s9 + $0x4] ss:$0 sm:$0xff] }
 0x679   :  { %v1022_v39 = vpop.permute.xlu0 %1021 }
 0x67a   :  { %v1024_v40 = vadd.f32 %v1022_v39, %v1014_v38  ;;  %v1032_v41 = vpop.permute.xlu1 %1031 }
 0x67c   :  { %v1034_v42 = vadd.f32 %v1032_v41, %v1024_v40 }
 0x67e   :  { %v1036_v45 = vmul.f32 %v4769_v43, %v1034_v42 }
 0x680   :  { %v1037_v46 = vadd.f32 %v1036_v45, %v988_v44 }
 0x682   :  { %v1038_v47 = vsel %vm741_vm1, %v1037_v46, 0.0 }
 0x683   :  { %1039 = vadd.xlane.f32.xlu0 %v1038_v47 }
 0x699   :  { %1052 = vrot.lane.b32.xlu0 %v1037_v46, %s4960_s17 }
 0x69d   :  { %1506 = vrot.lane.b32.xlu0 %v5121_v15, %s4970_s18  ;;  %s4975_s18 = smov 65  }
 0x70c   :  { %v1040_v48 = vpop.xlane.xlu0 %1039 }
 0x70d   :  { %v1041_v49 = vmul.f32 0.03125, %v1040_v48 }
 0x70f   :  { %v1042_v50 = vsub.f32 %v1037_v46, %v1041_v49 }
 0x710   :  { %v1053_v7 = vpop.permute.xlu0 %1052 }
 0x711   :  { %v1043_v51 = vmul.f32 %v1042_v50, %v1042_v50 }
 0x713   :  { %v1044_v52 = vsel %vm741_vm1, %v1043_v51, 0.0  ;;  %v5267_v51 = vld [vmem:[#allocation10 + $0x38] sm:$0xff] }
 0x714   :  { %1045 = vadd.xlane.f32.xlu1 %v1044_v52  ;;  %v1507_v21 = vpop.permute.xlu0 %1506  ;;  %v5271_v52 = vld [vmem:[#allocation10 + $0x30] sm:$0xff] }
 0x79d   :  { %v1046_v60 = vpop.xlane.xlu1 %1045 }
 0x79e   :  { %v1047_v62 = vmul.f32 0.03125, %v1046_v60  ;;  %v5275_v60 = vld [vmem:[#allocation10 + $0x28] sm:$0xff] }
 0x7a0   :  { %v1048_v1 = vadd.f32 1e-05, %v1047_v62 }
 0x7a2   :  { %4770 = vrsqrt.f32 %v1048_v1  ;;  %v5279_v1 = vld [vmem:[#allocation10 + $0x20] sm:$0xff] }
 0x7af   :  { %v4771_v3 = vpop.eup %4770 }
 0x7b0   :  { %v1050_v6 = vmul.f32 %v4771_v3, %v1042_v50  ;;  %v5281_v3 = vld [vmem:[#allocation10 + $0x18] sm:$0xff] }
 0x7b2   :  { %v1055_v8 = vsel %vm817_vm2, %v1050_v6, %v1053_v7  ;;  %v5286_v7 = vld [vmem:[#allocation10 + $0x10] sm:$0xff] }
 0x7b3   :  { %v1056_v9 = vpack.c.bf16 %v1055_v8, %v1055_v8  ;;  %v5292_v8 = vld [vmem:[#allocation10 + $0x8] sm:$0xff] }
 0x7b5   :  { %4285 = vmatmul.mubr.msk.bf16.vlgmr.msra.gmra.mxu1 %vm819_vm3, %v1056_v9  ;;  %v5295_v9 = vld [vmem:[#allocation10] sm:$0xff] }
 0x7b6   :  { %4296 = vmatprep.mubr.msk.bf16.mxu1 %vm4972_vm6, %v4971_v55  ;;  %4289 = vmatpush3.bf16.msra.mxu1 %v5190_v10 }
 0x7b7   :  { %4290 = vmatprep.subr.bf16.mxu1 %v4971_v55 }
 0x7ba   :  { %4291 = vmatpush3.bf16.msra.mxu1 %v5196_v11 }
 0x7bb   :  { %4292 = vmatprep.subr.bf16.mxu1 %v4971_v55 }
 0x7be   :  { %4293 = vmatpush3.bf16.msra.mxu1 %v5203_v12 }
 0x7bf   :  { %4294 = vmatprep.subr.bf16.mxu1 %v4971_v55 }
 0x7c2   :  { %4295 = vmatpush3.bf16.msra.mxu1 %v5211_v13 }
 0x7c3   :  { %4311 = vmatprep.subr.mxu1 %v4971_v55 }
 0x875   :  { %v1127_v57 = vpop.f32.mrf.mxu1 }
 0x876   :  { %v5221_v4 = vadd.f32 %v1127_v57, %v5218_v53 }
 0x877   :  { %v4286_v14 = vpop.f32.mrf.mxu1 }
 0x878   :  { %1510 = vrot.lane.b32.xlu0 %v5221_v4, %s4973_s11  ;;  %v1133_v61 = vmax.f32 %v5221_v4, 0.0 }
 0x879   :  { %v1130_v16 = vpop.f32.mrf.mxu1 }
 0x87a   :  { %v1134_v17 = vpack.c.bf16 %v1133_v61, %v1133_v61 }
 0x87b   :  { %v4287_v20 = vpop.f32.mrf.mxu1 }
 0x87c   :  { %1144 = vrot.lane.b32.xlu1 %v1134_v17, %s4966_s12 }
 0x8ea   :  { %v1511_v22 = vpop.permute.xlu0 %1510 }
 0x8eb   :  { %v1514_v23 = vsel %vm1513_vm7, %v1507_v21, %v1511_v22 }
 0x8ec   :  { %v1516_v25 = vsel %vm1515_vm8, %v1514_v23, -inf }
 0x8ed   :  { %1517 = vmax.xlane.f32.xlu0 %v1516_v25 }
 0x8ee   :  { %v1145_v26 = vpop.permute.xlu1 %1144 }
 0x8ef   :  { %4297 = vmatmul.mubr.msk.bf16.vlgmr.msra.gmra.mxu1 %vm819_vm3, %v1145_v26 }
 0x8f0   :  { %4327 = vmatprep.mubr.msk.f32.mxu1 %vm4972_vm6, %v4971_v55  ;;  %4312 = vmatpush3.msra.mxu1 %v5267_v51 }
 0x8f1   :  { %4313 = vmatprep.subr.mxu1 %v4971_v55 }
 0x8f2   :  { %4314 = vmatpush3.msra.mxu1 %v5271_v52 }
 0x8f3   :  { %4315 = vmatprep.subr.mxu1 %v4971_v55 }
 0x8f4   :  { %4316 = vmatpush3.msra.mxu1 %v5275_v60 }
 0x8f5   :  { %4317 = vmatprep.subr.mxu1 %v4971_v55 }
 0x8f6   :  { %4318 = vmatpush3.msra.mxu1 %v5279_v1 }
 0x8f7   :  { %4319 = vmatprep.subr.mxu1 %v4971_v55 }
 0x8f8   :  { %4320 = vmatpush3.msra.mxu1 %v5281_v3 }
 0x8f9   :  { %4321 = vmatprep.subr.mxu1 %v4971_v55 }
 0x8fa   :  { %4322 = vmatpush3.msra.mxu1 %v5286_v7 }
 0x8fb   :  { %4323 = vmatprep.subr.mxu1 %v4971_v55 }
 0x8fc   :  { %4324 = vmatpush3.msra.mxu1 %v5292_v8 }
 0x8fd   :  { %4325 = vmatprep.subr.mxu1 %v4971_v55 }
 0x8fe   :  { %4326 = vmatpush3.msra.mxu1 %v5295_v9 }
 0x8ff   :  { %4349 = vmatprep.subr.bf16.mxu1 %v4971_v55 }
 0x976   :  { %v1518_v32 = vpop.xlane.xlu0 %1517 }
 0x977   :  { %v1519_v33 = vsub.f32 %v1514_v23, %v1518_v32 }
 0x979   :  { %v1520_v34 = vmul.f32 1.442695, %v1519_v33 }
 0x97b   :  { %4772 = vpow2.f32 %v1520_v34 }
 0x988   :  { %v4773_v35 = vpop.eup %4772 }
 0x989   :  { %1527 = vperm.xlu0 %4607, %v4773_v35   ;;  %1532 = vperm.xlu1 %4608, %v4773_v35   ;;  %v1522_v43 = vsel %vm1515_vm8, %v4773_v35, 0.0  ;;  %vm2393_vm8 = vcmask 48128  }
 0x98d   :  { %4609 = vset.pattern.permute.xlu1 %v4967_v18 }
 0x98e   :  { %1542 = vperm.xlu1 %4609, %v4773_v35  }
 0x992   :  { %4610 = vset.pattern.permute.xlu1 %v4969_v24 }
 0x993   :  { %1552 = vperm.xlu1 %4610, %v4773_v35  }
 0x997   :  { %4611 = vset.pattern.permute.xlu1 %v4974_v36 }
 0x9af   :  { %v1207_v38 = vpop.f32.mrf.mxu1 }
 0x9b0   :  { %v1214_v39 = vadd.f32 %v5254_v37, %v1207_v38 }
 0x9b1   :  { %v4298_v40 = vpop.f32.mrf.mxu1 }
 0x9b2   :  { %4309 = vmatmul.mubr.msk.f32.vlgmr.msra.gmra.mxu0 %vm817_vm2, %v1214_v39  ;;  %v1504_v39 = vld [vmem:[%s5744_s9 + $0x24] ss:$0 sm:$0xff] }
 0x9b3   :  { %v1210_v41 = vpop.f32.mrf.mxu1  ;;  %4346 = vmatprep.mubr.msk.f32.mxu0 %vm4972_vm6, %v4971_v55 }
 0x9b5   :  { %v4299_v42 = vpop.f32.mrf.mxu1 }
 0x9b7   :  { %1523 = vadd.xlane.f32.xlu1 %v1522_v43 }
 0x9c8   :  { %1562 = vperm.xlu1 %4611, %v4773_v35  }
 0x9cc   :  { %4615 = vset.pattern.permute.xlu1 %v4965_v0 }
 0xa04   :  { %v1533_v44 = vpop.permute.xlu1 %1532  ;;  %v1528_v57 = vpop.permute.xlu0 %1527 }
 0xa05   :  { %v1535_v45 = vmul.f32 %v1533_v44, %v5133_v27  ;;  %v1530_v17 = vmul.f32 %v1528_v57, %v5133_v27 }
 0xa07   :  { %1537 = vrot.lane.b32.xlu0 %v1535_v45, %s4966_s12 }
 0xa09   :  { %v1543_v46 = vpop.permute.xlu1 %1542 }
 0xa0a   :  { %v1545_v47 = vmul.f32 %v1543_v46, %v5133_v27 }
 0xa0c   :  { %1547 = vrot.lane.b32.xlu0 %v1545_v47, %s4950_s16 }
 0xa0e   :  { %v1553_v62 = vpop.permute.xlu1 %1552 }
 0xa0f   :  { %v1555_v6 = vmul.f32 %v1553_v62, %v5133_v27 }
 0xa40   :  { %v1524_v61 = vpop.xlane.xlu1 %1523 }
 0xa41   :  { %4774 = vrcp.f32 %v1524_v61 }
 0xa44   :  { %v1563_v23 = vpop.permute.xlu1 %1562 }
 0xa45   :  { %v1565_v33 = vmul.f32 %v1563_v23, %v5221_v4 }
 0xa4e   :  { %v4775_v38 = vpop.eup %4774 }
 0xa72   :  { %v1284_v48 = vpop.f32.mrf.mxu0 }
 0xa73   :  { %v1289_v49 = vsel %vm1288_vm9, %v1284_v48, -inf }
 0xa74   :  { %v4310_v50 = vpop.f32.mrf.mxu0  ;;  %1290 = vmax.xlane.f32.xlu0 %v1289_v49 }
 0xa79   :  { %v1538_v14 = vpop.permute.xlu0 %1537 }
 0xa7a   :  { %v1540_v21 = vadd.f32 %v1538_v14, %v1530_v17 }
 0xa7e   :  { %v1548_v16 = vpop.permute.xlu0 %1547 }
 0xa7f   :  { %v1550_v25 = vadd.f32 %v1548_v16, %v1540_v21  ;;  %v5336_v21 = vld [vmem:[%s5736_s1] sm:$0x3] }
 0xa8a   :  { %1557 = vrot.lane.b32.xlu0 %v1555_v6, %s4960_s17 }
 0xafd   :  { %v1291_v20 = vpop.xlane.xlu0 %1290 }
 0xafe   :  { %v1292_v22 = vsub.f32 %v1284_v48, %v1291_v20 }
 0xb00   :  { %v1293_v26 = vmul.f32 1.442695, %v1292_v22 }
 0xb01   :  { %v1558_v32 = vpop.permute.xlu0 %1557 }
 0xb02   :  { %4776 = vpow2.f32 %v1293_v26  ;;  %v1560_v34 = vadd.f32 %v1558_v32, %v1550_v25 }
 0xb04   :  { %v1566_v35 = vadd.f32 %v1565_v33, %v1560_v34 }
 0xb06   :  { %v1568_v40 = vmul.f32 %v4775_v38, %v1566_v35 }
 0xb08   :  { %v1569_v41 = vadd.f32 %v1568_v40, %v1504_v39 }
 0xb0a   :  { %v1570_v42 = vsel %vm741_vm1, %v1569_v41, 0.0 }
 0xb0b   :  { %1571 = vadd.xlane.f32.xlu0 %v1570_v42 }
 0xb0f   :  { %v4777_v43 = vpop.eup %4776 }
 0xb10   :  { %4328 = vmatmul.mubr.msk.f32.vlgmr.msra.gmra.mxu1 %vm819_vm3, %v4777_v43 }
 0xb11   :  { %4350 = vmatpush3.bf16.msra.mxu1 %v5152_v54  ;;  %4357 = vmatprep.mubr.msk.bf16.mxu1 %vm4972_vm6, %v4971_v55 }
 0xb12   :  { %4351 = vmatprep.subr.bf16.mxu1 %v4971_v55 }
 0xb15   :  { %4352 = vmatpush3.bf16.msra.mxu1 %v5161_v56 }
 0xb16   :  { %4353 = vmatprep.subr.bf16.mxu1 %v4971_v55 }
 0xb19   :  { %4354 = vmatpush3.bf16.msra.mxu1 %v5168_v58 }
 0xb1a   :  { %4355 = vmatprep.subr.bf16.mxu1 %v4971_v55 }
 0xb1d   :  { %4356 = vmatpush3.bf16.msra.mxu1 %v5175_v59 }
 0xb1e   :  { %4373 = vmatprep.subr.mxu1 %v4971_v55 }
 0xb21   :  { %1584 = vrot.lane.b32.xlu0 %v1569_v41, %s4960_s17 }
 0xb94   :  { %v1572_v44 = vpop.xlane.xlu0 %1571 }
 0xb95   :  { %v1573_v45 = vmul.f32 0.03125, %v1572_v44 }
 0xb97   :  { %v1574_v46 = vsub.f32 %v1569_v41, %v1573_v45 }
 0xb98   :  { %v1585_v16 = vpop.permute.xlu0 %1584 }
 0xb99   :  { %v1575_v47 = vmul.f32 %v1574_v46, %v1574_v46 }
 0xb9b   :  { %v1576_v48 = vsel %vm741_vm1, %v1575_v47, 0.0 }
 0xb9c   :  { %1577 = vadd.xlane.f32.xlu1 %v1576_v48 }
 0xbd0   :  { %v1364_v49 = vpop.f32.mrf.mxu1 }
 0xbd1   :  { %1370 = vrot.lane.b32.xlu1 %v1364_v49, %s4975_s18 }
 0xbd2   :  { %v4329_v50 = vpop.f32.mrf.mxu1 }
 0xbd5   :  { %1419 = vrot.lane.b32.xlu1 %v5271_v52, %s4950_s16 }
 0xbd9   :  { %1417 = vrot.lane.b32.xlu1 %v5275_v60, %s4950_s16 }
 0xbdd   :  { %1413 = vrot.lane.b32.xlu1 %v5281_v3, %s4950_s16 }
 0xc25   :  { %v1578_v62 = vpop.xlane.xlu1 %1577 }
 0xc26   :  { %v1579_v6 = vmul.f32 0.03125, %v1578_v62 }
 0xc28   :  { %v1580_v57 = vadd.f32 1e-05, %v1579_v6 }
 0xc2a   :  { %4778 = vrsqrt.f32 %v1580_v57 }
 0xc37   :  { %v4779_v14 = vpop.eup %4778 }
 0xc38   :  { %v1582_v61 = vmul.f32 %v4779_v14, %v1574_v46 }
 0xc3a   :  { %v1587_v17 = vsel %vm817_vm2, %v1582_v61, %v1585_v16 }
 0xc3b   :  { %v1588_v20 = vpack.c.bf16 %v1587_v17, %v1587_v17 }
 0xc3d   :  { %4358 = vmatmul.mubr.msk.bf16.vlgmr.msra.gmra.mxu1 %vm819_vm3, %v1588_v20  ;;  %v5394_v20 = vand.u32 127, %v150_v63 }
 0xc3e   :  { %4374 = vmatpush3.msra.mxu1 %v5232_v28  ;;  %4381 = vmatprep.mubr.msk.f32.mxu1 %vm4972_vm6, %v4971_v55 }
 0xc3f   :  { %4375 = vmatprep.subr.mxu1 %v4971_v55 }
 0xc40   :  { %4376 = vmatpush3.msra.mxu1 %v5234_v29 }
 0xc41   :  { %4377 = vmatprep.subr.mxu1 %v4971_v55 }
 0xc42   :  { %4378 = vmatpush3.msra.mxu1 %v5238_v30 }
 0xc43   :  { %v1371_v22 = vpop.permute.xlu1 %1370  ;;  %4379 = vmatprep.subr.mxu1 %v4971_v55 }
 0xc44   :  { %v1373_v23 = vmul.f32 %v1371_v22, %v5336_v21  ;;  %4380 = vmatpush3.msra.mxu1 %v5244_v31 }
 0xc45   :  { %4403 = vmatprep.subr.mxu1 %v4971_v55 }
 0xc46   :  { %1376 = vperm.xlu0 %4607, %v1373_v23  }
 0xc47   :  { %v5351_v25 = vpop.permute.xlu1 %1419 }
 0xc4a   :  { %1421 = vrot.lane.b32.xlu0 %v5267_v51, %s4950_s16 }
 0xc4b   :  { %4612 = vset.pattern.permute.xlu0 %v4968_v19  ;;  %v5358_v39 = vpop.permute.xlu1 %1417 }
 0xc4e   :  { %1415 = vrot.lane.b32.xlu0 %v5279_v1, %s4950_s16 }
 0xc4f   :  { %v5367_v43 = vpop.permute.xlu1 %1413 }
 0xc52   :  { %1411 = vrot.lane.b32.xlu0 %v5286_v7, %s4950_s16 }
 0xcc1   :  { %v1377_v26 = vpop.permute.xlu0 %1376 }
 0xcc2   :  { %vm1379_vm10 = vcmp.lt.f32.partialorder %v1364_v49, %v1377_v26 }
 0xcc3   :  { %v1380_v32 = vsel %vm1379_vm10, 1, %v4965_v0  ;;  %vm2395_vm10 = vcmask 50176  }
 0xcc4   :  { %v1381_v33 = vsel %vm1288_vm9, %v1380_v32, 0 }
 0xcc5   :  { %v1383_v34 = vshrl.u32 %v1381_v33, 16  ;;  %v1382_v35 = vand.u32 65535, %v1381_v33  ;;  %v5355_v38 = vpop.permute.xlu0 %1421 }
 0xcc6   :  { %4331 = vmatpush3.msra.mxu0 %v5355_v38 }
 0xcc7   :  { %v1385_v40 = vcvt.s32.f32 %v1383_v34  ;;  %v1384_v41 = vcvt.s32.f32 %v1382_v35  ;;  %4332 = vmatprep.subr.mxu0 %v4971_v55 }
 0xcc8   :  { %4333 = vmatpush3.msra.mxu0 %v5351_v25 }
 0xcc9   :  { %1388 = vadd.xlane.f32.xlu1 %v1385_v40  ;;  %1386 = vadd.xlane.f32.xlu0 %v1384_v41  ;;  %v5363_v42 = vpop.permute.xlu0 %1415 }
 0xcca   :  { %4334 = vmatprep.subr.mxu0 %v4971_v55 }
 0xccb   :  { %4335 = vmatpush3.msra.mxu0 %v5358_v39 }
 0xccc   :  { %4336 = vmatprep.subr.mxu0 %v4971_v55 }
 0xccd   :  { %4337 = vmatpush3.msra.mxu0 %v5363_v42  ;;  %v5371_v44 = vpop.permute.xlu0 %1411 }
 0xcce   :  { %4338 = vmatprep.subr.mxu0 %v4971_v55 }
 0xccf   :  { %4339 = vmatpush3.msra.mxu0 %v5367_v43 }
 0xcd0   :  { %4340 = vmatprep.subr.mxu0 %v4971_v55 }
 0xcd1   :  { %4341 = vmatpush3.msra.mxu0 %v5371_v44 }
 0xcd2   :  { %4342 = vmatprep.subr.mxu0 %v4971_v55 }
 0xcda   :  { %1409 = vrot.lane.b32.xlu1 %v5292_v8, %s4950_s16 }
 0xcdf   :  { %1407 = vrot.lane.b32.xlu0 %v5295_v9, %s4950_s16 }
 0xce3   :  { %1937 = vrot.lane.b32.xlu0 %v5121_v15, %s4976_s21 }
 0xcfd   :  { %v1626_v45 = vpop.f32.mrf.mxu1 }
 0xcfe   :  { %v5383_v46 = vadd.f32 %v1626_v45, %v5218_v53 }
 0xcff   :  { %v4359_v47 = vpop.f32.mrf.mxu1 }
 0xd00   :  { %1944 = vrot.lane.b32.xlu0 %v5383_v46, %s4973_s11  ;;  %v1632_v48 = vmax.f32 %v5383_v46, 0.0 }
 0xd01   :  { %v1629_v49 = vpop.f32.mrf.mxu1 }
 0xd02   :  { %v1633_v50 = vpack.c.bf16 %v1632_v48, %v1632_v48 }
 0xd03   :  { %v4360_v62 = vpop.f32.mrf.mxu1 }
 0xd04   :  { %1635 = vrot.lane.b32.xlu1 %v1633_v50, %s4966_s12 }
 0xd08   :  { %1940 = vrot.lane.b32.xlu1 %v5221_v4, %s4977_s2 }
 0xd52   :  { %v1389_v6 = vpop.xlane.xlu1 %1388  ;;  %v1387_v57 = vpop.xlane.xlu0 %1386 }
 0xd53   :  { %v1391_v14 = vcvt.f32.s32 %v1389_v6  ;;  %v1390_v16 = vcvt.f32.s32 %v1387_v57  ;;  %v5746_v57 = vmov 5  }
 0xd55   :  { %v1392_v61 = vshll.u32 %v1391_v14, 16 }
 0xd56   :  { %v5391_v17 = vpop.permute.xlu1 %1409  ;;  %v5397_v23 = vpop.permute.xlu0 %1407 }
 0xd57   :  { %v1393_v22 = vadd.s32 %v1392_v61, %v1390_v16  ;;  %4343 = vmatpush3.msra.mxu0 %v5391_v17 }
 0xd58   :  { %4344 = vmatprep.subr.mxu0 %v4971_v55 }
 0xd59   :  { %vm1394_vm11 = vcmp.lt.s32.totalorder %v1393_v22, 63  ;;  %4345 = vmatpush3.msra.mxu0 %v5397_v23 }
 0xd5a   :  { %v1395_v26 = vsel %vm1394_vm11, %v1393_v22, 63  ;;  %4361 = vmatprep.subr.bf16.mxu0 %v4971_v55  ;;  %v1938_v33 = vpop.permute.xlu0 %1937 }
 0xd5b   :  { %vm1396_vm12 = vcmp.eq.s32.totalorder %v5394_v20, %v1395_v26 }
 0xd5c   :  { %v3915_v32 = vsel %vm1396_vm12, 1.0, %v4971_v55 }
 0xd5d   :  { %4347 = vmatmul.mubr.msk.f32.vlgmr.msra.gmra.mxu0 %vm819_vm3, %v3915_v32 }
 0xd5e   :  { %4362 = vmatpush3.bf16.msra.mxu0 %v5190_v10  ;;  %4369 = vmatprep.mubr.msk.bf16.mxu0 %vm4972_vm6, %v4971_v55 }
 0xd5f   :  { %4363 = vmatprep.subr.bf16.mxu0 %v4971_v55 }
 0xd62   :  { %4364 = vmatpush3.bf16.msra.mxu0 %v5196_v11 }
 0xd63   :  { %4365 = vmatprep.subr.bf16.mxu0 %v4971_v55 }
 0xd66   :  { %4366 = vmatpush3.bf16.msra.mxu0 %v5203_v12 }
 0xd67   :  { %4367 = vmatprep.subr.bf16.mxu0 %v4971_v55 }
 0xd6a   :  { %4368 = vmatpush3.bf16.msra.mxu0 %v5211_v13 }
 0xd6b   :  { %4384 = vmatprep.subr.mxu0 %v4971_v55 }
 0xd72   :  { %v1945_v35 = vpop.permute.xlu0 %1944 }
 0xd76   :  { %v1636_v63 = vpop.permute.xlu1 %1635 }
 0xd77   :  { %4370 = vmatmul.mubr.msk.bf16.vlgmr.msra.gmra.mxu0 %vm819_vm3, %v1636_v63 }
 0xd78   :  { %4385 = vmatpush3.msra.mxu0 %v5267_v51  ;;  %4400 = vmatprep.mubr.msk.f32.mxu0 %vm4972_vm6, %v4971_v55 }
 0xd79   :  { %4386 = vmatprep.subr.mxu0 %v4971_v55 }
 0xd7a   :  { %v1941_v34 = vpop.permute.xlu1 %1940  ;;  %4387 = vmatpush3.msra.mxu0 %v5271_v52 }
 0xd7b   :  { %v1947_v40 = vsel %vm1513_vm7, %v1938_v33, %v1941_v34  ;;  %4388 = vmatprep.subr.mxu0 %v4971_v55 }
 0xd7c   :  { %v1949_v41 = vsel %vm1948_vm13, %v1947_v40, %v1945_v35  ;;  %4389 = vmatpush3.msra.mxu0 %v5275_v60 }
 0xd7d   :  { %v1951_v45 = vsel %vm1950_vm14, %v1949_v41, -inf  ;;  %4390 = vmatprep.subr.mxu0 %v4971_v55 }
 0xd7e   :  { %1952 = vmax.xlane.f32.xlu1 %v1951_v45  ;;  %4391 = vmatpush3.msra.mxu0 %v5279_v1 }
 0xd7f   :  { %4392 = vmatprep.subr.mxu0 %v4971_v55 }
 0xd80   :  { %4393 = vmatpush3.msra.mxu0 %v5281_v3 }
 0xd81   :  { %4394 = vmatprep.subr.mxu0 %v4971_v55 }
 0xd82   :  { %4395 = vmatpush3.msra.mxu0 %v5286_v7 }
 0xd83   :  { %4396 = vmatprep.subr.mxu0 %v4971_v55 }
 0xd84   :  { %4397 = vmatpush3.msra.mxu0 %v5292_v8 }
 0xd85   :  { %4398 = vmatprep.subr.mxu0 %v4971_v55 }
 0xd86   :  { %4399 = vmatpush3.msra.mxu0 %v5295_v9 }
 0xd87   :  { %4422 = vmatprep.subr.bf16.mxu0 %v4971_v55 }
 0xe07   :  { %v1953_v47 = vpop.xlane.xlu1 %1952 }
 0xe08   :  { %v1954_v48 = vsub.f32 %v1949_v41, %v1953_v47 }
 0xe0a   :  { %v1955_v49 = vmul.f32 1.442695, %v1954_v48 }
 0xe0c   :  { %4780 = vpow2.f32 %v1955_v49 }
 0xe19   :  { %v4781_v50 = vpop.eup %4780 }
 0xe1a   :  { %1962 = vperm.xlu1 %4615, %v4781_v50   ;;  %1967 = vperm.xlu0 %4612, %v4781_v50  }
 0xe1d   :  { %v5437_v62 = vpop.f32.mrf.mxu0 }
 0xe1e   :  { %4613 = vset.pattern.permute.xlu0 %v4967_v18  ;;  %4618 = vset.pattern.permute.xlu1 %v4968_v19 }
 0xe1f   :  { %v4348_v6 = vpop.f32.mrf.mxu0  ;;  %1977 = vperm.xlu0 %4613, %v4781_v50  }
 0xe23   :  { %4614 = vset.pattern.permute.xlu0 %v4969_v24 }
 0xe24   :  { %1987 = vperm.xlu0 %4614, %v4781_v50  }
 0xe28   :  { %4616 = vset.pattern.permute.xlu0 %v4974_v36 }
 0xe29   :  { %1997 = vperm.xlu0 %4616, %v4781_v50  }
 0xe2d   :  { %4617 = vset.pattern.permute.xlu0 %v5746_v57 }
 0xe2e   :  { %2003 = vperm.xlu0 %4617, %v4781_v50  }
 0xe32   :  { %4619 = vset.pattern.permute.xlu0 %v4968_v19  ;;  %v1957_v19 = vsel %vm1950_vm14, %v4781_v50, 0.0 }
 0xe37   :  { %v1674_v14 = vpop.f32.mrf.mxu0 }
 0xe38   :  { %v1680_v61 = vadd.f32 %v1674_v14, %v5254_v37 }
 0xe39   :  { %v4371_v16 = vpop.f32.mrf.mxu0 }
 0xe3a   :  { %4382 = vmatmul.mubr.msk.f32.vlgmr.msra.gmra.mxu1 %vm817_vm2, %v1680_v61 }
 0xe3b   :  { %4404 = vmatpush3.msra.mxu1 %v5355_v38  ;;  %v1677_v22 = vpop.f32.mrf.mxu0  ;;  %4419 = vmatprep.mubr.msk.f32.mxu1 %vm4972_vm6, %v4971_v55 }
 0xe3c   :  { %4405 = vmatprep.subr.mxu1 %v4971_v55 }
 0xe3d   :  { %4406 = vmatpush3.msra.mxu1 %v5351_v25  ;;  %v4372_v26 = vpop.f32.mrf.mxu0 }
 0xe3e   :  { %4407 = vmatprep.subr.mxu1 %v4971_v55 }
 0xe3f   :  { %4408 = vmatpush3.msra.mxu1 %v5358_v39 }
 0xe40   :  { %4409 = vmatprep.subr.mxu1 %v4971_v55 }
 0xe41   :  { %4410 = vmatpush3.msra.mxu1 %v5363_v42 }
 0xe42   :  { %4411 = vmatprep.subr.mxu1 %v4971_v55 }
 0xe43   :  { %4412 = vmatpush3.msra.mxu1 %v5367_v43 }
 0xe44   :  { %4413 = vmatprep.subr.mxu1 %v4971_v55 }
 0xe45   :  { %4414 = vmatpush3.msra.mxu1 %v5371_v44 }
 0xe46   :  { %4415 = vmatprep.subr.mxu1 %v4971_v55 }
 0xe47   :  { %4416 = vmatpush3.msra.mxu1 %v5391_v17 }
 0xe48   :  { %4417 = vmatprep.subr.mxu1 %v4971_v55 }
 0xe49   :  { %4418 = vmatpush3.msra.mxu1 %v5397_v23 }
 0xe4a   :  { %4434 = vmatprep.subr.bf16.mxu1 %v4971_v55 }
 0xe4d   :  { %1958 = vadd.xlane.f32.xlu0 %v1957_v19 }
 0xe95   :  { %v1968_v32 = vpop.permute.xlu0 %1967  ;;  %v1963_v49 = vpop.permute.xlu1 %1962 }
 0xe96   :  { %v1970_v63 = vmul.f32 %v1968_v32, %v5133_v27  ;;  %v1965_v16 = vmul.f32 %v1963_v49, %v5133_v27 }
 0xe98   :  { %1972 = vrot.lane.b32.xlu1 %v1970_v63, %s4966_s12 }
 0xe9a   :  { %v1978_v33 = vpop.permute.xlu0 %1977 }
 0xe9b   :  { %v1980_v47 = vmul.f32 %v1978_v33, %v5133_v27 }
 0xe9f   :  { %v1988_v34 = vpop.permute.xlu0 %1987 }
 0xea0   :  { %v1990_v35 = vmul.f32 %v1988_v34, %v5133_v27 }
 0xea2   :  { %1992 = vrot.lane.b32.xlu0 %v1990_v35, %s4960_s17 }
 0xea4   :  { %v1998_v48 = vpop.permute.xlu0 %1997 }
 0xea5   :  { %v2000_v33 = vmul.f32 %v1998_v48, %v5221_v4 }
 0xea9   :  { %v2004_v50 = vpop.permute.xlu0 %2003 }
 0xed6   :  { %v1959_v6 = vpop.xlane.xlu0 %1958 }
 0xed7   :  { %4782 = vrcp.f32 %v1959_v6  ;;  %v1936_v6 = vld [vmem:[%s5744_s9 + $0x25] ss:$0 sm:$0xff] }
 0xee4   :  { %v4783_v57 = vpop.eup %4782 }
 0xefa   :  { %v1750_v40 = vpop.f32.mrf.mxu1 }
 0xefb   :  { %v1754_v41 = vsel %vm1288_vm9, %v1750_v40, -inf }
 0xefc   :  { %v4383_v45 = vpop.f32.mrf.mxu1  ;;  %1755 = vmax.xlane.f32.xlu1 %v1754_v41  ;;  %v2006_v41 = vmul.f32 %v2004_v50, %v5383_v46 }
 0xf0a   :  { %v1973_v14 = vpop.permute.xlu1 %1972 }
 0xf0b   :  { %v1975_v26 = vadd.f32 %v1973_v14, %v1965_v16 }
 0xf0d   :  { %1982 = vrot.lane.b32.xlu1 %v1980_v47, %s4950_s16 }
 0xf14   :  { %v1993_v34 = vpop.permute.xlu0 %1992 }
 0xf85   :  { %v1756_v61 = vpop.xlane.xlu1 %1755 }
 0xf86   :  { %v1757_v22 = vsub.f32 %v1750_v40, %v1756_v61 }
 0xf88   :  { %v1758_v19 = vmul.f32 1.442695, %v1757_v22 }
 0xf89   :  { %v1983_v32 = vpop.permute.xlu1 %1982 }
 0xf8a   :  { %4784 = vpow2.f32 %v1758_v19  ;;  %v1985_v63 = vadd.f32 %v1983_v32, %v1975_v26 }
 0xf8c   :  { %v1995_v35 = vadd.f32 %v1993_v34, %v1985_v63 }
 0xf8e   :  { %v2001_v45 = vadd.f32 %v2000_v33, %v1995_v35 }
 0xf90   :  { %v2007_v47 = vadd.f32 %v2006_v41, %v2001_v45 }
 0xf92   :  { %v2009_v49 = vmul.f32 %v4783_v57, %v2007_v47 }
 0xf94   :  { %v2010_v40 = vadd.f32 %v2009_v49, %v1936_v6 }
 0xf96   :  { %v2011_v14 = vsel %vm741_vm1, %v2010_v40, 0.0 }
 0xf97   :  { %v4785_v61 = vpop.eup %4784  ;;  %2012 = vadd.xlane.f32.xlu1 %v2011_v14 }
 0xf98   :  { %4401 = vmatmul.mubr.msk.f32.vlgmr.msra.gmra.mxu0 %vm819_vm3, %v4785_v61 }
 0xf99   :  { %4423 = vmatpush3.bf16.msra.mxu0 %v5152_v54  ;;  %4430 = vmatprep.mubr.msk.bf16.mxu0 %vm4972_vm6, %v4971_v55 }
 0xf9a   :  { %4424 = vmatprep.subr.bf16.mxu0 %v4971_v55 }
 0xf9d   :  { %4425 = vmatpush3.bf16.msra.mxu0 %v5161_v56 }
 0xf9e   :  { %4426 = vmatprep.subr.bf16.mxu0 %v4971_v55 }
 0xfa1   :  { %4427 = vmatpush3.bf16.msra.mxu0 %v5168_v58 }
 0xfa2   :  { %4428 = vmatprep.subr.bf16.mxu0 %v4971_v55 }
 0xfa5   :  { %4429 = vmatpush3.bf16.msra.mxu0 %v5175_v59 }
 0xfa6   :  { %4446 = vmatprep.subr.mxu0 %v4971_v55 }
0x1020   :  { %v2013_v57 = vpop.xlane.xlu1 %2012 }
0x1021   :  { %v2014_v48 = vmul.f32 0.03125, %v2013_v57 }
0x1023   :  { %v2015_v54 = vsub.f32 %v2010_v40, %v2014_v48 }
0x1025   :  { %v2016_v50 = vmul.f32 %v2015_v54, %v2015_v54 }
0x1027   :  { %v2017_v16 = vsel %vm741_vm1, %v2016_v50, 0.0 }
0x1028   :  { %2018 = vadd.xlane.f32.xlu0 %v2017_v16 }
0x103e   :  { %2025 = vrot.lane.b32.xlu0 %v2010_v40, %s4960_s17 }
0x1058   :  { %v1829_v56 = vpop.f32.mrf.mxu0 }
0x1059   :  { %1834 = vrot.lane.b32.xlu1 %v1829_v56, %s4979_s24 }
0x105a   :  { %v4402_v22 = vpop.f32.mrf.mxu0 }
0x10b1   :  { %v2019_v58 = vpop.xlane.xlu0 %2018 }
0x10b2   :  { %v2020_v26 = vmul.f32 0.03125, %v2019_v58 }
0x10b4   :  { %v2021_v19 = vadd.f32 1e-05, %v2020_v26 }
0x10b5   :  { %v2026_v63 = vpop.permute.xlu0 %2025 }
0x10b6   :  { %4786 = vrsqrt.f32 %v2021_v19 }
0x10c3   :  { %v4787_v59 = vpop.eup %4786 }
0x10c4   :  { %v2023_v32 = vmul.f32 %v4787_v59, %v2015_v54 }
0x10c6   :  { %v2028_v34 = vsel %vm817_vm2, %v2023_v32, %v2026_v63 }
0x10c7   :  { %v2029_v33 = vpack.c.bf16 %v2028_v34, %v2028_v34 }
0x10c9   :  { %4431 = vmatmul.mubr.msk.bf16.vlgmr.msra.gmra.mxu0 %vm819_vm3, %v2029_v33 }
0x10ca   :  { %4447 = vmatpush3.msra.mxu0 %v5232_v28  ;;  %4454 = vmatprep.mubr.msk.f32.mxu0 %vm4972_vm6, %v4971_v55 }
0x10cb   :  { %v1835_v35 = vpop.permute.xlu1 %1834  ;;  %4448 = vmatprep.subr.mxu0 %v4971_v55 }
0x10cc   :  { %v1837_v41 = vmul.f32 %v1835_v35, %v5336_v21  ;;  %4449 = vmatpush3.msra.mxu0 %v5234_v29 }
0x10cd   :  { %4450 = vmatprep.subr.mxu0 %v4971_v55 }
0x10ce   :  { %1840 = vperm.xlu1 %4618, %v1837_v41   ;;  %4451 = vmatpush3.msra.mxu0 %v5238_v30 }
0x10cf   :  { %4452 = vmatprep.subr.mxu0 %v4971_v55 }
0x10d0   :  { %4453 = vmatpush3.msra.mxu0 %v5244_v31 }
0x10d1   :  { %4476 = vmatprep.subr.mxu0 %v4971_v55 }
0x10d2   :  { %4622 = vset.pattern.permute.xlu1 %v4965_v0 }
0x1149   :  { %v1841_v28 = vpop.permute.xlu1 %1840 }
0x114a   :  { %vm1843_vm15 = vcmp.lt.f32.partialorder %v1829_v56, %v1841_v28 }
0x114b   :  { %v1844_v45 = vsel %vm1843_vm15, 1, %v4965_v0 }
0x114c   :  { %v1845_v47 = vsel %vm1288_vm9, %v1844_v45, 0 }
0x114d   :  { %v1847_v29 = vshrl.u32 %v1845_v47, 16  ;;  %v1846_v6 = vand.u32 65535, %v1845_v47 }
0x114f   :  { %v1849_v49 = vcvt.s32.f32 %v1847_v29  ;;  %v1848_v40 = vcvt.s32.f32 %v1846_v6 }
0x1151   :  { %1852 = vadd.xlane.f32.xlu0 %v1849_v49  ;;  %1850 = vadd.xlane.f32.xlu1 %v1848_v40 }
0x1162   :  { %2378 = vrot.lane.b32.xlu1 %v5121_v15, %s4980_s25  ;;  %s4984_s25 = smov 68  }
0x1166   :  { %2384 = vrot.lane.b32.xlu1 %v5383_v46, %s4977_s2 }
0x1189   :  { %v2067_v30 = vpop.f32.mrf.mxu0 }
0x118a   :  { %v5513_v31 = vadd.f32 %v2067_v30, %v5218_v53 }
0x118b   :  { %v4432_v14 = vpop.f32.mrf.mxu0 }
0x118c   :  { %v2073_v61 = vmax.f32 %v5513_v31, 0.0 }
0x118d   :  { %v2070_v57 = vpop.f32.mrf.mxu0 }
0x118e   :  { %v2074_v48 = vpack.c.bf16 %v2073_v61, %v2073_v61 }
0x118f   :  { %v4433_v54 = vpop.f32.mrf.mxu0 }
0x1190   :  { %2076 = vrot.lane.b32.xlu0 %v2074_v48, %s4966_s12 }
0x1194   :  { %2381 = vrot.lane.b32.xlu0 %v5221_v4, %s4981_s26 }
0x1198   :  { %2388 = vrot.lane.b32.xlu0 %v5513_v31, %s4973_s11 }
0x11da   :  { %v1853_v15 = vpop.xlane.xlu0 %1852  ;;  %v1851_v50 = vpop.xlane.xlu1 %1850 }
0x11db   :  { %v1855_v16 = vcvt.f32.s32 %v1853_v15  ;;  %v1854_v53 = vcvt.f32.s32 %v1851_v50 }
0x11dd   :  { %v1856_v56 = vshll.u32 %v1855_v16, 16 }
0x11de   :  { %v2379_v59 = vpop.permute.xlu1 %2378 }
0x11df   :  { %v1857_v22 = vadd.s32 %v1856_v56, %v1854_v53 }
0x11e1   :  { %vm1858_vm0 = vcmp.lt.s32.totalorder %v1857_v22, 63 }
0x11e2   :  { %v1859_v58 = vsel %vm1858_vm0, %v1857_v22, 63 }
0x11e3   :  { %vm1860_vm5 = vcmp.eq.s32.totalorder %v5394_v20, %v1859_v58 }
0x11e4   :  { %v3921_v26 = vsel %vm1860_vm5, 1.0, %v4971_v55 }
0x11e5   :  { %4420 = vmatmul.mubr.msk.f32.vlgmr.msra.gmra.mxu1 %vm819_vm3, %v3921_v26 }
0x11e6   :  { %4435 = vmatpush3.bf16.msra.mxu1 %v5190_v10  ;;  %4442 = vmatprep.mubr.msk.bf16.mxu1 %vm4972_vm6, %v4971_v55 }
0x11e7   :  { %4436 = vmatprep.subr.bf16.mxu1 %v4971_v55 }
0x11ea   :  { %4437 = vmatpush3.bf16.msra.mxu1 %v5196_v11 }
0x11eb   :  { %4438 = vmatprep.subr.bf16.mxu1 %v4971_v55 }
0x11ee   :  { %4439 = vmatpush3.bf16.msra.mxu1 %v5203_v12  ;;  %v2385_v12 = vpop.permute.xlu1 %2384 }
0x11ef   :  { %4440 = vmatprep.subr.bf16.mxu1 %v4971_v55 }
0x11f2   :  { %4441 = vmatpush3.bf16.msra.mxu1 %v5211_v13 }
0x11f3   :  { %4457 = vmatprep.subr.mxu1 %v4971_v55 }
0x1202   :  { %v2077_v19 = vpop.permute.xlu0 %2076 }
0x1203   :  { %4443 = vmatmul.mubr.msk.bf16.vlgmr.msra.gmra.mxu1 %vm819_vm3, %v2077_v19 }
0x1204   :  { %4458 = vmatpush3.msra.mxu1 %v5267_v51  ;;  %4473 = vmatprep.mubr.msk.f32.mxu1 %vm4972_vm6, %v4971_v55 }
0x1205   :  { %4459 = vmatprep.subr.mxu1 %v4971_v55 }
0x1206   :  { %v2382_v10 = vpop.permute.xlu0 %2381  ;;  %4460 = vmatpush3.msra.mxu1 %v5271_v52 }
0x1207   :  { %v2391_v11 = vsel %vm1513_vm7, %v2379_v59, %v2382_v10  ;;  %4461 = vmatprep.subr.mxu1 %v4971_v55 }
0x1208   :  { %4462 = vmatpush3.msra.mxu1 %v5275_v60  ;;  %v2392_v51 = vsel %vm1948_vm13, %v2391_v11, %v2385_v12 }
0x1209   :  { %4463 = vmatprep.subr.mxu1 %v4971_v55 }
0x120a   :  { %v2389_v13 = vpop.permute.xlu0 %2388  ;;  %4464 = vmatpush3.msra.mxu1 %v5279_v1 }
0x120b   :  { %v2394_v32 = vsel %vm2393_vm8, %v2392_v51, %v2389_v13  ;;  %4465 = vmatprep.subr.mxu1 %v4971_v55 }
0x120c   :  { %v2396_v52 = vsel %vm2395_vm10, %v2394_v32, -inf  ;;  %4466 = vmatpush3.msra.mxu1 %v5281_v3 }
0x120d   :  { %2397 = vmax.xlane.f32.xlu1 %v2396_v52  ;;  %4467 = vmatprep.subr.mxu1 %v4971_v55  ;;  %v2377_v52 = vld [vmem:[%s5744_s9 + $0x26] ss:$0 sm:$0xff] }
0x120e   :  { %4468 = vmatpush3.msra.mxu1 %v5286_v7  ;;  %v5747_v7 = vmov 5  }
0x120f   :  { %4469 = vmatprep.subr.mxu1 %v4971_v55 }
0x1210   :  { %4470 = vmatpush3.msra.mxu1 %v5292_v8  ;;  %v4982_v8 = vmov 6  }
0x1211   :  { %4471 = vmatprep.subr.mxu1 %v4971_v55 }
0x1212   :  { %4472 = vmatpush3.msra.mxu1 %v5295_v9 }
0x1213   :  { %4495 = vmatprep.subr.bf16.mxu1 %v4971_v55 }
0x1296   :  { %v2398_v60 = vpop.xlane.xlu1 %2397 }
0x1297   :  { %v2399_v1 = vsub.f32 %v2394_v32, %v2398_v60 }
0x1299   :  { %v2400_v63 = vmul.f32 1.442695, %v2399_v1 }
0x129b   :  { %4788 = vpow2.f32 %v2400_v63 }
0x12a5   :  { %v5555_v3 = vpop.f32.mrf.mxu1 }
0x12a7   :  { %v4421_v34 = vpop.f32.mrf.mxu1 }
0x12a8   :  { %v4789_v33 = vpop.eup %4788  ;;  %v4800_v34 = vld [vmem:[%s5741_s6 + $0x10] ss:$8 sps:$4 sm:$0xff]  }
0x12a9   :  { %2407 = vperm.xlu1 %4622, %v4789_v33   ;;  %2412 = vperm.xlu0 %4619, %v4789_v33  }
0x12ad   :  { %4620 = vset.pattern.permute.xlu0 %v4967_v18  ;;  %4626 = vset.pattern.permute.xlu1 %v4967_v18 }
0x12ae   :  { %2422 = vperm.xlu0 %4620, %v4789_v33  }
0x12b2   :  { %4621 = vset.pattern.permute.xlu0 %v4969_v24 }
0x12b3   :  { %2432 = vperm.xlu0 %4621, %v4789_v33  }
0x12b7   :  { %4623 = vset.pattern.permute.xlu0 %v4974_v36 }
0x12b8   :  { %2442 = vperm.xlu0 %4623, %v4789_v33  }
0x12bc   :  { %4624 = vset.pattern.permute.xlu0 %v5747_v7 }
0x12bd   :  { %2448 = vperm.xlu0 %4624, %v4789_v33  }
0x12c1   :  { %4625 = vset.pattern.permute.xlu0 %v4982_v8 }
0x12c3   :  { %v2115_v9 = vpop.f32.mrf.mxu1 }
0x12c4   :  { %v2121_v35 = vadd.f32 %v2115_v9, %v5254_v37  ;;  %v2402_v37 = vsel %vm2395_vm10, %v4789_v33, 0.0 }
0x12c5   :  { %v4444_v41 = vpop.f32.mrf.mxu1 }
0x12c6   :  { %4455 = vmatmul.mubr.msk.f32.vlgmr.msra.gmra.mxu0 %vm817_vm2, %v2121_v35 }
0x12c7   :  { %4477 = vmatpush3.msra.mxu0 %v5355_v38  ;;  %v2118_v18 = vpop.f32.mrf.mxu1  ;;  %4492 = vmatprep.mubr.msk.f32.mxu0 %vm4972_vm6, %v4971_v55 }
0x12c8   :  { %4478 = vmatprep.subr.mxu0 %v4971_v55 }
0x12c9   :  { %4479 = vmatpush3.msra.mxu0 %v5351_v25  ;;  %v4445_v36 = vpop.f32.mrf.mxu1 }
0x12ca   :  { %4480 = vmatprep.subr.mxu0 %v4971_v55 }
0x12cb   :  { %4481 = vmatpush3.msra.mxu0 %v5358_v39 }
0x12cc   :  { %4482 = vmatprep.subr.mxu0 %v4971_v55 }
0x12cd   :  { %4483 = vmatpush3.msra.mxu0 %v5363_v42 }
0x12ce   :  { %4484 = vmatprep.subr.mxu0 %v4971_v55 }
0x12cf   :  { %4485 = vmatpush3.msra.mxu0 %v5367_v43 }
0x12d0   :  { %4486 = vmatprep.subr.mxu0 %v4971_v55 }
0x12d1   :  { %4487 = vmatpush3.msra.mxu0 %v5371_v44 }
0x12d2   :  { %4488 = vmatprep.subr.mxu0 %v4971_v55 }
0x12d3   :  { %4489 = vmatpush3.msra.mxu0 %v5391_v17 }
0x12d4   :  { %4490 = vmatprep.subr.mxu0 %v4971_v55 }
0x12d5   :  { %4491 = vmatpush3.msra.mxu0 %v5397_v23 }
0x12d6   :  { %4507 = vmatprep.subr.bf16.mxu0 %v4971_v55 }
0x12dc   :  { %2403 = vadd.xlane.f32.xlu0 %v2402_v37 }
0x12f2   :  { %2454 = vperm.xlu0 %4625, %v4789_v33   ;;  %v4801_v33 = vld [vmem:[%s5741_s6] ss:$8 sps:$4 sm:$0xff]  }
0x12f6   :  { %4627 = vset.pattern.permute.xlu0 %v4969_v24 }
0x1324   :  { %v2413_v28 = vpop.permute.xlu0 %2412  ;;  %v2408_v24 = vpop.permute.xlu1 %2407 }
0x1325   :  { %v2415_v45 = vmul.f32 %v2413_v28, %v5133_v27  ;;  %v2410_v50 = vmul.f32 %v2408_v24, %v5133_v27 }
0x1327   :  { %2417 = vrot.lane.b32.xlu1 %v2415_v45, %s4966_s12 }
0x1329   :  { %v2423_v47 = vpop.permute.xlu0 %2422 }
0x132a   :  { %v2425_v29 = vmul.f32 %v2423_v47, %v5133_v27 }
0x132c   :  { %2427 = vrot.lane.b32.xlu1 %v2425_v29, %s4950_s16 }
0x132e   :  { %v2433_v30 = vpop.permute.xlu0 %2432 }
0x132f   :  { %v2435_v14 = vmul.f32 %v2433_v30, %v5133_v27  ;;  %v4802_v30 = vld [vmem:[#allocation9 + $0x18] sm:$0xff] }
0x1333   :  { %v2443_v61 = vpop.permute.xlu0 %2442 }
0x1334   :  { %v2445_v19 = vmul.f32 %v2443_v61, %v5221_v4  ;;  %v4803_v61 = vld [vmem:[#allocation9 + $0x10] sm:$0xff] }
0x1338   :  { %v2449_v48 = vpop.permute.xlu0 %2448 }
0x1339   :  { %v2451_v11 = vmul.f32 %v2449_v48, %v5383_v46  ;;  %v4798_v46 = vld [vmem:[%s5741_s6 + $0x30] ss:$8 sps:$4 sm:$0xff]   ;;  %v4805_v48 = vld [vmem:[#allocation9] sm:$0xff] }
0x1365   :  { %v2404_v54 = vpop.xlane.xlu0 %2403 }
0x1366   :  { %4790 = vrcp.f32 %v2404_v54 }
0x136d   :  { %v2455_v10 = vpop.permute.xlu0 %2454 }
0x136e   :  { %v2457_v13 = vmul.f32 %v2455_v10, %v5513_v31  ;;  %v4799_v31 = vld [vmem:[%s5741_s6 + $0x20] ss:$8 sps:$4 sm:$0xff]  }
0x1373   :  { %v4791_v27 = vpop.eup %4790 }
0x1386   :  { %v2191_v6 = vpop.f32.mrf.mxu0 }
0x1387   :  { %v2195_v49 = vsel %vm1288_vm9, %v2191_v6, -inf }
0x1388   :  { %v4456_v40 = vpop.f32.mrf.mxu0  ;;  %2196 = vmax.xlane.f32.xlu1 %v2195_v49 }
0x1399   :  { %2437 = vrot.lane.b32.xlu1 %v2435_v14, %s4960_s17  ;;  %v2418_v57 = vpop.permute.xlu1 %2417 }
0x139a   :  { %v2420_v56 = vadd.f32 %v2418_v57, %v2410_v50  ;;  %v4804_v57 = vld [vmem:[#allocation9 + $0x8] sm:$0xff] }
0x139e   :  { %v2428_v15 = vpop.permute.xlu1 %2427 }
0x139f   :  { %v2430_v22 = vadd.f32 %v2428_v15, %v2420_v56 }
0x1411   :  { %v2197_v16 = vpop.xlane.xlu1 %2196 }
0x1412   :  { %v2198_v53 = vsub.f32 %v2191_v6, %v2197_v16 }
0x1414   :  { %v2199_v58 = vmul.f32 1.442695, %v2198_v53 }
0x1415   :  { %v2438_v26 = vpop.permute.xlu1 %2437 }
0x1416   :  { %4792 = vpow2.f32 %v2199_v58  ;;  %v2440_v59 = vadd.f32 %v2438_v26, %v2430_v22  ;;  %v4806_v58 = vld [vmem:[%s5744_s9 + $0x3] ss:$0 sm:$0xff] }
0x1418   :  { %v2446_v12 = vadd.f32 %v2445_v19, %v2440_v59 }
0x141a   :  { %v2452_v51 = vadd.f32 %v2451_v11, %v2446_v12 }
0x141c   :  { %v2458_v32 = vadd.f32 %v2457_v13, %v2452_v51 }
0x141e   :  { %v2460_v60 = vmul.f32 %v4791_v27, %v2458_v32 }
0x1420   :  { %v2461_v1 = vadd.f32 %v2460_v60, %v2377_v52 }
0x1422   :  { %v2462_v63 = vsel %vm741_vm1, %v2461_v1, 0.0 }
0x1423   :  { %v4793_v4 = vpop.eup %4792  ;;  %2463 = vadd.xlane.f32.xlu1 %v2462_v63 }
0x1424   :  { %4474 = vmatmul.mubr.msk.f32.vlgmr.msra.gmra.mxu1 %vm819_vm3, %v4793_v4  ;;  %v4807_v4 = vld [vmem:[%s5741_s6 + $0x34] ss:$8 sps:$4 sm:$0xff]  }
0x1425   :  { %4496 = vmatpush3.bf16.msra.mxu1 %v4798_v46  ;;  %4503 = vmatprep.mubr.msk.bf16.mxu1 %vm4972_vm6, %v4971_v55  ;;  %v4808_v46 = vld [vmem:[%s5741_s6 + $0x24] ss:$8 sps:$4 sm:$0xff]  }
0x1426   :  { %4497 = vmatprep.subr.bf16.mxu1 %v4971_v55 }
0x1429   :  { %4498 = vmatpush3.bf16.msra.mxu1 %v4799_v31  ;;  %v4809_v31 = vld [vmem:[%s5741_s6 + $0x14] ss:$8 sps:$4 sm:$0xff]  }
0x142a   :  { %4499 = vmatprep.subr.bf16.mxu1 %v4971_v55 }
0x142d   :  { %4500 = vmatpush3.bf16.msra.mxu1 %v4800_v34  ;;  %v4810_v34 = vld [vmem:[%s5741_s6 + $0x4] ss:$8 sps:$4 sm:$0xff]  }
0x142e   :  { %4501 = vmatprep.subr.bf16.mxu1 %v4971_v55 }
0x1431   :  { %4502 = vmatpush3.bf16.msra.mxu1 %v4801_v33 }
0x1432   :  { %4519 = vmatprep.subr.mxu1 %v4971_v55 }
0x14ac   :  { %v2464_v7 = vpop.xlane.xlu1 %2463 }
0x14ad   :  { %v2465_v8 = vmul.f32 0.03125, %v2464_v7  ;;  %v4811_v7 = vld [vmem:[#allocation10 + $0x38] sm:$0xff] }
0x14af   :  { %v2466_v9 = vsub.f32 %v2461_v1, %v2465_v8  ;;  %v4812_v8 = vld [vmem:[#allocation10 + $0x30] sm:$0xff] }
0x14b1   :  { %v2467_v35 = vmul.f32 %v2466_v9, %v2466_v9 }
0x14b3   :  { %v2468_v41 = vsel %vm741_vm1, %v2467_v35, 0.0  ;;  %v4814_v35 = vld [vmem:[#allocation10 + $0x20] sm:$0xff] }
0x14b4   :  { %2469 = vadd.xlane.f32.xlu0 %v2468_v41  ;;  %v4815_v41 = vld [vmem:[#allocation10 + $0x18] sm:$0xff] }
0x14ca   :  { %2476 = vrot.lane.b32.xlu0 %v2461_v1, %s4960_s17 }
0x14e4   :  { %v2270_v18 = vpop.f32.mrf.mxu1 }
0x14e5   :  { %2275 = vrot.lane.b32.xlu1 %v2270_v18, %s4983_s13 }
0x14e6   :  { %v4475_v36 = vpop.f32.mrf.mxu1 }
0x14e7   :  { %v4817_v36 = vld [vmem:[#allocation10 + $0x8] sm:$0xff] }
0x153d   :  { %v2470_v37 = vpop.xlane.xlu0 %2469 }
0x153e   :  { %v2471_v28 = vmul.f32 0.03125, %v2470_v37  ;;  %v4818_v37 = vld [vmem:[#allocation10] sm:$0xff] }
0x1540   :  { %v2472_v45 = vadd.f32 1e-05, %v2471_v28 }
0x1541   :  { %v2477_v6 = vpop.permute.xlu0 %2476 }
0x1542   :  { %4794 = vrsqrt.f32 %v2472_v45 }
0x154f   :  { %v4795_v47 = vpop.eup %4794 }
0x1550   :  { %v2474_v29 = vmul.f32 %v4795_v47, %v2466_v9  ;;  %v4813_v9 = vld [vmem:[#allocation10 + $0x28] sm:$0xff] }
0x1552   :  { %v2479_v49 = vsel %vm817_vm2, %v2474_v29, %v2477_v6  ;;  %v4819_v29 = vld [vmem:[%s5744_s9 + $0x4] ss:$0 sm:$0xff] }
0x1553   :  { %v2480_v40 = vpack.c.bf16 %v2479_v49, %v2479_v49 }
0x1555   :  { %4504 = vmatmul.mubr.msk.bf16.vlgmr.msra.gmra.mxu1 %vm819_vm3, %v2480_v40 }
0x1556   :  { %4520 = vmatpush3.msra.mxu1 %v4802_v30  ;;  %4527 = vmatprep.mubr.msk.f32.mxu1 %vm4972_vm6, %v4971_v55 }
0x1557   :  { %v2276_v14 = vpop.permute.xlu1 %2275  ;;  %4521 = vmatprep.subr.mxu1 %v4971_v55 }
0x1558   :  { %v2278_v24 = vmul.f32 %v2276_v14, %v5336_v21  ;;  %4522 = vmatpush3.msra.mxu1 %v4803_v61 }
0x1559   :  { %4523 = vmatprep.subr.mxu1 %v4971_v55 }
0x155a   :  { %2281 = vperm.xlu1 %4626, %v2278_v24   ;;  %4524 = vmatpush3.msra.mxu1 %v4804_v57 }
0x155b   :  { %4525 = vmatprep.subr.mxu1 %v4971_v55 }
0x155c   :  { %4526 = vmatpush3.msra.mxu1 %v4805_v48 }
0x155d   :  { %4549 = vmatprep.subr.mxu1 %v4971_v55 }
0x15d5   :  { %v2282_v54 = vpop.permute.xlu1 %2281 }
0x15d6   :  { %vm2284_vm1 = vcmp.lt.f32.partialorder %v2270_v18, %v2282_v54  ;;  %v4816_v18 = vld [vmem:[#allocation10 + $0x10] sm:$0xff] }
0x15d7   :  { %v2285_v15 = vsel %vm2284_vm1, 1, %v4965_v0 }
0x15d8   :  { %v2286_v50 = vsel %vm1288_vm9, %v2285_v15, 0 }
0x15d9   :  { %v2288_v21 = vshrl.u32 %v2286_v50, 16  ;;  %v2287_v16 = vand.u32 65535, %v2286_v50 }
0x15db   :  { %v2290_v56 = vcvt.s32.f32 %v2288_v21  ;;  %v2289_v53 = vcvt.s32.f32 %v2287_v16 }
0x15dd   :  { %2293 = vadd.xlane.f32.xlu0 %v2290_v56  ;;  %2291 = vadd.xlane.f32.xlu1 %v2289_v53 }
0x1615   :  { %v2518_v22 = vpop.f32.mrf.mxu1 }
0x1616   :  { %v2519_v26 = vadd.f32 %v4806_v58, %v2518_v22 }
0x1617   :  { %v4505_v19 = vpop.f32.mrf.mxu1 }
0x1618   :  { %v2524_v59 = vmax.f32 %v2519_v26, 0.0 }
0x1619   :  { %v2521_v10 = vpop.f32.mrf.mxu1 }
0x161a   :  { %v2525_v11 = vpack.c.bf16 %v2524_v59, %v2524_v59 }
0x161b   :  { %v4506_v12 = vpop.f32.mrf.mxu1 }
0x161c   :  { %2527 = vrot.lane.b32.xlu0 %v2525_v11, %s4966_s12  ;;  %v2858_v12 = vld [vmem:[#allocation6 + $0x1c8] sm:$0xff] }
0x1666   :  { %v2294_v13 = vpop.xlane.xlu0 %2293  ;;  %v2292_v51 = vpop.xlane.xlu1 %2291 }
0x1667   :  { %v2296_v32 = vcvt.f32.s32 %v2294_v13  ;;  %v2295_v52 = vcvt.f32.s32 %v2292_v51  ;;  %v2859_v13 = vld [vmem:[#allocation6 + $0x1e8] sm:$0xff] }
0x1668   :  { %v2856_v51 = vld [vmem:[#allocation6 + $0x188] sm:$0xff] }
0x1669   :  { %v2297_v27 = vshll.u32 %v2296_v32, 16  ;;  %v3950_v32 = vcombine.low %v2858_v12, %v2859_v13 }
0x166b   :  { %v2298_v60 = vadd.s32 %v2297_v27, %v2295_v52  ;;  %v3951_v27 = vcombine.high %v2858_v12, %v2859_v13  ;;  %v3181_v13 = vld [vmem:[#allocation6 + $0x1b0] sm:$0xff] }
0x166d   :  { %vm2299_vm7 = vcmp.lt.s32.totalorder %v2298_v60, 63 }
0x166e   :  { %v2300_v1 = vsel %vm2299_vm7, %v2298_v60, 63  ;;  %v2854_v60 = vld [vmem:[#allocation6 + $0x148] sm:$0xff] }
0x166f   :  { %vm2301_vm11 = vcmp.eq.s32.totalorder %v5394_v20, %v2300_v1  ;;  %v2855_v1 = vld [vmem:[#allocation6 + $0x168] sm:$0xff] }
0x1670   :  { %v3927_v63 = vsel %vm2301_vm11, 1.0, %v4971_v55 }
0x1671   :  { %4493 = vmatmul.mubr.msk.f32.vlgmr.msra.gmra.mxu0 %vm819_vm3, %v3927_v63 }
0x1672   :  { %4508 = vmatpush3.bf16.msra.mxu0 %v4807_v4  ;;  %4515 = vmatprep.mubr.msk.bf16.mxu0 %vm4972_vm6, %v4971_v55  ;;  %v3947_v4 = vcombine.high %v2854_v60, %v2855_v1 }
0x1673   :  { %4509 = vmatprep.subr.bf16.mxu0 %v4971_v55 }
0x1676   :  { %4510 = vmatpush3.bf16.msra.mxu0 %v4808_v46  ;;  %v2852_v46 = vld [vmem:[#allocation6 + $0x108] sm:$0xff] }
0x1677   :  { %4511 = vmatprep.subr.bf16.mxu0 %v4971_v55 }
0x167a   :  { %4512 = vmatpush3.bf16.msra.mxu0 %v4809_v31 }
0x167b   :  { %4513 = vmatprep.subr.bf16.mxu0 %v4971_v55 }
0x167e   :  { %4514 = vmatpush3.bf16.msra.mxu0 %v4810_v34  ;;  %v2850_v34 = vld [vmem:[#allocation6 + $0xc8] sm:$0xff] }
0x167f   :  { %4530 = vmatprep.subr.mxu0 %v4971_v55 }
0x168e   :  { %v2528_v33 = vpop.permute.xlu0 %2527 }
0x168f   :  { %4516 = vmatmul.mubr.msk.bf16.vlgmr.msra.gmra.mxu0 %vm819_vm3, %v2528_v33  ;;  %v2851_v33 = vld [vmem:[#allocation6 + $0xe8] sm:$0xff] }
0x1690   :  { %4531 = vmatpush3.msra.mxu0 %v4811_v7  ;;  %4546 = vmatprep.mubr.msk.f32.mxu0 %vm4972_vm6, %v4971_v55 }
0x1691   :  { %4532 = vmatprep.subr.mxu0 %v4971_v55 }
0x1692   :  { %4533 = vmatpush3.msra.mxu0 %v4812_v8  ;;  %v3943_v8 = vcombine.high %v2850_v34, %v2851_v33 }
0x1693   :  { %4534 = vmatprep.subr.mxu0 %v4971_v55 }
0x1694   :  { %4535 = vmatpush3.msra.mxu0 %v4813_v9  ;;  %v2848_v9 = vld [vmem:[#allocation6 + $0x88] sm:$0xff] }
0x1695   :  { %4536 = vmatprep.subr.mxu0 %v4971_v55 }
0x1696   :  { %4537 = vmatpush3.msra.mxu0 %v4814_v35  ;;  %v2849_v35 = vld [vmem:[#allocation6 + $0xa8] sm:$0xff] }
0x1697   :  { %4538 = vmatprep.subr.mxu0 %v4971_v55 }
0x1698   :  { %4539 = vmatpush3.msra.mxu0 %v4815_v41  ;;  %v3942_v41 = vcombine.low %v2850_v34, %v2851_v33  ;;  %v3172_v34 = vld [vmem:[#allocation6 + $0x90] sm:$0xff] }
0x1699   :  { %4540 = vmatprep.subr.mxu0 %v4971_v55  ;;  %v3173_v33 = vld [vmem:[#allocation6 + $0xb0] sm:$0xff] }
0x169a   :  { %4541 = vmatpush3.msra.mxu0 %v4816_v18  ;;  %v3941_v18 = vcombine.high %v2848_v9, %v2849_v35 }
0x169b   :  { %4542 = vmatprep.subr.mxu0 %v4971_v55 }
0x169c   :  { %4543 = vmatpush3.msra.mxu0 %v4817_v36  ;;  %v2846_v36 = vld [vmem:[#allocation6 + $0x48] sm:$0xff] }
0x169d   :  { %4544 = vmatprep.subr.mxu0 %v4971_v55 }
0x169e   :  { %4545 = vmatpush3.msra.mxu0 %v4818_v37  ;;  %v2847_v37 = vld [vmem:[#allocation6 + $0x68] sm:$0xff] }
0x169f   :  { %2953 = vmatprep.subr.bf16.mxu0 %v3951_v27  ;;  %v3179_v27 = vld [vmem:[#allocation6 + $0x170] sm:$0xff] }
0x1731   :  { %v2373_v28 = vpop.f32.mrf.mxu0 }
0x1733   :  { %v4494_v45 = vpop.f32.mrf.mxu0 }
0x1734   :  { %v3939_v45 = vcombine.high %v2846_v36, %v2847_v37 }
0x174f   :  { %v2566_v47 = vpop.f32.mrf.mxu0 }
0x1750   :  { %v2572_v6 = vadd.f32 %v4819_v29, %v2566_v47  ;;  %v2844_v47 = vld [vmem:[#allocation6 + $0x8] sm:$0xff] }
0x1751   :  { %v4517_v49 = vpop.f32.mrf.mxu0  ;;  %v2845_v29 = vld [vmem:[#allocation6 + $0x28] sm:$0xff] }
0x1752   :  { %4528 = vmatmul.mubr.msk.f32.vlgmr.msra.gmra.mxu1 %vm817_vm2, %v2572_v6  ;;  %v3938_v6 = vcombine.low %v2846_v36, %v2847_v37  ;;  %v3937_v49 = vcombine.high %v2844_v47, %v2845_v29 }
0x1753   :  { %4550 = vmatpush3.msra.mxu1 %v5355_v38  ;;  %v2569_v40 = vpop.f32.mrf.mxu0  ;;  %4565 = vmatprep.mubr.msk.f32.mxu1 %vm4972_vm6, %v4971_v55 }
0x1754   :  { %4551 = vmatprep.subr.mxu1 %v4971_v55  ;;  %v3936_v40 = vcombine.low %v2844_v47, %v2845_v29 }
0x1755   :  { %4552 = vmatpush3.msra.mxu1 %v5351_v25  ;;  %v4518_v30 = vpop.f32.mrf.mxu0 }
0x1756   :  { %4553 = vmatprep.subr.mxu1 %v4971_v55  ;;  %v4710_v30 = vld [vmem:[#allocation7 + $0x168] ss:$12 sps:$4 sm:$0xff]  }
0x1757   :  { %4554 = vmatpush3.msra.mxu1 %v5358_v39 }
0x1758   :  { %4555 = vmatprep.subr.mxu1 %v4971_v55 }
0x1759   :  { %4556 = vmatpush3.msra.mxu1 %v5363_v42 }
0x175a   :  { %4557 = vmatprep.subr.mxu1 %v4971_v55 }
0x175b   :  { %4558 = vmatpush3.msra.mxu1 %v5367_v43 }
0x175c   :  { %4559 = vmatprep.subr.mxu1 %v4971_v55 }
0x175d   :  { %4560 = vmatpush3.msra.mxu1 %v5371_v44 }
0x175e   :  { %4561 = vmatprep.subr.mxu1 %v4971_v55 }
0x175f   :  { %4562 = vmatpush3.msra.mxu1 %v5391_v17 }
0x1760   :  { %4563 = vmatprep.subr.mxu1 %v4971_v55 }
0x1761   :  { %4564 = vmatpush3.msra.mxu1 %v5397_v23  ;;  %v4820_v23 = vld [vmem:[%s5736_s1] sm:$0x3] }
0x1762   :  { %4210 = vmatprep.subr.bf16.mxu1 %v4710_v30 }
0x1812   :  { %v2642_v25 = vpop.f32.mrf.mxu1 }
0x1813   :  { %v2646_v38 = vsel %vm1288_vm9, %v2642_v25, -inf }
0x1814   :  { %2647 = vmax.xlane.f32.xlu1 %v2646_v38  ;;  %v4529_v39 = vpop.f32.mrf.mxu1  ;;  %v4712_v38 = vld [vmem:[#allocation7 + $0x150] ss:$12 sps:$4 sm:$0xff]  }
0x1815   :  { %v4713_v39 = vld [vmem:[#allocation7 + $0x90] ss:$12 sps:$4 sm:$0xff]  }
0x189d   :  { %v2648_v42 = vpop.xlane.xlu1 %2647 }
0x189e   :  { %v2649_v14 = vsub.f32 %v2642_v25, %v2648_v42  ;;  %v4711_v25 = vld [vmem:[#allocation7 + $0xa8] ss:$12 sps:$4 sm:$0xff]   ;;  %v4714_v42 = vld [vmem:[#allocation7 + $0x138] ss:$12 sps:$4 sm:$0xff]  }
0x18a0   :  { %v2650_v43 = vmul.f32 1.442695, %v2649_v14  ;;  %v4715_v14 = vld [vmem:[#allocation7 + $0x78] ss:$12 sps:$4 sm:$0xff]  }
0x18a2   :  { %4796 = vpow2.f32 %v2650_v43  ;;  %v4716_v43 = vld [vmem:[#allocation7 + $0x120] ss:$12 sps:$4 sm:$0xff]  }
0x18af   :  { %v4797_v24 = vpop.eup %4796 }
0x18b0   :  { %4547 = vmatmul.mubr.msk.f32.vlgmr.msra.gmra.mxu0 %vm819_vm3, %v4797_v24 }
0x18b1   :  { %2985 = vmatprep.mubr.bf16.mxu0 %v4965_v0  ;;  %2954 = vmatpush1.bf16.msra.mxu0 %v3950_v32  ;;  %v3178_v32 = vld [vmem:[#allocation6 + $0x150] sm:$0xff] }
0x1970   :  { %v2721_v44 = vpop.f32.mrf.mxu0 }
0x1971   :  { %2726 = vrot.lane.b32.xlu1 %v2721_v44, %s4984_s25 }
0x1972   :  { %v4548_v17 = vpop.f32.mrf.mxu0 }
0x1973   :  { %v4717_v17 = vld [vmem:[#allocation7 + $0x60] ss:$12 sps:$4 sm:$0xff]  }
0x19e3   :  { %v2727_v61 = vpop.permute.xlu1 %2726 }
0x19e4   :  { %v2729_v57 = vmul.f32 %v4820_v23, %v2727_v61  ;;  %v4718_v61 = vld [vmem:[#allocation7 + $0x108] ss:$12 sps:$4 sm:$0xff]  }
0x19e5   :  { %v4719_v23 = vld [vmem:[#allocation7 + $0x48] ss:$12 sps:$4 sm:$0xff]  }
0x19e6   :  { %2732 = vperm.xlu0 %4627, %v2729_v57   ;;  %v4720_v57 = vld [vmem:[#allocation7 + $0xf0] ss:$12 sps:$4 sm:$0xff]  }
0x1a61   :  { %v2733_v48 = vpop.permute.xlu0 %2732 }
0x1a62   :  { %vm2735_vm6 = vcmp.lt.f32.partialorder %v2721_v44, %v2733_v48  ;;  %v4721_v48 = vld [vmem:[#allocation7 + $0x30] ss:$12 sps:$4 sm:$0xff]  }
0x1a63   :  { %v2736_v54 = vsel %vm2735_vm6, 1, %v4965_v0 }
0x1a64   :  { %v2737_v15 = vsel %vm1288_vm9, %v2736_v54, 0 }
0x1a65   :  { %v2738_v50 = vand.u32 65535, %v2737_v15  ;;  %v2739_v21 = vshrl.u32 %v2737_v15, 16 }
0x1a67   :  { %v2741_v16 = vcvt.s32.f32 %v2739_v21  ;;  %v2740_v56 = vcvt.s32.f32 %v2738_v50 }
0x1a69   :  { %2744 = vadd.xlane.f32.xlu1 %v2741_v16  ;;  %2742 = vadd.xlane.f32.xlu0 %v2740_v56 }
0x1a7a   :  { %2833 = vrot.lane.b32.xlu1 %v2373_v28, %s4950_s16  ;;  %v3940_v28 = vcombine.low %v2848_v9, %v2849_v35  ;;  %v3973_v9 = vcombine.low %v3172_v34, %v3173_v33  ;;  %v3935_v35 = vld [vmem:[%s5744_s9 + $0x5] ss:$8 sm:$0x3] }
0x1a7f   :  { %2829 = vrot.lane.b32.xlu0 %v5555_v3, %s4960_s17  ;;  %v2857_v3 = vld [vmem:[#allocation6 + $0x1a8] sm:$0xff] }
0x1a80   :  { %v3949_v52 = vcombine.high %v2856_v51, %v2857_v3  ;;  %v3948_v63 = vcombine.low %v2856_v51, %v2857_v3 }
0x1a82   :  { %2955 = vmatprep.subr.bf16.mxu0 %v3949_v52  ;;  %v3980_v52 = vcombine.high %v3178_v32, %v3179_v27 }
0x1a83   :  { %2956 = vmatpush1.bf16.msra.mxu0 %v3948_v63  ;;  %v3979_v63 = vcombine.low %v3178_v32, %v3179_v27  ;;  %v4741_v32 = vld [vmem:[#allocation7 + $0x4] ss:$12 sps:$4 sm:$0xff]   ;;  %v3506_v27 = vld [vmem:[#allocation6 + $0x1d8] sm:$0xff] }
0x1a84   :  { %2957 = vmatprep.subr.bf16.mxu0 %v3947_v4 }
0x1af2   :  { %v2745_v53 = vpop.xlane.xlu1 %2744  ;;  %v2743_v22 = vpop.xlane.xlu0 %2742 }
0x1af3   :  { %v2747_v58 = vcvt.f32.s32 %v2745_v53  ;;  %v2746_v19 = vcvt.f32.s32 %v2743_v22  ;;  %v4722_v22 = vld [vmem:[#allocation7 + $0xd8] ss:$12 sps:$4 sm:$0xff]  }
0x1af5   :  { %v2748_v26 = vshll.u32 %v2747_v58, 16  ;;  %v4723_v58 = vld [vmem:[#allocation7 + $0x18] ss:$12 sps:$4 sm:$0xff]  }
0x1af6   :  { %v2830_v54 = vpop.permute.xlu0 %2829  ;;  %v2834_v15 = vpop.permute.xlu1 %2833 }
0x1af7   :  { %v2749_v59 = vadd.s32 %v2748_v26, %v2746_v19  ;;  %v2840_v50 = vsel %vm817_vm2, %v5437_v62, %v2830_v54  ;;  %v4724_v26 = vld [vmem:[#allocation7 + $0xc0] ss:$12 sps:$4 sm:$0xff]   ;;  %v3180_v62 = vld [vmem:[#allocation6 + $0x190] sm:$0xff]  ;;  %v4731_v54 = vld [vmem:[#allocation7 + $0x7c] ss:$12 sps:$4 sm:$0xff]  }
0x1af8   :  { %v2841_v16 = vsel %vm819_vm3, %v2840_v50, %v2834_v15  ;;  %v4725_v19 = vld [vmem:[#allocation7] ss:$12 sps:$4 sm:$0xff]   ;;  %v3982_v51 = vcombine.high %v3180_v62, %v3181_v13  ;;  %v3981_v3 = vcombine.low %v3180_v62, %v3181_v13  ;;  %v4732_v15 = vld [vmem:[#allocation7 + $0x124] ss:$12 sps:$4 sm:$0xff]   ;;  %v4739_v13 = vld [vmem:[#allocation7 + $0x1c] ss:$12 sps:$4 sm:$0xff]  }
0x1af9   :  { %vm2750_vm12 = vcmp.lt.s32.totalorder %v2749_v59, 63  ;;  %v4733_v50 = vld [vmem:[#allocation7 + $0x64] ss:$12 sps:$4 sm:$0xff]  }
0x1afa   :  { %v2751_v10 = vsel %vm2750_vm12, %v2749_v59, 63  ;;  %v3182_v59 = vld [vmem:[#allocation6 + $0x1d0] sm:$0xff] }
0x1afb   :  { %vm2752_vm9 = vcmp.eq.s32.totalorder %v5394_v20, %v2751_v10  ;;  %v2853_v20 = vld [vmem:[#allocation6 + $0x128] sm:$0xff]  ;;  %v3183_v10 = vld [vmem:[#allocation6 + $0x1f0] sm:$0xff] }
0x1afc   :  { %v3933_v11 = vsel %vm2752_vm9, 1.0, %v4971_v55  ;;  %v3946_v55 = vcombine.low %v2854_v60, %v2855_v1  ;;  %v3945_v31 = vcombine.high %v2852_v46, %v2853_v20  ;;  %v3944_v7 = vcombine.low %v2852_v46, %v2853_v20  ;;  %v3176_v60 = vld [vmem:[#allocation6 + $0x110] sm:$0xff] }
0x1afd   :  { %4566 = vmatmul.mubr.msk.f32.vlgmr.msra.gmra.mxu1 %vm819_vm3, %v3933_v11  ;;  %v3983_v11 = vcombine.low %v3182_v59, %v3183_v10  ;;  %v3984_v12 = vcombine.high %v3182_v59, %v3183_v10  ;;  %v3177_v1 = vld [vmem:[#allocation6 + $0x130] sm:$0xff] }
0x1afe   :  { %2958 = vmatpush1.bf16.msra.mxu0 %v3946_v55  ;;  %4211 = vmatpush3.bf16.msra.mxu1 %v4711_v25  ;;  %v3978_v4 = vcombine.high %v3176_v60, %v3177_v1  ;;  %v3174_v46 = vld [vmem:[#allocation6 + $0xd0] sm:$0xff]  ;;  %v3977_v55 = vcombine.low %v3176_v60, %v3177_v1 }
0x1aff   :  { %2959 = vmatprep.subr.bf16.mxu0 %v3945_v31  ;;  %4212 = vmatprep.subr.bf16.mxu1 %v4712_v38  ;;  %v3175_v20 = vld [vmem:[#allocation6 + $0xf0] sm:$0xff] }
0x1b00   :  { %v3976_v31 = vcombine.high %v3174_v46, %v3175_v20  ;;  %v3170_v25 = vld [vmem:[#allocation6 + $0x50] sm:$0xff] }
0x1b01   :  { %v3171_v38 = vld [vmem:[#allocation6 + $0x70] sm:$0xff] }
0x1b02   :  { %2960 = vmatpush1.bf16.msra.mxu0 %v3944_v7  ;;  %4213 = vmatpush3.bf16.msra.mxu1 %v4713_v39  ;;  %v3975_v7 = vcombine.low %v3174_v46, %v3175_v20  ;;  %v3971_v39 = vcombine.low %v3170_v25, %v3171_v38  ;;  %v3502_v46 = vld [vmem:[#allocation6 + $0x158] sm:$0xff] }
0x1b03   :  { %2961 = vmatprep.subr.bf16.mxu0 %v3943_v8  ;;  %4214 = vmatprep.subr.bf16.mxu1 %v4714_v42  ;;  %v3974_v8 = vcombine.high %v3172_v34, %v3173_v33  ;;  %v3972_v42 = vcombine.high %v3170_v25, %v3171_v38  ;;  %v3503_v20 = vld [vmem:[#allocation6 + $0x178] sm:$0xff] }
0x1b04   :  { %v3501_v34 = vld [vmem:[#allocation6 + $0x138] sm:$0xff]  ;;  %v4012_v33 = vcombine.low %v3502_v46, %v3503_v20 }
0x1b06   :  { %2962 = vmatpush1.bf16.msra.mxu0 %v3942_v41  ;;  %4215 = vmatpush3.bf16.msra.mxu1 %v4715_v14  ;;  %v2866_v41 = vrot.slane %v3935_v35, %v5067_v2  ;;  %v3168_v14 = vld [vmem:[#allocation6 + $0x10] sm:$0xff] }
0x1b07   :  { %2963 = vmatprep.subr.bf16.mxu0 %v3941_v18  ;;  %4216 = vmatprep.subr.bf16.mxu1 %v4716_v43  ;;  %v2870_v18 = vrot.slane %v3935_v35, %v5072_v5  ;;  %v3169_v43 = vld [vmem:[#allocation6 + $0x30] sm:$0xff] }
0x1b0a   :  { %2964 = vmatpush1.bf16.msra.mxu0 %v3940_v28  ;;  %4217 = vmatpush3.bf16.msra.mxu1 %v4717_v17  ;;  %v4726_v17 = vld [vmem:[#allocation7 + $0x16c] ss:$12 sps:$4 sm:$0xff]  }
0x1b0b   :  { %2965 = vmatprep.subr.bf16.mxu0 %v3939_v45  ;;  %4218 = vmatprep.subr.bf16.mxu1 %v4718_v61  ;;  %v4727_v61 = vld [vmem:[#allocation7 + $0xac] ss:$12 sps:$4 sm:$0xff]  }
0x1b0e   :  { %2966 = vmatpush1.bf16.msra.mxu0 %v3938_v6  ;;  %4219 = vmatpush3.bf16.msra.mxu1 %v4719_v23  ;;  %v4728_v23 = vld [vmem:[#allocation7 + $0x154] ss:$12 sps:$4 sm:$0xff]  }
0x1b0f   :  { %2967 = vmatprep.subr.bf16.mxu0 %v3937_v49  ;;  %4220 = vmatprep.subr.bf16.mxu1 %v4720_v57  ;;  %v4729_v57 = vld [vmem:[#allocation7 + $0x94] ss:$12 sps:$4 sm:$0xff]  }
0x1b12   :  { %2968 = vmatpush1.bf16.msra.mxu0 %v3936_v40  ;;  %4221 = vmatpush3.bf16.msra.mxu1 %v4721_v48  ;;  %v4730_v48 = vld [vmem:[#allocation7 + $0x13c] ss:$12 sps:$4 sm:$0xff]  }
0x1b13   :  { %4222 = vmatprep.subr.bf16.mxu1 %v4722_v22  ;;  %3277 = vmatprep.subr.bf16.mxu0 %v3984_v12  ;;  %v4738_v12 = vld [vmem:[#allocation7 + $0xdc] ss:$12 sps:$4 sm:$0xff]  }
0x1b16   :  { %4223 = vmatpush3.bf16.msra.mxu1 %v4723_v58  ;;  %v3030_v58 = vld [vmem:[%s5744_s9 + $0x6] ss:$0 sm:$0xff] }
0x1b17   :  { %4224 = vmatprep.subr.bf16.mxu1 %v4724_v26 }
0x1b1a   :  { %4225 = vmatpush3.bf16.msra.mxu1 %v4725_v19 }
0x1b1b   :  { %4232 = vmatprep.subr.bf16.mxu1 %v4726_v17  ;;  %v3495_v17 = vld [vmem:[#allocation6 + $0x78] sm:$0xff] }
0x1bbd   :  { %v2824_v24 = vpop.f32.mrf.mxu1 }
0x1bbe   :  { %2837 = vrot.lane.b32.xlu1 %v2824_v24, %s4966_s12  ;;  %v3970_v24 = vcombine.high %v3168_v14, %v3169_v43 }
0x1bbf   :  { %v4567_v44 = vpop.f32.mrf.mxu1 }
0x1bc0   :  { %v3969_v44 = vcombine.low %v3168_v14, %v3169_v43 }
0x1c30   :  { %v2838_v21 = vpop.permute.xlu1 %2837 }
0x1c31   :  { %v2842_v56 = vsel %vm821_vm4, %v2841_v16, %v2838_v21  ;;  %v4734_v21 = vld [vmem:[#allocation7 + $0x10c] ss:$12 sps:$4 sm:$0xff]  }
0x1c32   :  { %v2843_v53 = vpack.c.bf16 %v2842_v56, %v2842_v56  ;;  %v4735_v16 = vld [vmem:[#allocation7 + $0x4c] ss:$12 sps:$4 sm:$0xff]   ;;  %v4736_v56 = vld [vmem:[#allocation7 + $0xf4] ss:$12 sps:$4 sm:$0xff]  }
0x1c34   :  { %2986 = vmatmul.mubr.bf16.vlgmr.msra.gmra.mxu0 %v2843_v53  ;;  %v4737_v53 = vld [vmem:[#allocation7 + $0x34] ss:$12 sps:$4 sm:$0xff]  }
0x1c35   :  { %3309 = vmatprep.mubr.bf16.mxu0 %v4965_v0  ;;  %3278 = vmatpush1.bf16.msra.mxu0 %v3983_v11 }
0x1c36   :  { %3279 = vmatprep.subr.bf16.mxu0 %v3982_v51  ;;  %v4740_v51 = vld [vmem:[#allocation7 + $0xc4] ss:$12 sps:$4 sm:$0xff]  }
0x1c39   :  { %3280 = vmatpush1.bf16.msra.mxu0 %v3981_v3  ;;  %v3507_v3 = vld [vmem:[#allocation6 + $0x1f8] sm:$0xff] }
0x1c3a   :  { %3281 = vmatprep.subr.bf16.mxu0 %v3980_v52  ;;  %v3504_v52 = vld [vmem:[#allocation6 + $0x198] sm:$0xff]  ;;  %v4016_v60 = vcombine.low %v3506_v27, %v3507_v3  ;;  %v4017_v1 = vcombine.high %v3506_v27, %v3507_v3 }
0x1c3d   :  { %3282 = vmatpush1.bf16.msra.mxu0 %v3979_v63  ;;  %v3505_v63 = vld [vmem:[#allocation6 + $0x1b8] sm:$0xff] }
0x1c3e   :  { %3283 = vmatprep.subr.bf16.mxu0 %v3978_v4  ;;  %v4015_v4 = vcombine.high %v3504_v52, %v3505_v63 }
0x1c41   :  { %3284 = vmatpush1.bf16.msra.mxu0 %v3977_v55  ;;  %v4013_v55 = vcombine.high %v3502_v46, %v3503_v20  ;;  %v4001_v46 = vld [vmem:[%s5744_s9 + $0x21] ss:$8 sm:$0x3] }
0x1c42   :  { %3285 = vmatprep.subr.bf16.mxu0 %v3976_v31  ;;  %v3500_v31 = vld [vmem:[#allocation6 + $0x118] sm:$0xff]  ;;  %v3514_v20 = vrot.slane %v4001_v46, %v5067_v2 }
0x1c43   :  { %v4010_v35 = vcombine.low %v3500_v31, %v3501_v34 }
0x1c45   :  { %3286 = vmatpush1.bf16.msra.mxu0 %v3975_v7  ;;  %v4011_v7 = vcombine.high %v3500_v31, %v3501_v34 }
0x1c46   :  { %3287 = vmatprep.subr.bf16.mxu0 %v3974_v8  ;;  %v3498_v8 = vld [vmem:[#allocation6 + $0xd8] sm:$0xff] }
0x1c49   :  { %3288 = vmatpush1.bf16.msra.mxu0 %v3973_v9  ;;  %v3499_v9 = vld [vmem:[#allocation6 + $0xf8] sm:$0xff] }
0x1c4a   :  { %3289 = vmatprep.subr.bf16.mxu0 %v3972_v42 }
0x1c4d   :  { %3290 = vmatpush1.bf16.msra.mxu0 %v3971_v39 }
0x1c4e   :  { %3291 = vmatprep.subr.bf16.mxu0 %v3970_v24 }
0x1c51   :  { %3292 = vmatpush1.bf16.msra.mxu0 %v3969_v44  ;;  %v3494_v44 = vld [vmem:[#allocation6 + $0x58] sm:$0xff] }
0x1c52   :  { %3601 = vmatprep.subr.bf16.mxu0 %v4017_v1  ;;  %v4755_v1 = vld [vmem:[#allocation7 + $0x20] ss:$12 sps:$4 sm:$0xff]  }
0x1cf4   :  { %v2987_v36 = vpop.f32.mrf.mxu0 }
0x1cf5   :  { %v2988_v37 = vadd.f32 %v2987_v36, %v2866_v41  ;;  %v4009_v41 = vcombine.high %v3498_v8, %v3499_v9  ;;  %v3497_v36 = vld [vmem:[#allocation6 + $0xb8] sm:$0xff] }
0x1cf6   :  { %v2989_v28 = vpop.f32.mrf.mxu0 }
0x1cf7   :  { %v2990_v45 = vadd.f32 %v2989_v28, %v2870_v18  ;;  %v2994_v47 = vmax.f32 %v2988_v37, 0.0  ;;  %v3496_v18 = vld [vmem:[#allocation6 + $0x98] sm:$0xff]  ;;  %v4008_v37 = vcombine.low %v3498_v8, %v3499_v9 }
0x1cf8   :  { %v2991_v29 = vpop.f32.mrf.mxu0  ;;  %v4007_v28 = vcombine.high %v3496_v18, %v3497_v36 }
0x1cf9   :  { %v2995_v6 = vmax.f32 %v2990_v45, 0.0  ;;  %v2996_v30 = vpack.c.bf16 %v2994_v47, %v2994_v47  ;;  %v4006_v45 = vcombine.low %v3496_v18, %v3497_v36  ;;  %v3968_v47 = vld [vmem:[%s5744_s9 + $0x7] ss:$8 sm:$0x3] }
0x1cfa   :  { %v2992_v49 = vpop.f32.mrf.mxu0  ;;  %v3190_v29 = vrot.slane %v3968_v47, %v5067_v2 }
0x1cfb   :  { %v2997_v40 = vpack.c.bf16 %v2995_v6, %v2995_v6  ;;  %v3194_v6 = vrot.slane %v3968_v47, %v5072_v5 }
0x1cfd   :  { %3159 = vmatprep.mubr.bf16.mxu1 %v2997_v40 }
0x1cfe   :  { %3160 = vmatmul.mubr.bf16.vlgmr.msra.gmra.mxu1 %v2996_v30 }
0x1cff   :  { %4233 = vmatpush3.bf16.msra.mxu1 %v4727_v61  ;;  %v4004_v61 = vcombine.low %v3494_v44, %v3495_v17 }
0x1d00   :  { %4234 = vmatprep.subr.bf16.mxu1 %v4728_v23  ;;  %v4005_v23 = vcombine.high %v3494_v44, %v3495_v17 }
0x1d03   :  { %4235 = vmatpush3.bf16.msra.mxu1 %v4729_v57  ;;  %v3492_v57 = vld [vmem:[#allocation6 + $0x18] sm:$0xff] }
0x1d04   :  { %4236 = vmatprep.subr.bf16.mxu1 %v4730_v48  ;;  %v3493_v48 = vld [vmem:[#allocation6 + $0x38] sm:$0xff] }
0x1d07   :  { %4237 = vmatpush3.bf16.msra.mxu1 %v4731_v54  ;;  %v4003_v54 = vcombine.high %v3492_v57, %v3493_v48 }
0x1d08   :  { %4238 = vmatprep.subr.bf16.mxu1 %v4732_v15  ;;  %v4002_v15 = vcombine.low %v3492_v57, %v3493_v48 }
0x1d0b   :  { %4239 = vmatpush3.bf16.msra.mxu1 %v4733_v50  ;;  %v4742_v50 = vld [vmem:[#allocation7 + $0x170] ss:$12 sps:$4 sm:$0xff]  }
0x1d0c   :  { %4240 = vmatprep.subr.bf16.mxu1 %v4734_v21  ;;  %v4743_v21 = vld [vmem:[#allocation7 + $0xb0] ss:$12 sps:$4 sm:$0xff]  }
0x1d0f   :  { %4241 = vmatpush3.bf16.msra.mxu1 %v4735_v16  ;;  %v4744_v16 = vld [vmem:[#allocation7 + $0x158] ss:$12 sps:$4 sm:$0xff]  }
0x1d10   :  { %4242 = vmatprep.subr.bf16.mxu1 %v4736_v56  ;;  %v4745_v56 = vld [vmem:[#allocation7 + $0x98] ss:$12 sps:$4 sm:$0xff]  }
0x1d13   :  { %4243 = vmatpush3.bf16.msra.mxu1 %v4737_v53  ;;  %v4746_v53 = vld [vmem:[#allocation7 + $0x140] ss:$12 sps:$4 sm:$0xff]  }
0x1d14   :  { %4244 = vmatprep.subr.bf16.mxu1 %v4738_v12  ;;  %v3354_v12 = vld [vmem:[%s5744_s9 + $0x20] ss:$0 sm:$0xff] }
0x1d17   :  { %4245 = vmatpush3.bf16.msra.mxu1 %v4739_v13 }
0x1d18   :  { %4246 = vmatprep.subr.bf16.mxu1 %v4740_v51 }
0x1d1b   :  { %4247 = vmatpush3.bf16.msra.mxu1 %v4741_v32 }
0x1d1c   :  { %4254 = vmatprep.subr.bf16.mxu1 %v4742_v50 }
0x1dbe   :  { %v4226_v22 = vpop.f32.mrf.mxu1 }
0x1dc0   :  { %v4227_v26 = vpop.f32.mrf.mxu1 }
0x1dc1   :  { %v4228_v19 = vadd.f32 %v4227_v26, %v4226_v22  ;;  %v4747_v22 = vld [vmem:[#allocation7 + $0x80] ss:$12 sps:$4 sm:$0xff]   ;;  %v4749_v26 = vld [vmem:[#allocation7 + $0x68] ss:$12 sps:$4 sm:$0xff]  }
0x1dc2   :  { %v4229_v59 = vpop.f32.mrf.mxu1 }
0x1dc3   :  { %v3162_v10 = vadd.f32 %v4228_v19, %v3030_v58  ;;  %v4748_v58 = vld [vmem:[#allocation7 + $0x128] ss:$12 sps:$4 sm:$0xff]   ;;  %v4750_v19 = vld [vmem:[#allocation7 + $0x110] ss:$12 sps:$4 sm:$0xff]  }
0x1dc4   :  { %v4230_v62 = vpop.f32.mrf.mxu1  ;;  %v4751_v59 = vld [vmem:[#allocation7 + $0x50] ss:$12 sps:$4 sm:$0xff]  }
0x1dc5   :  { %v3167_v11 = vpack.c.bf16 %v3162_v10, %v3162_v10  ;;  %v4752_v10 = vld [vmem:[#allocation7 + $0xf8] ss:$12 sps:$4 sm:$0xff]  }
0x1dc6   :  { %v4753_v62 = vld [vmem:[#allocation7 + $0x38] ss:$12 sps:$4 sm:$0xff]  }
0x1dc7   :  { %3310 = vmatmul.mubr.bf16.vlgmr.msra.gmra.mxu0 %v3167_v11 }
0x1dc8   :  { %3633 = vmatprep.mubr.bf16.mxu0 %v4965_v0  ;;  %3602 = vmatpush1.bf16.msra.mxu0 %v4016_v60  ;;  %v4014_v0 = vcombine.low %v3504_v52, %v3505_v63  ;;  %v4754_v60 = vld [vmem:[#allocation7 + $0xe0] ss:$12 sps:$4 sm:$0xff]   ;;  %v4756_v63 = vld [vmem:[#allocation7 + $0xc8] ss:$12 sps:$4 sm:$0xff]  }
0x1dc9   :  { %3603 = vmatprep.subr.bf16.mxu0 %v4015_v4  ;;  %v4757_v4 = vld [vmem:[#allocation7 + $0x8] ss:$12 sps:$4 sm:$0xff]  }
0x1dcc   :  { %3604 = vmatpush1.bf16.msra.mxu0 %v4014_v0  ;;  %v3518_v0 = vrot.slane %v4001_v46, %v5072_v5 }
0x1dcd   :  { %3605 = vmatprep.subr.bf16.mxu0 %v4013_v55 }
0x1dd0   :  { %3606 = vmatpush1.bf16.msra.mxu0 %v4012_v33 }
0x1dd1   :  { %3607 = vmatprep.subr.bf16.mxu0 %v4011_v7 }
0x1dd4   :  { %3608 = vmatpush1.bf16.msra.mxu0 %v4010_v35 }
0x1dd5   :  { %3609 = vmatprep.subr.bf16.mxu0 %v4009_v41 }
0x1dd8   :  { %3610 = vmatpush1.bf16.msra.mxu0 %v4008_v37  ;;  %v3678_v37 = vld [vmem:[%s5744_s9 + $0x22] ss:$0 sm:$0xff] }
0x1dd9   :  { %3611 = vmatprep.subr.bf16.mxu0 %v4007_v28 }
0x1ddc   :  { %3612 = vmatpush1.bf16.msra.mxu0 %v4006_v45 }
0x1ddd   :  { %3613 = vmatprep.subr.bf16.mxu0 %v4005_v23 }
0x1de0   :  { %3614 = vmatpush1.bf16.msra.mxu0 %v4004_v61 }
0x1de1   :  { %3615 = vmatprep.subr.bf16.mxu0 %v4003_v54 }
0x1de4   :  { %3616 = vmatpush1.bf16.msra.mxu0 %v4002_v15 }
0x1e87   :  { %v3311_v49 = vpop.f32.mrf.mxu0 }
0x1e88   :  { %v3312_v40 = vadd.f32 %v3311_v49, %v3190_v29 }
0x1e89   :  { %v3313_v30 = vpop.f32.mrf.mxu0 }
0x1e8a   :  { %v3314_v25 = vadd.f32 %v3313_v30, %v3194_v6  ;;  %v3318_v38 = vmax.f32 %v3312_v40, 0.0 }
0x1e8b   :  { %v3315_v39 = vpop.f32.mrf.mxu0 }
0x1e8c   :  { %v3319_v42 = vmax.f32 %v3314_v25, 0.0  ;;  %v3320_v24 = vpack.c.bf16 %v3318_v38, %v3318_v38 }
0x1e8d   :  { %v3316_v14 = vpop.f32.mrf.mxu0 }
0x1e8e   :  { %v3321_v43 = vpack.c.bf16 %v3319_v42, %v3319_v42 }
0x1e90   :  { %3483 = vmatprep.mubr.bf16.mxu1 %v3321_v43 }
0x1e91   :  { %3484 = vmatmul.mubr.bf16.vlgmr.msra.gmra.mxu1 %v3320_v24 }
0x1e92   :  { %4255 = vmatpush3.bf16.msra.mxu1 %v4743_v21 }
0x1e93   :  { %4256 = vmatprep.subr.bf16.mxu1 %v4744_v16 }
0x1e96   :  { %4257 = vmatpush3.bf16.msra.mxu1 %v4745_v56 }
0x1e97   :  { %4258 = vmatprep.subr.bf16.mxu1 %v4746_v53 }
0x1e9a   :  { %4259 = vmatpush3.bf16.msra.mxu1 %v4747_v22 }
0x1e9b   :  { %4260 = vmatprep.subr.bf16.mxu1 %v4748_v58 }
0x1e9e   :  { %4261 = vmatpush3.bf16.msra.mxu1 %v4749_v26 }
0x1e9f   :  { %4262 = vmatprep.subr.bf16.mxu1 %v4750_v19 }
0x1ea2   :  { %4263 = vmatpush3.bf16.msra.mxu1 %v4751_v59 }
0x1ea3   :  { %4264 = vmatprep.subr.bf16.mxu1 %v4752_v10 }
0x1ea6   :  { %4265 = vmatpush3.bf16.msra.mxu1 %v4753_v62 }
0x1ea7   :  { %4266 = vmatprep.subr.bf16.mxu1 %v4754_v60 }
0x1eaa   :  { %4267 = vmatpush3.bf16.msra.mxu1 %v4755_v1 }
0x1eab   :  { %4268 = vmatprep.subr.bf16.mxu1 %v4756_v63 }
0x1eae   :  { %4269 = vmatpush3.bf16.msra.mxu1 %v4757_v4 }
0x1f51   :  { %v4248_v11 = vpop.f32.mrf.mxu1 }
0x1f53   :  { %v4249_v13 = vpop.f32.mrf.mxu1 }
0x1f54   :  { %v4250_v51 = vadd.f32 %v4249_v13, %v4248_v11 }
0x1f55   :  { %v4251_v32 = vpop.f32.mrf.mxu1 }
0x1f56   :  { %v3486_v27 = vadd.f32 %v4250_v51, %v3354_v12 }
0x1f57   :  { %v4252_v3 = vpop.f32.mrf.mxu1 }
0x1f58   :  { %v3491_v52 = vpack.c.bf16 %v3486_v27, %v3486_v27 }
0x1f5a   :  { %3634 = vmatmul.mubr.bf16.vlgmr.msra.gmra.mxu0 %v3491_v52 }
0x201a   :  { %v3635_v55 = vpop.f32.mrf.mxu0 }
0x201b   :  { %v3636_v31 = vadd.f32 %v3635_v55, %v3514_v20 }
0x201c   :  { %v3637_v34 = vpop.f32.mrf.mxu0 }
0x201d   :  { %v3638_v33 = vadd.f32 %v3637_v34, %v3518_v0  ;;  %v3642_v7 = vmax.f32 %v3636_v31, 0.0 }
0x201e   :  { %v3639_v8 = vpop.f32.mrf.mxu0 }
0x201f   :  { %v3643_v9 = vmax.f32 %v3638_v33, 0.0  ;;  %v3644_v18 = vpack.c.bf16 %v3642_v7, %v3642_v7 }
0x2020   :  { %v3640_v35 = vpop.f32.mrf.mxu0 }
0x2021   :  { %v3645_v41 = vpack.c.bf16 %v3643_v9, %v3643_v9 }
0x2023   :  { %3807 = vmatprep.mubr.bf16.mxu1 %v3645_v41 }
0x2024   :  { %3808 = vmatmul.mubr.bf16.vlgmr.msra.gmra.mxu1 %v3644_v18 }
0x20e4   :  { %v4270_v36 = vpop.f32.mrf.mxu1 }
0x20e6   :  { %v4271_v2 = vpop.f32.mrf.mxu1 }
0x20e7   :  { %v4272_v28 = vadd.f32 %v4271_v2, %v4270_v36 }
0x20e8   :  { %v4273_v5 = vpop.f32.mrf.mxu1 }
0x20e9   :  { %v3810_v45 = vadd.f32 %v4272_v28, %v3678_v37 }
0x20ea   :  { %v4274_v47 = vpop.f32.mrf.mxu1 }
0x20eb   :  { %3815 = vst [vmem:[%s5745_s10] sm:$0x3] %v3810_v45 }
0x20ec   :  { %3820 = vsyncpa [#allocation3], 1 }
0x20ed   :  { %3821 = vsyncpa [#allocation5], 1 }
0x20ee   :  { %3822 = vsyncpa [#allocation8], 1 }
0x20ef   :  { %3823 = vsyncpa [#allocation11], 1 }

</bundles_post_ra>
